<compile_context>
chip_gen: v7x
topology: tpu7x:2x2x1
jax: 0.10.0
libtpu: 0.0.40
codegen_flags: <defaults>
</compile_context>

<pallas_src>
import jax
import jax.numpy as jnp
from jax.experimental import pallas as pl
from jax.experimental.pallas import tpu as pltpu

# ------------------------- configuration (small shapes) -------------------------
N, CIN, COUT = 2, 8, 8
H = W = 16
M = H * W                      # flattened spatial -> lane axis (256, lane dense)
KERNEL, STRIDE = 3, 1          # stride 1 -> no self.dw branch, skip branches active
S, D = 2, 3                    # ghost ratio / ghost depthwise kernel
E = 16                         # expansion size
RR = 4                         # SE reduction ratio
HK, VK = 3, 3                  # DFC attention kernels
IC1 = E // S                   # ghost-module-1 identity channels (8)
IC2 = COUT // S                # ghost-module-2 identity channels (4)
ER = E // RR                   # SE bottleneck channels (4)
W_SHIFT = (W - 1).bit_length() # log2(W), for flat-index -> (h, w) decode

W_NAMES = (
    "w_pw1", "b_pw1", "w_gdw1", "b_gdw1", "bnE_s", "bnE_b",
    "w_atth", "b_atth", "w_attv", "b_attv",
    "se_w1", "se_b1", "se_w2", "se_b2",
    "w_pw2", "b_pw2", "w_gdw2", "b_gdw2",
    "bnO_s", "bnO_b", "w_scdw", "b_scdw", "w_scpw", "b_scpw",
)


# ================================ fused kernel ==================================

def _ghost_layer_kernel(x_ref, *refs):
    r = dict(zip(W_NAMES, refs[:-1]))
    o_ref = refs[-1]

    # flat spatial index -> (h, w) decode; constants, used for conv edge masks
    lane = jax.lax.broadcasted_iota(jnp.int32, (1, M), 1)
    h_idx = jnp.right_shift(lane, W_SHIFT)
    w_idx = jnp.bitwise_and(lane, W - 1)

    def shifted(a, s):
        # result[:, k] = a[:, k + s]  (circular; wraps are masked by callers)
        return a if s == 0 else pltpu.roll(a, (-s) % M, axis=1)

    def dw3x3(a, w, b):
        # depthwise 3x3, stride 1, pad 1 on the (H, W) grid flattened on the lane axis
        acc, k = None, 0
        for di in (-1, 0, 1):
            for dj in (-1, 0, 1):
                tap = w[:, k:k + 1]
                if di == 0 and dj == 0:
                    term = tap * a
                else:
                    valid = ((h_idx + di >= 0) & (h_idx + di < H) &
                             (w_idx + dj >= 0) & (w_idx + dj < W)).astype(jnp.float32)
                    term = tap * (shifted(a, di * W + dj) * valid)
                acc = term if acc is None else acc + term
                k += 1
        return acc + b

    def dw_pooled_1d(a, w, b, horizontal):
        # (1,3)/(3,1) depthwise conv on the 2x2-pooled grid, evaluated directly on the
        # block-replicated full-resolution map (pooled neighbour == offset of 2 here)
        acc = None
        for k, d in enumerate((-1, 0, 1)):
            tap = w[:, k:k + 1]
            if d == 0:
                term = tap * a
            else:
                if horizontal:
                    s = 2 * d
                    valid = ((w_idx + s >= 0) & (w_idx + s < W)).astype(jnp.float32)
                else:
                    s = 2 * d * W
                    valid = ((h_idx + 2 * d >= 0) & (h_idx + 2 * d < H)).astype(jnp.float32)
                term = tap * (shifted(a, s) * valid)
            acc = term if acc is None else acc + term
        return acc + b

    def blockavg_2x2(a):
        # AvgPool2d(2,2), result replicated back to full resolution -- this also realizes
        # the later nearest 2x upsample for free (H, W assumed even).
        nxt_w = pltpu.roll(a, M - 1, axis=1)      # a[:, k+1]
        prv_w = pltpu.roll(a, 1, axis=1)          # a[:, k-1]
        pair_w = a + jnp.where(jnp.bitwise_and(w_idx, 1) == 0, nxt_w, prv_w)
        nxt_h = pltpu.roll(pair_w, M - W, axis=1)  # pair_w[:, k+W]
        prv_h = pltpu.roll(pair_w, W, axis=1)      # pair_w[:, k-W]
        return (pair_w + jnp.where(jnp.bitwise_and(h_idx, 1) == 0, nxt_h, prv_h)) * 0.25

    x = x_ref[0]                                                   # (CIN, M)

    # ---- one MXU pass: ghost-module-1 pointwise (identity half duplicated) + DFC 1x1 ----
    pw = jnp.dot(r["w_pw1"][...], x, preferred_element_type=jnp.float32) + r["b_pw1"][...]
    ghost1_in = pw[:2 * IC1, :]                                    # (E, M) rows [y1 ; y1]
    att_pw = pw[2 * IC1:, :]                                       # (E, M) attention 1x1 (full res)

    # ---- GhostModuleV3 #1: identity taps pass y1 through, ghost taps produce ghost(y1);
    #      result is cat([y1, ghost(y1)], channel) with no concatenate ----
    gm1 = dw3x3(ghost1_in, r["w_gdw1"][...], r["b_gdw1"][...])     # (E, M)
    conv_branch = jnp.maximum(gm1 * r["bnE_s"][...] + r["bnE_b"][...], 0.0)

    # ---- DFC attention: avgpool2x2 (commuted past the 1x1 conv) -> (1,HK) dw -> (VK,1) dw
    #      -> sigmoid; block-replicated so the nearest 2x upsample is implicit ----
    a1 = blockavg_2x2(att_pw)
    a2 = dw_pooled_1d(a1, r["w_atth"][...], r["b_atth"][...], horizontal=True)
    a3 = dw_pooled_1d(a2, r["w_attv"][...], r["b_attv"][...], horizontal=False)
    y = jax.nn.sigmoid(a3) * conv_branch                           # (E, M)

    # ---- SqueezeExcitation2d(E, RR): global mean + two tiny FCs as broadcast + reduce ----
    m = jnp.mean(y, axis=1, keepdims=True)                                         # (E, 1)
    z = jnp.maximum(jnp.sum(r["se_w1"][...] * m, axis=0, keepdims=True)
                    + r["se_b1"][...], 0.0)                                        # (1, ER)
    g = jax.nn.sigmoid(jnp.sum(r["se_w2"][...] * z, axis=1, keepdims=True)
                       + r["se_b2"][...])                                          # (E, 1)
    y = y * g

    # TODO(synk): stride > 1 path (self.dw InceptionModule + BN, strided convs) not
    # exercised; this configuration uses stride == 1.

    # ---- GhostModuleV3 #2 (head), same duplicated-identity trick ----
    h_in = jnp.dot(r["w_pw2"][...], y, preferred_element_type=jnp.float32) + r["b_pw2"][...]
    gm2 = dw3x3(h_in, r["w_gdw2"][...], r["b_gdw2"][...])          # (COUT, M)

    # ---- ResBlock shortcut: depthwise-separable conv on x ----
    s1 = dw3x3(x, r["w_scdw"][...], r["b_scdw"][...])              # (CIN, M)
    s2 = jnp.dot(r["w_scpw"][...], s1, preferred_element_type=jnp.float32) + r["b_scpw"][...]

    # ---- head BN + residual add (ResBlock activation=None): one lane-dense store ----
    o_ref[0] = gm2 * r["bnO_s"][...] + r["bnO_b"][...] + s2


# ============================ parameter construction ============================

class KeyGen:
    def __init__(self, seed):
        self.key = jax.random.PRNGKey(seed)

    def __call__(self):
        self.key, k = jax.random.split(self.key)
        return k


def init_bn(kg, c):
    return dict(
        gamma=jax.random.uniform(kg(), (c,), minval=0.8, maxval=1.2, dtype=jnp.float32),
        beta=0.1 * jax.random.normal(kg(), (c,), dtype=jnp.float32),
        mean=0.1 * jax.random.normal(kg(), (c,), dtype=jnp.float32),
        var=jax.random.uniform(kg(), (c,), minval=0.5, maxval=1.5, dtype=jnp.float32),
    )


def fold_bn(bn, eps=1e-5):
    s = bn["gamma"] / jnp.sqrt(bn["var"] + eps)
    return s, bn["beta"] - bn["mean"] * s


def conv_bn_pointwise(kg, cin, cout):
    w = 0.3 * jax.random.normal(kg(), (cout, cin), dtype=jnp.float32)
    s, b = fold_bn(init_bn(kg, cout))
    return w * s[:, None], b                       # fused (cout, cin), (cout,)


def conv_bn_depthwise(kg, c, kh, kw):
    w = 0.3 * jax.random.normal(kg(), (c, kh, kw), dtype=jnp.float32)
    s, b = fold_bn(init_bn(kg, c))
    return w * s[:, None, None], b                 # fused (c, kh, kw), (c,)


def inception_pointwise_params(kg, cin, cout, skip, num_branch=3):
    # ModuleList([conv_bn] * 3): all branches share weights -> sum == 3 * conv_bn(x)
    wf, bf = conv_bn_pointwise(kg, cin, cout)
    w_eff, b_eff = num_branch * wf, num_branch * bf
    if skip:                                       # BatchNorm2d skip branch
        a_s, b_s = fold_bn(init_bn(kg, cout))
        w_eff = w_eff + jnp.diag(a_s)
        b_eff = b_eff + b_s
    return w_eff, b_eff                            # (cout, cin), (cout,)


def inception_depthwise_params(kg, c, k, num_branch=3):
    wf, bf = conv_bn_depthwise(kg, c, k, k)
    w_eff, b_eff = num_branch * wf, num_branch * bf
    # skip BatchNorm branch (stride==1, cin==cout): per-channel affine at center tap
    a_s, b_s = fold_bn(init_bn(kg, c))
    w_eff = w_eff.at[:, k // 2, k // 2].add(a_s)
    b_eff = b_eff + b_s
    if k > 1:                                      # scale branch: grouped 1x1 conv + BN
        w_sc = 0.3 * jax.random.normal(kg(), (c,), dtype=jnp.float32)
        s_sc, b_sc = fold_bn(init_bn(kg, c))
        w_eff = w_eff.at[:, k // 2, k // 2].add(w_sc * s_sc)
        b_eff = b_eff + b_sc
    return w_eff, b_eff                            # (c, k, k), (c,)


def make_params(seed=0):
    kg = KeyGen(seed)

    def identity_dw(c, k):
        w = jnp.zeros((c, k * k), jnp.float32).at[:, (k // 2) * k + (k // 2)].set(1.0)
        return w, jnp.zeros((c,), jnp.float32)

    # --- GhostBottleNeckV3.conv : GhostModuleV3(CIN -> E), BN(E), ReLU ---
    pw1_w, pw1_b = inception_pointwise_params(kg, CIN, IC1, skip=(CIN == IC1))
    gdw1_w, gdw1_b = inception_depthwise_params(kg, IC1, D)
    bnE_s, bnE_b = fold_bn(init_bn(kg, E))

    # --- DFC attention ---
    attpw_w, attpw_b = conv_bn_pointwise(kg, CIN, E)
    atth_w, atth_b = conv_bn_depthwise(kg, E, 1, HK)
    attv_w, attv_b = conv_bn_depthwise(kg, E, VK, 1)

    # --- SqueezeExcitation2d(E, RR) ---
    se_w1 = 0.3 * jax.random.normal(kg(), (E, ER), dtype=jnp.float32)
    se_b1 = 0.1 * jax.random.normal(kg(), (ER,), dtype=jnp.float32)
    se_w2 = 0.3 * jax.random.normal(kg(), (ER, E), dtype=jnp.float32)
    se_b2 = 0.1 * jax.random.normal(kg(), (E,), dtype=jnp.float32)

    # --- head : GhostModuleV3(E -> COUT), BN(COUT) ---
    pw2_w, pw2_b = inception_pointwise_params(kg, E, IC2, skip=(E == IC2))
    gdw2_w, gdw2_b = inception_depthwise_params(kg, IC2, D)
    bnO_s, bnO_b = fold_bn(init_bn(kg, COUT))

    # --- ResBlock shortcut: DepthwiseSeparableConv2d(CIN -> COUT, KERNEL) ---
    scdw_w, scdw_b = conv_bn_depthwise(kg, CIN, KERNEL, KERNEL)
    scpw_w, scpw_b = conv_bn_pointwise(kg, CIN, COUT)

    id1_w, id1_b = identity_dw(IC1, D)
    id2_w, id2_b = identity_dw(IC2, D)

    return {
        # fused matmul #1: [ghost1 pointwise ; ghost1 pointwise (dup) ; attention 1x1]
        "w_pw1": jnp.concatenate([pw1_w, pw1_w, attpw_w], axis=0),           # (2*IC1+E, CIN)
        "b_pw1": jnp.concatenate([pw1_b, pw1_b, attpw_b])[:, None],
        # ghost1 depthwise: identity center taps for pass-through half, fused ghost conv
        "w_gdw1": jnp.concatenate([id1_w, gdw1_w.reshape(IC1, D * D)], axis=0),
        "b_gdw1": jnp.concatenate([id1_b, gdw1_b])[:, None],
        "bnE_s": bnE_s[:, None], "bnE_b": bnE_b[:, None],
        "w_atth": atth_w.reshape(E, HK), "b_atth": atth_b[:, None],
        "w_attv": attv_w.reshape(E, VK), "b_attv": attv_b[:, None],
        "se_w1": se_w1, "se_b1": se_b1[None, :],
        "se_w2": se_w2.T, "se_b2": se_b2[:, None],
        "w_pw2": jnp.concatenate([pw2_w, pw2_w], axis=0),                    # (2*IC2, E)
        "b_pw2": jnp.concatenate([pw2_b, pw2_b])[:, None],
        "w_gdw2": jnp.concatenate([id2_w, gdw2_w.reshape(IC2, D * D)], axis=0),
        "b_gdw2": jnp.concatenate([id2_b, gdw2_b])[:, None],
        "bnO_s": bnO_s[:, None], "bnO_b": bnO_b[:, None],
        "w_scdw": scdw_w.reshape(CIN, KERNEL * KERNEL), "b_scdw": scdw_b[:, None],
        "w_scpw": scpw_w, "b_scpw": scpw_b[:, None],
    }


# ================================== forward =====================================

def ghost_layer_v3_forward(x_nchw, params):
    """Whole layer (stride 1) in one pallas_call; x is NCHW, output is NCHW."""
    n, c, h, wdt = x_nchw.shape
    assert (h, wdt) == (H, W) and c == CIN
    m = h * wdt
    xf = x_nchw.reshape(n, c, m)            # channel-major, spatial on the lane axis (256)

    in_specs = [pl.BlockSpec((1, c, m), lambda i: (i, 0, 0))]
    args = [xf]
    for name in W_NAMES:
        arr = params[name]
        in_specs.append(pl.BlockSpec(arr.shape, lambda i: (0, 0)))
        args.append(arr)

    out = pl.pallas_call(
        _ghost_layer_kernel,
        out_shape=jax.ShapeDtypeStruct((n, COUT, m), jnp.float32),
        grid=(n,),                                       # batch axis -> both v7x TCs
        in_specs=in_specs,
        out_specs=pl.BlockSpec((1, COUT, m), lambda i: (i, 0, 0)),
        compiler_params=pltpu.CompilerParams(dimension_semantics=("parallel",)),
    )(*args)
    return out.reshape(n, COUT, h, wdt)


if __name__ == "__main__":
    params = make_params(seed=0)
    x = jax.random.normal(jax.random.PRNGKey(0), (N, CIN, H, W), dtype=jnp.float32)

    out = jax.jit(ghost_layer_v3_forward)(x, params)
    out = jax.block_until_ready(out)
    assert out.shape == (N, COUT, H, W)
    assert bool(jnp.all(jnp.isfinite(out)))
    print("KERNEL_OK")
</pallas_src>

<mosaic_0001>
module attributes {stable_mosaic.version = 11 : i64} {
  func.func @_ghost_layer_kernel(%arg0: i32, %arg1: memref<1x8x256xf32, #tpu.memory_space<vmem>>, %arg2: memref<32x8xf32, #tpu.memory_space<vmem>>, %arg3: memref<32x1xf32, #tpu.memory_space<vmem>>, %arg4: memref<16x9xf32, #tpu.memory_space<vmem>>, %arg5: memref<16x1xf32, #tpu.memory_space<vmem>>, %arg6: memref<16x1xf32, #tpu.memory_space<vmem>>, %arg7: memref<16x1xf32, #tpu.memory_space<vmem>>, %arg8: memref<16x3xf32, #tpu.memory_space<vmem>>, %arg9: memref<16x1xf32, #tpu.memory_space<vmem>>, %arg10: memref<16x3xf32, #tpu.memory_space<vmem>>, %arg11: memref<16x1xf32, #tpu.memory_space<vmem>>, %arg12: memref<16x4xf32, #tpu.memory_space<vmem>>, %arg13: memref<1x4xf32, #tpu.memory_space<vmem>>, %arg14: memref<16x4xf32, #tpu.memory_space<vmem>>, %arg15: memref<16x1xf32, #tpu.memory_space<vmem>>, %arg16: memref<8x16xf32, #tpu.memory_space<vmem>>, %arg17: memref<8x1xf32, #tpu.memory_space<vmem>>, %arg18: memref<8x9xf32, #tpu.memory_space<vmem>>, %arg19: memref<8x1xf32, #tpu.memory_space<vmem>>, %arg20: memref<8x1xf32, #tpu.memory_space<vmem>>, %arg21: memref<8x1xf32, #tpu.memory_space<vmem>>, %arg22: memref<8x9xf32, #tpu.memory_space<vmem>>, %arg23: memref<8x1xf32, #tpu.memory_space<vmem>>, %arg24: memref<8x8xf32, #tpu.memory_space<vmem>>, %arg25: memref<8x1xf32, #tpu.memory_space<vmem>>, %arg26: memref<1x8x256xf32, #tpu.memory_space<vmem>>) attributes {dimension_semantics = [#tpu.dimension_semantics<parallel>], iteration_bounds = array<i64: 2>, scalar_prefetch = 0 : i64, scratch_operands = 0 : i64, tpu.core_type = #tpu.core_type<tc>, window_params = [{transform_indices = @transform_0, window_bounds = array<i64: 1, 8, 256>}, {pipeline_mode = #tpu.pipeline_mode<synchronous>, transform_indices = @transform_1, window_bounds = array<i64: 32, 8>}, {pipeline_mode = #tpu.pipeline_mode<synchronous>, transform_indices = @transform_2, window_bounds = array<i64: 32, 1>}, {pipeline_mode = #tpu.pipeline_mode<synchronous>, transform_indices = @transform_3, window_bounds = array<i64: 16, 9>}, {pipeline_mode = #tpu.pipeline_mode<synchronous>, transform_indices = @transform_4, window_bounds = array<i64: 16, 1>}, {pipeline_mode = #tpu.pipeline_mode<synchronous>, transform_indices = @transform_5, window_bounds = array<i64: 16, 1>}, {pipeline_mode = #tpu.pipeline_mode<synchronous>, transform_indices = @transform_6, window_bounds = array<i64: 16, 1>}, {pipeline_mode = #tpu.pipeline_mode<synchronous>, transform_indices = @transform_7, window_bounds = array<i64: 16, 3>}, {pipeline_mode = #tpu.pipeline_mode<synchronous>, transform_indices = @transform_8, window_bounds = array<i64: 16, 1>}, {pipeline_mode = #tpu.pipeline_mode<synchronous>, transform_indices = @transform_9, window_bounds = array<i64: 16, 3>}, {pipeline_mode = #tpu.pipeline_mode<synchronous>, transform_indices = @transform_10, window_bounds = array<i64: 16, 1>}, {pipeline_mode = #tpu.pipeline_mode<synchronous>, transform_indices = @transform_11, window_bounds = array<i64: 16, 4>}, {pipeline_mode = #tpu.pipeline_mode<synchronous>, transform_indices = @transform_12, window_bounds = array<i64: 1, 4>}, {pipeline_mode = #tpu.pipeline_mode<synchronous>, transform_indices = @transform_13, window_bounds = array<i64: 16, 4>}, {pipeline_mode = #tpu.pipeline_mode<synchronous>, transform_indices = @transform_14, window_bounds = array<i64: 16, 1>}, {pipeline_mode = #tpu.pipeline_mode<synchronous>, transform_indices = @transform_15, window_bounds = array<i64: 8, 16>}, {pipeline_mode = #tpu.pipeline_mode<synchronous>, transform_indices = @transform_16, window_bounds = array<i64: 8, 1>}, {pipeline_mode = #tpu.pipeline_mode<synchronous>, transform_indices = @transform_17, window_bounds = array<i64: 8, 9>}, {pipeline_mode = #tpu.pipeline_mode<synchronous>, transform_indices = @transform_18, window_bounds = array<i64: 8, 1>}, {pipeline_mode = #tpu.pipeline_mode<synchronous>, transform_indices = @transform_19, window_bounds = array<i64: 8, 1>}, {pipeline_mode = #tpu.pipeline_mode<synchronous>, transform_indices = @transform_20, window_bounds = array<i64: 8, 1>}, {pipeline_mode = #tpu.pipeline_mode<synchronous>, transform_indices = @transform_21, window_bounds = array<i64: 8, 9>}, {pipeline_mode = #tpu.pipeline_mode<synchronous>, transform_indices = @transform_22, window_bounds = array<i64: 8, 1>}, {pipeline_mode = #tpu.pipeline_mode<synchronous>, transform_indices = @transform_23, window_bounds = array<i64: 8, 8>}, {pipeline_mode = #tpu.pipeline_mode<synchronous>, transform_indices = @transform_24, window_bounds = array<i64: 8, 1>}, {transform_indices = @transform_25, window_bounds = array<i64: 1, 8, 256>}]} {
    %0 = tpu.iota {dimensions = array<i32: 1>} : vector<1x256xi32>
    %c4_i32 = arith.constant 4 : i32
    %1 = vector.broadcast %c4_i32 : i32 to vector<1x256xi32>
    %2 = arith.shrsi %0, %1 : vector<1x256xi32>
    %c15_i32 = arith.constant 15 : i32
    %3 = vector.broadcast %c15_i32 : i32 to vector<1x256xi32>
    %4 = arith.andi %0, %3 : vector<1x256xi32>
    %c0 = arith.constant 0 : index
    %c0_0 = arith.constant 0 : index
    %c0_1 = arith.constant 0 : index
    %5 = vector.load %arg1[%c0, %c0_0, %c0_1] : memref<1x8x256xf32, #tpu.memory_space<vmem>>, vector<1x8x256xf32>
    %6 = vector.shape_cast %5 : vector<1x8x256xf32> to vector<8x256xf32>
    %c0_2 = arith.constant 0 : index
    %c0_3 = arith.constant 0 : index
    %7 = vector.load %arg2[%c0_2, %c0_3] : memref<32x8xf32, #tpu.memory_space<vmem>>, vector<32x8xf32>
    %cst = arith.constant dense<0.000000e+00> : vector<32x256xf32>
    %8 = tpu.matmul %7, %6, %cst {dimension_numbers = #tpu.dot_dimension_numbers<[1], [0], [0], [1], [0, 0, 1, 1], [], []>} : vector<32x8xf32>, vector<8x256xf32>, vector<32x256xf32> -> vector<32x256xf32>
    %c0_4 = arith.constant 0 : index
    %c0_5 = arith.constant 0 : index
    %9 = vector.load %arg3[%c0_4, %c0_5] : memref<32x1xf32, #tpu.memory_space<vmem>>, vector<32x1xf32>
    %10 = vector.broadcast %9 : vector<32x1xf32> to vector<32x256xf32>
    %11 = arith.addf %8, %10 : vector<32x256xf32>
    %12 = vector.extract_strided_slice %11 {offsets = [0, 0], sizes = [16, 256], strides = [1, 1]} : vector<32x256xf32> to vector<16x256xf32>
    %13 = vector.extract_strided_slice %11 {offsets = [16, 0], sizes = [16, 256], strides = [1, 1]} : vector<32x256xf32> to vector<16x256xf32>
    %c0_6 = arith.constant 0 : index
    %c0_7 = arith.constant 0 : index
    %14 = vector.load %arg4[%c0_6, %c0_7] : memref<16x9xf32, #tpu.memory_space<vmem>>, vector<16x9xf32>
    %c0_8 = arith.constant 0 : index
    %c0_9 = arith.constant 0 : index
    %15 = vector.load %arg5[%c0_8, %c0_9] : memref<16x1xf32, #tpu.memory_space<vmem>>, vector<16x1xf32>
    %16 = vector.extract_strided_slice %14 {offsets = [0, 0], sizes = [16, 1], strides = [1, 1]} : vector<16x9xf32> to vector<16x1xf32>
    %c-1_i32 = arith.constant -1 : i32
    %17 = vector.broadcast %c-1_i32 : i32 to vector<1x256xi32>
    %18 = arith.addi %2, %17 : vector<1x256xi32>
    %c0_i32 = arith.constant 0 : i32
    %19 = vector.broadcast %c0_i32 : i32 to vector<1x256xi32>
    %20 = arith.cmpi sge, %18, %19 : vector<1x256xi32>
    %c-1_i32_10 = arith.constant -1 : i32
    %21 = vector.broadcast %c-1_i32_10 : i32 to vector<1x256xi32>
    %22 = arith.addi %2, %21 : vector<1x256xi32>
    %c16_i32 = arith.constant 16 : i32
    %23 = vector.broadcast %c16_i32 : i32 to vector<1x256xi32>
    %24 = arith.cmpi slt, %22, %23 : vector<1x256xi32>
    %25 = arith.andi %20, %24 : vector<1x256xi1>
    %c-1_i32_11 = arith.constant -1 : i32
    %26 = vector.broadcast %c-1_i32_11 : i32 to vector<1x256xi32>
    %27 = arith.addi %4, %26 : vector<1x256xi32>
    %c0_i32_12 = arith.constant 0 : i32
    %28 = vector.broadcast %c0_i32_12 : i32 to vector<1x256xi32>
    %29 = arith.cmpi sge, %27, %28 : vector<1x256xi32>
    %30 = arith.andi %25, %29 : vector<1x256xi1>
    %c-1_i32_13 = arith.constant -1 : i32
    %31 = vector.broadcast %c-1_i32_13 : i32 to vector<1x256xi32>
    %32 = arith.addi %4, %31 : vector<1x256xi32>
    %c16_i32_14 = arith.constant 16 : i32
    %33 = vector.broadcast %c16_i32_14 : i32 to vector<1x256xi32>
    %34 = arith.cmpi slt, %32, %33 : vector<1x256xi32>
    %35 = arith.andi %30, %34 : vector<1x256xi1>
    %36 = arith.extui %35 : vector<1x256xi1> to vector<1x256xi32>
    %37 = arith.sitofp %36 : vector<1x256xi32> to vector<1x256xf32>
    %c17_i32 = arith.constant 17 : i32
    %38 = tpu.dynamic_rotate %12 by %c17_i32 dim 1 : vector<16x256xf32>, i32 -> vector<16x256xf32>
    %39 = vector.broadcast %37 : vector<1x256xf32> to vector<16x256xf32>
    %40 = arith.mulf %38, %39 : vector<16x256xf32>
    %41 = vector.broadcast %16 : vector<16x1xf32> to vector<16x256xf32>
    %42 = arith.mulf %41, %40 : vector<16x256xf32>
    %43 = vector.extract_strided_slice %14 {offsets = [0, 1], sizes = [16, 1], strides = [1, 1]} : vector<16x9xf32> to vector<16x1xf32>
    %c-1_i32_15 = arith.constant -1 : i32
    %44 = vector.broadcast %c-1_i32_15 : i32 to vector<1x256xi32>
    %45 = arith.addi %2, %44 : vector<1x256xi32>
    %c0_i32_16 = arith.constant 0 : i32
    %46 = vector.broadcast %c0_i32_16 : i32 to vector<1x256xi32>
    %47 = arith.cmpi sge, %45, %46 : vector<1x256xi32>
    %c-1_i32_17 = arith.constant -1 : i32
    %48 = vector.broadcast %c-1_i32_17 : i32 to vector<1x256xi32>
    %49 = arith.addi %2, %48 : vector<1x256xi32>
    %c16_i32_18 = arith.constant 16 : i32
    %50 = vector.broadcast %c16_i32_18 : i32 to vector<1x256xi32>
    %51 = arith.cmpi slt, %49, %50 : vector<1x256xi32>
    %52 = arith.andi %47, %51 : vector<1x256xi1>
    %c0_i32_19 = arith.constant 0 : i32
    %53 = vector.broadcast %c0_i32_19 : i32 to vector<1x256xi32>
    %54 = arith.addi %4, %53 : vector<1x256xi32>
    %c0_i32_20 = arith.constant 0 : i32
    %55 = vector.broadcast %c0_i32_20 : i32 to vector<1x256xi32>
    %56 = arith.cmpi sge, %54, %55 : vector<1x256xi32>
    %57 = arith.andi %52, %56 : vector<1x256xi1>
    %c0_i32_21 = arith.constant 0 : i32
    %58 = vector.broadcast %c0_i32_21 : i32 to vector<1x256xi32>
    %59 = arith.addi %4, %58 : vector<1x256xi32>
    %c16_i32_22 = arith.constant 16 : i32
    %60 = vector.broadcast %c16_i32_22 : i32 to vector<1x256xi32>
    %61 = arith.cmpi slt, %59, %60 : vector<1x256xi32>
    %62 = arith.andi %57, %61 : vector<1x256xi1>
    %63 = arith.extui %62 : vector<1x256xi1> to vector<1x256xi32>
    %64 = arith.sitofp %63 : vector<1x256xi32> to vector<1x256xf32>
    %c16_i32_23 = arith.constant 16 : i32
    %65 = tpu.dynamic_rotate %12 by %c16_i32_23 dim 1 : vector<16x256xf32>, i32 -> vector<16x256xf32>
    %66 = vector.broadcast %64 : vector<1x256xf32> to vector<16x256xf32>
    %67 = arith.mulf %65, %66 : vector<16x256xf32>
    %68 = vector.broadcast %43 : vector<16x1xf32> to vector<16x256xf32>
    %69 = arith.mulf %68, %67 : vector<16x256xf32>
    %70 = arith.addf %42, %69 : vector<16x256xf32>
    %71 = vector.extract_strided_slice %14 {offsets = [0, 2], sizes = [16, 1], strides = [1, 1]} : vector<16x9xf32> to vector<16x1xf32>
    %c-1_i32_24 = arith.constant -1 : i32
    %72 = vector.broadcast %c-1_i32_24 : i32 to vector<1x256xi32>
    %73 = arith.addi %2, %72 : vector<1x256xi32>
    %c0_i32_25 = arith.constant 0 : i32
    %74 = vector.broadcast %c0_i32_25 : i32 to vector<1x256xi32>
    %75 = arith.cmpi sge, %73, %74 : vector<1x256xi32>
    %c-1_i32_26 = arith.constant -1 : i32
    %76 = vector.broadcast %c-1_i32_26 : i32 to vector<1x256xi32>
    %77 = arith.addi %2, %76 : vector<1x256xi32>
    %c16_i32_27 = arith.constant 16 : i32
    %78 = vector.broadcast %c16_i32_27 : i32 to vector<1x256xi32>
    %79 = arith.cmpi slt, %77, %78 : vector<1x256xi32>
    %80 = arith.andi %75, %79 : vector<1x256xi1>
    %c1_i32 = arith.constant 1 : i32
    %81 = vector.broadcast %c1_i32 : i32 to vector<1x256xi32>
    %82 = arith.addi %4, %81 : vector<1x256xi32>
    %c0_i32_28 = arith.constant 0 : i32
    %83 = vector.broadcast %c0_i32_28 : i32 to vector<1x256xi32>
    %84 = arith.cmpi sge, %82, %83 : vector<1x256xi32>
    %85 = arith.andi %80, %84 : vector<1x256xi1>
    %c1_i32_29 = arith.constant 1 : i32
    %86 = vector.broadcast %c1_i32_29 : i32 to vector<1x256xi32>
    %87 = arith.addi %4, %86 : vector<1x256xi32>
    %c16_i32_30 = arith.constant 16 : i32
    %88 = vector.broadcast %c16_i32_30 : i32 to vector<1x256xi32>
    %89 = arith.cmpi slt, %87, %88 : vector<1x256xi32>
    %90 = arith.andi %85, %89 : vector<1x256xi1>
    %91 = arith.extui %90 : vector<1x256xi1> to vector<1x256xi32>
    %92 = arith.sitofp %91 : vector<1x256xi32> to vector<1x256xf32>
    %c15_i32_31 = arith.constant 15 : i32
    %93 = tpu.dynamic_rotate %12 by %c15_i32_31 dim 1 : vector<16x256xf32>, i32 -> vector<16x256xf32>
    %94 = vector.broadcast %92 : vector<1x256xf32> to vector<16x256xf32>
    %95 = arith.mulf %93, %94 : vector<16x256xf32>
    %96 = vector.broadcast %71 : vector<16x1xf32> to vector<16x256xf32>
    %97 = arith.mulf %96, %95 : vector<16x256xf32>
    %98 = arith.addf %70, %97 : vector<16x256xf32>
    %99 = vector.extract_strided_slice %14 {offsets = [0, 3], sizes = [16, 1], strides = [1, 1]} : vector<16x9xf32> to vector<16x1xf32>
    %c0_i32_32 = arith.constant 0 : i32
    %100 = vector.broadcast %c0_i32_32 : i32 to vector<1x256xi32>
    %101 = arith.addi %2, %100 : vector<1x256xi32>
    %c0_i32_33 = arith.constant 0 : i32
    %102 = vector.broadcast %c0_i32_33 : i32 to vector<1x256xi32>
    %103 = arith.cmpi sge, %101, %102 : vector<1x256xi32>
    %c0_i32_34 = arith.constant 0 : i32
    %104 = vector.broadcast %c0_i32_34 : i32 to vector<1x256xi32>
    %105 = arith.addi %2, %104 : vector<1x256xi32>
    %c16_i32_35 = arith.constant 16 : i32
    %106 = vector.broadcast %c16_i32_35 : i32 to vector<1x256xi32>
    %107 = arith.cmpi slt, %105, %106 : vector<1x256xi32>
    %108 = arith.andi %103, %107 : vector<1x256xi1>
    %c-1_i32_36 = arith.constant -1 : i32
    %109 = vector.broadcast %c-1_i32_36 : i32 to vector<1x256xi32>
    %110 = arith.addi %4, %109 : vector<1x256xi32>
    %c0_i32_37 = arith.constant 0 : i32
    %111 = vector.broadcast %c0_i32_37 : i32 to vector<1x256xi32>
    %112 = arith.cmpi sge, %110, %111 : vector<1x256xi32>
    %113 = arith.andi %108, %112 : vector<1x256xi1>
    %c-1_i32_38 = arith.constant -1 : i32
    %114 = vector.broadcast %c-1_i32_38 : i32 to vector<1x256xi32>
    %115 = arith.addi %4, %114 : vector<1x256xi32>
    %c16_i32_39 = arith.constant 16 : i32
    %116 = vector.broadcast %c16_i32_39 : i32 to vector<1x256xi32>
    %117 = arith.cmpi slt, %115, %116 : vector<1x256xi32>
    %118 = arith.andi %113, %117 : vector<1x256xi1>
    %119 = arith.extui %118 : vector<1x256xi1> to vector<1x256xi32>
    %120 = arith.sitofp %119 : vector<1x256xi32> to vector<1x256xf32>
    %c1_i32_40 = arith.constant 1 : i32
    %121 = tpu.dynamic_rotate %12 by %c1_i32_40 dim 1 : vector<16x256xf32>, i32 -> vector<16x256xf32>
    %122 = vector.broadcast %120 : vector<1x256xf32> to vector<16x256xf32>
    %123 = arith.mulf %121, %122 : vector<16x256xf32>
    %124 = vector.broadcast %99 : vector<16x1xf32> to vector<16x256xf32>
    %125 = arith.mulf %124, %123 : vector<16x256xf32>
    %126 = arith.addf %98, %125 : vector<16x256xf32>
    %127 = vector.extract_strided_slice %14 {offsets = [0, 4], sizes = [16, 1], strides = [1, 1]} : vector<16x9xf32> to vector<16x1xf32>
    %128 = vector.broadcast %127 : vector<16x1xf32> to vector<16x256xf32>
    %129 = arith.mulf %128, %12 : vector<16x256xf32>
    %130 = arith.addf %126, %129 : vector<16x256xf32>
    %131 = vector.extract_strided_slice %14 {offsets = [0, 5], sizes = [16, 1], strides = [1, 1]} : vector<16x9xf32> to vector<16x1xf32>
    %c0_i32_41 = arith.constant 0 : i32
    %132 = vector.broadcast %c0_i32_41 : i32 to vector<1x256xi32>
    %133 = arith.addi %2, %132 : vector<1x256xi32>
    %c0_i32_42 = arith.constant 0 : i32
    %134 = vector.broadcast %c0_i32_42 : i32 to vector<1x256xi32>
    %135 = arith.cmpi sge, %133, %134 : vector<1x256xi32>
    %c0_i32_43 = arith.constant 0 : i32
    %136 = vector.broadcast %c0_i32_43 : i32 to vector<1x256xi32>
    %137 = arith.addi %2, %136 : vector<1x256xi32>
    %c16_i32_44 = arith.constant 16 : i32
    %138 = vector.broadcast %c16_i32_44 : i32 to vector<1x256xi32>
    %139 = arith.cmpi slt, %137, %138 : vector<1x256xi32>
    %140 = arith.andi %135, %139 : vector<1x256xi1>
    %c1_i32_45 = arith.constant 1 : i32
    %141 = vector.broadcast %c1_i32_45 : i32 to vector<1x256xi32>
    %142 = arith.addi %4, %141 : vector<1x256xi32>
    %c0_i32_46 = arith.constant 0 : i32
    %143 = vector.broadcast %c0_i32_46 : i32 to vector<1x256xi32>
    %144 = arith.cmpi sge, %142, %143 : vector<1x256xi32>
    %145 = arith.andi %140, %144 : vector<1x256xi1>
    %c1_i32_47 = arith.constant 1 : i32
    %146 = vector.broadcast %c1_i32_47 : i32 to vector<1x256xi32>
    %147 = arith.addi %4, %146 : vector<1x256xi32>
    %c16_i32_48 = arith.constant 16 : i32
    %148 = vector.broadcast %c16_i32_48 : i32 to vector<1x256xi32>
    %149 = arith.cmpi slt, %147, %148 : vector<1x256xi32>
    %150 = arith.andi %145, %149 : vector<1x256xi1>
    %151 = arith.extui %150 : vector<1x256xi1> to vector<1x256xi32>
    %152 = arith.sitofp %151 : vector<1x256xi32> to vector<1x256xf32>
    %c255_i32 = arith.constant 255 : i32
    %153 = tpu.dynamic_rotate %12 by %c255_i32 dim 1 : vector<16x256xf32>, i32 -> vector<16x256xf32>
    %154 = vector.broadcast %152 : vector<1x256xf32> to vector<16x256xf32>
    %155 = arith.mulf %153, %154 : vector<16x256xf32>
    %156 = vector.broadcast %131 : vector<16x1xf32> to vector<16x256xf32>
    %157 = arith.mulf %156, %155 : vector<16x256xf32>
    %158 = arith.addf %130, %157 : vector<16x256xf32>
    %159 = vector.extract_strided_slice %14 {offsets = [0, 6], sizes = [16, 1], strides = [1, 1]} : vector<16x9xf32> to vector<16x1xf32>
    %c1_i32_49 = arith.constant 1 : i32
    %160 = vector.broadcast %c1_i32_49 : i32 to vector<1x256xi32>
    %161 = arith.addi %2, %160 : vector<1x256xi32>
    %c0_i32_50 = arith.constant 0 : i32
    %162 = vector.broadcast %c0_i32_50 : i32 to vector<1x256xi32>
    %163 = arith.cmpi sge, %161, %162 : vector<1x256xi32>
    %c1_i32_51 = arith.constant 1 : i32
    %164 = vector.broadcast %c1_i32_51 : i32 to vector<1x256xi32>
    %165 = arith.addi %2, %164 : vector<1x256xi32>
    %c16_i32_52 = arith.constant 16 : i32
    %166 = vector.broadcast %c16_i32_52 : i32 to vector<1x256xi32>
    %167 = arith.cmpi slt, %165, %166 : vector<1x256xi32>
    %168 = arith.andi %163, %167 : vector<1x256xi1>
    %c-1_i32_53 = arith.constant -1 : i32
    %169 = vector.broadcast %c-1_i32_53 : i32 to vector<1x256xi32>
    %170 = arith.addi %4, %169 : vector<1x256xi32>
    %c0_i32_54 = arith.constant 0 : i32
    %171 = vector.broadcast %c0_i32_54 : i32 to vector<1x256xi32>
    %172 = arith.cmpi sge, %170, %171 : vector<1x256xi32>
    %173 = arith.andi %168, %172 : vector<1x256xi1>
    %c-1_i32_55 = arith.constant -1 : i32
    %174 = vector.broadcast %c-1_i32_55 : i32 to vector<1x256xi32>
    %175 = arith.addi %4, %174 : vector<1x256xi32>
    %c16_i32_56 = arith.constant 16 : i32
    %176 = vector.broadcast %c16_i32_56 : i32 to vector<1x256xi32>
    %177 = arith.cmpi slt, %175, %176 : vector<1x256xi32>
    %178 = arith.andi %173, %177 : vector<1x256xi1>
    %179 = arith.extui %178 : vector<1x256xi1> to vector<1x256xi32>
    %180 = arith.sitofp %179 : vector<1x256xi32> to vector<1x256xf32>
    %c241_i32 = arith.constant 241 : i32
    %181 = tpu.dynamic_rotate %12 by %c241_i32 dim 1 : vector<16x256xf32>, i32 -> vector<16x256xf32>
    %182 = vector.broadcast %180 : vector<1x256xf32> to vector<16x256xf32>
    %183 = arith.mulf %181, %182 : vector<16x256xf32>
    %184 = vector.broadcast %159 : vector<16x1xf32> to vector<16x256xf32>
    %185 = arith.mulf %184, %183 : vector<16x256xf32>
    %186 = arith.addf %158, %185 : vector<16x256xf32>
    %187 = vector.extract_strided_slice %14 {offsets = [0, 7], sizes = [16, 1], strides = [1, 1]} : vector<16x9xf32> to vector<16x1xf32>
    %c1_i32_57 = arith.constant 1 : i32
    %188 = vector.broadcast %c1_i32_57 : i32 to vector<1x256xi32>
    %189 = arith.addi %2, %188 : vector<1x256xi32>
    %c0_i32_58 = arith.constant 0 : i32
    %190 = vector.broadcast %c0_i32_58 : i32 to vector<1x256xi32>
    %191 = arith.cmpi sge, %189, %190 : vector<1x256xi32>
    %c1_i32_59 = arith.constant 1 : i32
    %192 = vector.broadcast %c1_i32_59 : i32 to vector<1x256xi32>
    %193 = arith.addi %2, %192 : vector<1x256xi32>
    %c16_i32_60 = arith.constant 16 : i32
    %194 = vector.broadcast %c16_i32_60 : i32 to vector<1x256xi32>
    %195 = arith.cmpi slt, %193, %194 : vector<1x256xi32>
    %196 = arith.andi %191, %195 : vector<1x256xi1>
    %c0_i32_61 = arith.constant 0 : i32
    %197 = vector.broadcast %c0_i32_61 : i32 to vector<1x256xi32>
    %198 = arith.addi %4, %197 : vector<1x256xi32>
    %c0_i32_62 = arith.constant 0 : i32
    %199 = vector.broadcast %c0_i32_62 : i32 to vector<1x256xi32>
    %200 = arith.cmpi sge, %198, %199 : vector<1x256xi32>
    %201 = arith.andi %196, %200 : vector<1x256xi1>
    %c0_i32_63 = arith.constant 0 : i32
    %202 = vector.broadcast %c0_i32_63 : i32 to vector<1x256xi32>
    %203 = arith.addi %4, %202 : vector<1x256xi32>
    %c16_i32_64 = arith.constant 16 : i32
    %204 = vector.broadcast %c16_i32_64 : i32 to vector<1x256xi32>
    %205 = arith.cmpi slt, %203, %204 : vector<1x256xi32>
    %206 = arith.andi %201, %205 : vector<1x256xi1>
    %207 = arith.extui %206 : vector<1x256xi1> to vector<1x256xi32>
    %208 = arith.sitofp %207 : vector<1x256xi32> to vector<1x256xf32>
    %c240_i32 = arith.constant 240 : i32
    %209 = tpu.dynamic_rotate %12 by %c240_i32 dim 1 : vector<16x256xf32>, i32 -> vector<16x256xf32>
    %210 = vector.broadcast %208 : vector<1x256xf32> to vector<16x256xf32>
    %211 = arith.mulf %209, %210 : vector<16x256xf32>
    %212 = vector.broadcast %187 : vector<16x1xf32> to vector<16x256xf32>
    %213 = arith.mulf %212, %211 : vector<16x256xf32>
    %214 = arith.addf %186, %213 : vector<16x256xf32>
    %215 = vector.extract_strided_slice %14 {offsets = [0, 8], sizes = [16, 1], strides = [1, 1]} : vector<16x9xf32> to vector<16x1xf32>
    %c1_i32_65 = arith.constant 1 : i32
    %216 = vector.broadcast %c1_i32_65 : i32 to vector<1x256xi32>
    %217 = arith.addi %2, %216 : vector<1x256xi32>
    %c0_i32_66 = arith.constant 0 : i32
    %218 = vector.broadcast %c0_i32_66 : i32 to vector<1x256xi32>
    %219 = arith.cmpi sge, %217, %218 : vector<1x256xi32>
    %c1_i32_67 = arith.constant 1 : i32
    %220 = vector.broadcast %c1_i32_67 : i32 to vector<1x256xi32>
    %221 = arith.addi %2, %220 : vector<1x256xi32>
    %c16_i32_68 = arith.constant 16 : i32
    %222 = vector.broadcast %c16_i32_68 : i32 to vector<1x256xi32>
    %223 = arith.cmpi slt, %221, %222 : vector<1x256xi32>
    %224 = arith.andi %219, %223 : vector<1x256xi1>
    %c1_i32_69 = arith.constant 1 : i32
    %225 = vector.broadcast %c1_i32_69 : i32 to vector<1x256xi32>
    %226 = arith.addi %4, %225 : vector<1x256xi32>
    %c0_i32_70 = arith.constant 0 : i32
    %227 = vector.broadcast %c0_i32_70 : i32 to vector<1x256xi32>
    %228 = arith.cmpi sge, %226, %227 : vector<1x256xi32>
    %229 = arith.andi %224, %228 : vector<1x256xi1>
    %c1_i32_71 = arith.constant 1 : i32
    %230 = vector.broadcast %c1_i32_71 : i32 to vector<1x256xi32>
    %231 = arith.addi %4, %230 : vector<1x256xi32>
    %c16_i32_72 = arith.constant 16 : i32
    %232 = vector.broadcast %c16_i32_72 : i32 to vector<1x256xi32>
    %233 = arith.cmpi slt, %231, %232 : vector<1x256xi32>
    %234 = arith.andi %229, %233 : vector<1x256xi1>
    %235 = arith.extui %234 : vector<1x256xi1> to vector<1x256xi32>
    %236 = arith.sitofp %235 : vector<1x256xi32> to vector<1x256xf32>
    %c239_i32 = arith.constant 239 : i32
    %237 = tpu.dynamic_rotate %12 by %c239_i32 dim 1 : vector<16x256xf32>, i32 -> vector<16x256xf32>
    %238 = vector.broadcast %236 : vector<1x256xf32> to vector<16x256xf32>
    %239 = arith.mulf %237, %238 : vector<16x256xf32>
    %240 = vector.broadcast %215 : vector<16x1xf32> to vector<16x256xf32>
    %241 = arith.mulf %240, %239 : vector<16x256xf32>
    %242 = arith.addf %214, %241 : vector<16x256xf32>
    %243 = vector.broadcast %15 : vector<16x1xf32> to vector<16x256xf32>
    %244 = arith.addf %242, %243 : vector<16x256xf32>
    %c0_73 = arith.constant 0 : index
    %c0_74 = arith.constant 0 : index
    %245 = vector.load %arg6[%c0_73, %c0_74] : memref<16x1xf32, #tpu.memory_space<vmem>>, vector<16x1xf32>
    %246 = vector.broadcast %245 : vector<16x1xf32> to vector<16x256xf32>
    %247 = arith.mulf %244, %246 : vector<16x256xf32>
    %c0_75 = arith.constant 0 : index
    %c0_76 = arith.constant 0 : index
    %248 = vector.load %arg7[%c0_75, %c0_76] : memref<16x1xf32, #tpu.memory_space<vmem>>, vector<16x1xf32>
    %249 = vector.broadcast %248 : vector<16x1xf32> to vector<16x256xf32>
    %250 = arith.addf %247, %249 : vector<16x256xf32>
    %cst_77 = arith.constant 0.000000e+00 : f32
    %251 = vector.broadcast %cst_77 : f32 to vector<16x256xf32>
    %252 = arith.maximumf %250, %251 : vector<16x256xf32>
    %c255_i32_78 = arith.constant 255 : i32
    %253 = tpu.dynamic_rotate %13 by %c255_i32_78 dim 1 : vector<16x256xf32>, i32 -> vector<16x256xf32>
    %c1_i32_79 = arith.constant 1 : i32
    %254 = tpu.dynamic_rotate %13 by %c1_i32_79 dim 1 : vector<16x256xf32>, i32 -> vector<16x256xf32>
    %c1_i32_80 = arith.constant 1 : i32
    %255 = vector.broadcast %c1_i32_80 : i32 to vector<1x256xi32>
    %256 = arith.andi %4, %255 : vector<1x256xi32>
    %c0_i32_81 = arith.constant 0 : i32
    %257 = vector.broadcast %c0_i32_81 : i32 to vector<1x256xi32>
    %258 = arith.cmpi eq, %256, %257 : vector<1x256xi32>
    %259 = vector.shape_cast %258 : vector<1x256xi1> to vector<1x256xi1>
    %260 = vector.broadcast %259 : vector<1x256xi1> to vector<16x256xi1>
    %261 = arith.select %260, %253, %254 : vector<16x256xi1>, vector<16x256xf32>
    %262 = arith.addf %13, %261 : vector<16x256xf32>
    %c240_i32_82 = arith.constant 240 : i32
    %263 = tpu.dynamic_rotate %262 by %c240_i32_82 dim 1 : vector<16x256xf32>, i32 -> vector<16x256xf32>
    %c16_i32_83 = arith.constant 16 : i32
    %264 = tpu.dynamic_rotate %262 by %c16_i32_83 dim 1 : vector<16x256xf32>, i32 -> vector<16x256xf32>
    %c1_i32_84 = arith.constant 1 : i32
    %265 = vector.broadcast %c1_i32_84 : i32 to vector<1x256xi32>
    %266 = arith.andi %2, %265 : vector<1x256xi32>
    %c0_i32_85 = arith.constant 0 : i32
    %267 = vector.broadcast %c0_i32_85 : i32 to vector<1x256xi32>
    %268 = arith.cmpi eq, %266, %267 : vector<1x256xi32>
    %269 = vector.shape_cast %268 : vector<1x256xi1> to vector<1x256xi1>
    %270 = vector.broadcast %269 : vector<1x256xi1> to vector<16x256xi1>
    %271 = arith.select %270, %263, %264 : vector<16x256xi1>, vector<16x256xf32>
    %272 = arith.addf %262, %271 : vector<16x256xf32>
    %cst_86 = arith.constant 2.500000e-01 : f32
    %273 = vector.broadcast %cst_86 : f32 to vector<16x256xf32>
    %274 = arith.mulf %272, %273 : vector<16x256xf32>
    %c0_87 = arith.constant 0 : index
    %c0_88 = arith.constant 0 : index
    %275 = vector.load %arg8[%c0_87, %c0_88] : memref<16x3xf32, #tpu.memory_space<vmem>>, vector<16x3xf32>
    %c0_89 = arith.constant 0 : index
    %c0_90 = arith.constant 0 : index
    %276 = vector.load %arg9[%c0_89, %c0_90] : memref<16x1xf32, #tpu.memory_space<vmem>>, vector<16x1xf32>
    %277 = vector.extract_strided_slice %275 {offsets = [0, 0], sizes = [16, 1], strides = [1, 1]} : vector<16x3xf32> to vector<16x1xf32>
    %c-2_i32 = arith.constant -2 : i32
    %278 = vector.broadcast %c-2_i32 : i32 to vector<1x256xi32>
    %279 = arith.addi %4, %278 : vector<1x256xi32>
    %c0_i32_91 = arith.constant 0 : i32
    %280 = vector.broadcast %c0_i32_91 : i32 to vector<1x256xi32>
    %281 = arith.cmpi sge, %279, %280 : vector<1x256xi32>
    %c-2_i32_92 = arith.constant -2 : i32
    %282 = vector.broadcast %c-2_i32_92 : i32 to vector<1x256xi32>
    %283 = arith.addi %4, %282 : vector<1x256xi32>
    %c16_i32_93 = arith.constant 16 : i32
    %284 = vector.broadcast %c16_i32_93 : i32 to vector<1x256xi32>
    %285 = arith.cmpi slt, %283, %284 : vector<1x256xi32>
    %286 = arith.andi %281, %285 : vector<1x256xi1>
    %287 = arith.extui %286 : vector<1x256xi1> to vector<1x256xi32>
    %288 = arith.sitofp %287 : vector<1x256xi32> to vector<1x256xf32>
    %c2_i32 = arith.constant 2 : i32
    %289 = tpu.dynamic_rotate %274 by %c2_i32 dim 1 : vector<16x256xf32>, i32 -> vector<16x256xf32>
    %290 = vector.broadcast %288 : vector<1x256xf32> to vector<16x256xf32>
    %291 = arith.mulf %289, %290 : vector<16x256xf32>
    %292 = vector.broadcast %277 : vector<16x1xf32> to vector<16x256xf32>
    %293 = arith.mulf %292, %291 : vector<16x256xf32>
    %294 = vector.extract_strided_slice %275 {offsets = [0, 1], sizes = [16, 1], strides = [1, 1]} : vector<16x3xf32> to vector<16x1xf32>
    %295 = vector.broadcast %294 : vector<16x1xf32> to vector<16x256xf32>
    %296 = arith.mulf %295, %274 : vector<16x256xf32>
    %297 = arith.addf %293, %296 : vector<16x256xf32>
    %298 = vector.extract_strided_slice %275 {offsets = [0, 2], sizes = [16, 1], strides = [1, 1]} : vector<16x3xf32> to vector<16x1xf32>
    %c2_i32_94 = arith.constant 2 : i32
    %299 = vector.broadcast %c2_i32_94 : i32 to vector<1x256xi32>
    %300 = arith.addi %4, %299 : vector<1x256xi32>
    %c0_i32_95 = arith.constant 0 : i32
    %301 = vector.broadcast %c0_i32_95 : i32 to vector<1x256xi32>
    %302 = arith.cmpi sge, %300, %301 : vector<1x256xi32>
    %c2_i32_96 = arith.constant 2 : i32
    %303 = vector.broadcast %c2_i32_96 : i32 to vector<1x256xi32>
    %304 = arith.addi %4, %303 : vector<1x256xi32>
    %c16_i32_97 = arith.constant 16 : i32
    %305 = vector.broadcast %c16_i32_97 : i32 to vector<1x256xi32>
    %306 = arith.cmpi slt, %304, %305 : vector<1x256xi32>
    %307 = arith.andi %302, %306 : vector<1x256xi1>
    %308 = arith.extui %307 : vector<1x256xi1> to vector<1x256xi32>
    %309 = arith.sitofp %308 : vector<1x256xi32> to vector<1x256xf32>
    %c254_i32 = arith.constant 254 : i32
    %310 = tpu.dynamic_rotate %274 by %c254_i32 dim 1 : vector<16x256xf32>, i32 -> vector<16x256xf32>
    %311 = vector.broadcast %309 : vector<1x256xf32> to vector<16x256xf32>
    %312 = arith.mulf %310, %311 : vector<16x256xf32>
    %313 = vector.broadcast %298 : vector<16x1xf32> to vector<16x256xf32>
    %314 = arith.mulf %313, %312 : vector<16x256xf32>
    %315 = arith.addf %297, %314 : vector<16x256xf32>
    %316 = vector.broadcast %276 : vector<16x1xf32> to vector<16x256xf32>
    %317 = arith.addf %315, %316 : vector<16x256xf32>
    %c0_98 = arith.constant 0 : index
    %c0_99 = arith.constant 0 : index
    %318 = vector.load %arg10[%c0_98, %c0_99] : memref<16x3xf32, #tpu.memory_space<vmem>>, vector<16x3xf32>
    %c0_100 = arith.constant 0 : index
    %c0_101 = arith.constant 0 : index
    %319 = vector.load %arg11[%c0_100, %c0_101] : memref<16x1xf32, #tpu.memory_space<vmem>>, vector<16x1xf32>
    %320 = vector.extract_strided_slice %318 {offsets = [0, 0], sizes = [16, 1], strides = [1, 1]} : vector<16x3xf32> to vector<16x1xf32>
    %c-2_i32_102 = arith.constant -2 : i32
    %321 = vector.broadcast %c-2_i32_102 : i32 to vector<1x256xi32>
    %322 = arith.addi %2, %321 : vector<1x256xi32>
    %c0_i32_103 = arith.constant 0 : i32
    %323 = vector.broadcast %c0_i32_103 : i32 to vector<1x256xi32>
    %324 = arith.cmpi sge, %322, %323 : vector<1x256xi32>
    %c-2_i32_104 = arith.constant -2 : i32
    %325 = vector.broadcast %c-2_i32_104 : i32 to vector<1x256xi32>
    %326 = arith.addi %2, %325 : vector<1x256xi32>
    %c16_i32_105 = arith.constant 16 : i32
    %327 = vector.broadcast %c16_i32_105 : i32 to vector<1x256xi32>
    %328 = arith.cmpi slt, %326, %327 : vector<1x256xi32>
    %329 = arith.andi %324, %328 : vector<1x256xi1>
    %330 = arith.extui %329 : vector<1x256xi1> to vector<1x256xi32>
    %331 = arith.sitofp %330 : vector<1x256xi32> to vector<1x256xf32>
    %c32_i32 = arith.constant 32 : i32
    %332 = tpu.dynamic_rotate %317 by %c32_i32 dim 1 : vector<16x256xf32>, i32 -> vector<16x256xf32>
    %333 = vector.broadcast %331 : vector<1x256xf32> to vector<16x256xf32>
    %334 = arith.mulf %332, %333 : vector<16x256xf32>
    %335 = vector.broadcast %320 : vector<16x1xf32> to vector<16x256xf32>
    %336 = arith.mulf %335, %334 : vector<16x256xf32>
    %337 = vector.extract_strided_slice %318 {offsets = [0, 1], sizes = [16, 1], strides = [1, 1]} : vector<16x3xf32> to vector<16x1xf32>
    %338 = vector.broadcast %337 : vector<16x1xf32> to vector<16x256xf32>
    %339 = arith.mulf %338, %317 : vector<16x256xf32>
    %340 = arith.addf %336, %339 : vector<16x256xf32>
    %341 = vector.extract_strided_slice %318 {offsets = [0, 2], sizes = [16, 1], strides = [1, 1]} : vector<16x3xf32> to vector<16x1xf32>
    %c2_i32_106 = arith.constant 2 : i32
    %342 = vector.broadcast %c2_i32_106 : i32 to vector<1x256xi32>
    %343 = arith.addi %2, %342 : vector<1x256xi32>
    %c0_i32_107 = arith.constant 0 : i32
    %344 = vector.broadcast %c0_i32_107 : i32 to vector<1x256xi32>
    %345 = arith.cmpi sge, %343, %344 : vector<1x256xi32>
    %c2_i32_108 = arith.constant 2 : i32
    %346 = vector.broadcast %c2_i32_108 : i32 to vector<1x256xi32>
    %347 = arith.addi %2, %346 : vector<1x256xi32>
    %c16_i32_109 = arith.constant 16 : i32
    %348 = vector.broadcast %c16_i32_109 : i32 to vector<1x256xi32>
    %349 = arith.cmpi slt, %347, %348 : vector<1x256xi32>
    %350 = arith.andi %345, %349 : vector<1x256xi1>
    %351 = arith.extui %350 : vector<1x256xi1> to vector<1x256xi32>
    %352 = arith.sitofp %351 : vector<1x256xi32> to vector<1x256xf32>
    %c224_i32 = arith.constant 224 : i32
    %353 = tpu.dynamic_rotate %317 by %c224_i32 dim 1 : vector<16x256xf32>, i32 -> vector<16x256xf32>
    %354 = vector.broadcast %352 : vector<1x256xf32> to vector<16x256xf32>
    %355 = arith.mulf %353, %354 : vector<16x256xf32>
    %356 = vector.broadcast %341 : vector<16x1xf32> to vector<16x256xf32>
    %357 = arith.mulf %356, %355 : vector<16x256xf32>
    %358 = arith.addf %340, %357 : vector<16x256xf32>
    %359 = vector.broadcast %319 : vector<16x1xf32> to vector<16x256xf32>
    %360 = arith.addf %358, %359 : vector<16x256xf32>
    %361 = arith.negf %360 : vector<16x256xf32>
    %362 = math.exp %361 : vector<16x256xf32>
    %cst_110 = arith.constant 1.000000e+00 : f32
    %363 = vector.broadcast %cst_110 : f32 to vector<16x256xf32>
    %364 = arith.addf %363, %362 : vector<16x256xf32>
    %365 = arith.divf %363, %364 : vector<16x256xf32>
    %366 = arith.mulf %365, %252 : vector<16x256xf32>
    %cst_111 = arith.constant dense<0.000000e+00> : vector<16xf32>
    %367 = vector.multi_reduction <add>, %366, %cst_111 [1] : vector<16x256xf32> to vector<16xf32>
    %368 = vector.shape_cast %367 : vector<16xf32> to vector<16x1xf32>
    %cst_112 = arith.constant 2.560000e+02 : f32
    %369 = vector.broadcast %cst_112 : f32 to vector<16x1xf32>
    %370 = arith.divf %368, %369 : vector<16x1xf32>
    %c0_113 = arith.constant 0 : index
    %c0_114 = arith.constant 0 : index
    %371 = vector.load %arg12[%c0_113, %c0_114] : memref<16x4xf32, #tpu.memory_space<vmem>>, vector<16x4xf32>
    %372 = vector.broadcast %370 : vector<16x1xf32> to vector<16x4xf32>
    %373 = arith.mulf %371, %372 : vector<16x4xf32>
    %cst_115 = arith.constant dense<0.000000e+00> : vector<4xf32>
    %374 = vector.multi_reduction <add>, %373, %cst_115 [0] : vector<16x4xf32> to vector<4xf32>
    %375 = vector.shape_cast %374 : vector<4xf32> to vector<1x4xf32>
    %c0_116 = arith.constant 0 : index
    %c0_117 = arith.constant 0 : index
    %376 = vector.load %arg13[%c0_116, %c0_117] : memref<1x4xf32, #tpu.memory_space<vmem>>, vector<1x4xf32>
    %377 = arith.addf %375, %376 : vector<1x4xf32>
    %cst_118 = arith.constant 0.000000e+00 : f32
    %378 = vector.broadcast %cst_118 : f32 to vector<1x4xf32>
    %379 = arith.maximumf %377, %378 : vector<1x4xf32>
    %c0_119 = arith.constant 0 : index
    %c0_120 = arith.constant 0 : index
    %380 = vector.load %arg14[%c0_119, %c0_120] : memref<16x4xf32, #tpu.memory_space<vmem>>, vector<16x4xf32>
    %381 = vector.broadcast %379 : vector<1x4xf32> to vector<16x4xf32>
    %382 = arith.mulf %380, %381 : vector<16x4xf32>
    %cst_121 = arith.constant dense<0.000000e+00> : vector<16xf32>
    %383 = vector.multi_reduction <add>, %382, %cst_121 [1] : vector<16x4xf32> to vector<16xf32>
    %384 = vector.shape_cast %383 : vector<16xf32> to vector<16x1xf32>
    %c0_122 = arith.constant 0 : index
    %c0_123 = arith.constant 0 : index
    %385 = vector.load %arg15[%c0_122, %c0_123] : memref<16x1xf32, #tpu.memory_space<vmem>>, vector<16x1xf32>
    %386 = arith.addf %384, %385 : vector<16x1xf32>
    %387 = arith.negf %386 : vector<16x1xf32>
    %388 = math.exp %387 : vector<16x1xf32>
    %cst_124 = arith.constant 1.000000e+00 : f32
    %389 = vector.broadcast %cst_124 : f32 to vector<16x1xf32>
    %390 = arith.addf %389, %388 : vector<16x1xf32>
    %391 = arith.divf %389, %390 : vector<16x1xf32>
    %392 = vector.broadcast %391 : vector<16x1xf32> to vector<16x256xf32>
    %393 = arith.mulf %366, %392 : vector<16x256xf32>
    %c0_125 = arith.constant 0 : index
    %c0_126 = arith.constant 0 : index
    %394 = vector.load %arg16[%c0_125, %c0_126] : memref<8x16xf32, #tpu.memory_space<vmem>>, vector<8x16xf32>
    %cst_127 = arith.constant dense<0.000000e+00> : vector<8x256xf32>
    %395 = tpu.matmul %394, %393, %cst_127 {dimension_numbers = #tpu.dot_dimension_numbers<[1], [0], [0], [1], [0, 0, 1, 1], [], []>} : vector<8x16xf32>, vector<16x256xf32>, vector<8x256xf32> -> vector<8x256xf32>
    %c0_128 = arith.constant 0 : index
    %c0_129 = arith.constant 0 : index
    %396 = vector.load %arg17[%c0_128, %c0_129] : memref<8x1xf32, #tpu.memory_space<vmem>>, vector<8x1xf32>
    %397 = vector.broadcast %396 : vector<8x1xf32> to vector<8x256xf32>
    %398 = arith.addf %395, %397 : vector<8x256xf32>
    %c0_130 = arith.constant 0 : index
    %c0_131 = arith.constant 0 : index
    %399 = vector.load %arg18[%c0_130, %c0_131] : memref<8x9xf32, #tpu.memory_space<vmem>>, vector<8x9xf32>
    %c0_132 = arith.constant 0 : index
    %c0_133 = arith.constant 0 : index
    %400 = vector.load %arg19[%c0_132, %c0_133] : memref<8x1xf32, #tpu.memory_space<vmem>>, vector<8x1xf32>
    %401 = vector.extract_strided_slice %399 {offsets = [0, 0], sizes = [8, 1], strides = [1, 1]} : vector<8x9xf32> to vector<8x1xf32>
    %c-1_i32_134 = arith.constant -1 : i32
    %402 = vector.broadcast %c-1_i32_134 : i32 to vector<1x256xi32>
    %403 = arith.addi %2, %402 : vector<1x256xi32>
    %c0_i32_135 = arith.constant 0 : i32
    %404 = vector.broadcast %c0_i32_135 : i32 to vector<1x256xi32>
    %405 = arith.cmpi sge, %403, %404 : vector<1x256xi32>
    %c-1_i32_136 = arith.constant -1 : i32
    %406 = vector.broadcast %c-1_i32_136 : i32 to vector<1x256xi32>
    %407 = arith.addi %2, %406 : vector<1x256xi32>
    %c16_i32_137 = arith.constant 16 : i32
    %408 = vector.broadcast %c16_i32_137 : i32 to vector<1x256xi32>
    %409 = arith.cmpi slt, %407, %408 : vector<1x256xi32>
    %410 = arith.andi %405, %409 : vector<1x256xi1>
    %c-1_i32_138 = arith.constant -1 : i32
    %411 = vector.broadcast %c-1_i32_138 : i32 to vector<1x256xi32>
    %412 = arith.addi %4, %411 : vector<1x256xi32>
    %c0_i32_139 = arith.constant 0 : i32
    %413 = vector.broadcast %c0_i32_139 : i32 to vector<1x256xi32>
    %414 = arith.cmpi sge, %412, %413 : vector<1x256xi32>
    %415 = arith.andi %410, %414 : vector<1x256xi1>
    %c-1_i32_140 = arith.constant -1 : i32
    %416 = vector.broadcast %c-1_i32_140 : i32 to vector<1x256xi32>
    %417 = arith.addi %4, %416 : vector<1x256xi32>
    %c16_i32_141 = arith.constant 16 : i32
    %418 = vector.broadcast %c16_i32_141 : i32 to vector<1x256xi32>
    %419 = arith.cmpi slt, %417, %418 : vector<1x256xi32>
    %420 = arith.andi %415, %419 : vector<1x256xi1>
    %421 = arith.extui %420 : vector<1x256xi1> to vector<1x256xi32>
    %422 = arith.sitofp %421 : vector<1x256xi32> to vector<1x256xf32>
    %c17_i32_142 = arith.constant 17 : i32
    %423 = tpu.dynamic_rotate %398 by %c17_i32_142 dim 1 : vector<8x256xf32>, i32 -> vector<8x256xf32>
    %424 = vector.broadcast %422 : vector<1x256xf32> to vector<8x256xf32>
    %425 = arith.mulf %423, %424 : vector<8x256xf32>
    %426 = vector.broadcast %401 : vector<8x1xf32> to vector<8x256xf32>
    %427 = arith.mulf %426, %425 : vector<8x256xf32>
    %428 = vector.extract_strided_slice %399 {offsets = [0, 1], sizes = [8, 1], strides = [1, 1]} : vector<8x9xf32> to vector<8x1xf32>
    %c-1_i32_143 = arith.constant -1 : i32
    %429 = vector.broadcast %c-1_i32_143 : i32 to vector<1x256xi32>
    %430 = arith.addi %2, %429 : vector<1x256xi32>
    %c0_i32_144 = arith.constant 0 : i32
    %431 = vector.broadcast %c0_i32_144 : i32 to vector<1x256xi32>
    %432 = arith.cmpi sge, %430, %431 : vector<1x256xi32>
    %c-1_i32_145 = arith.constant -1 : i32
    %433 = vector.broadcast %c-1_i32_145 : i32 to vector<1x256xi32>
    %434 = arith.addi %2, %433 : vector<1x256xi32>
    %c16_i32_146 = arith.constant 16 : i32
    %435 = vector.broadcast %c16_i32_146 : i32 to vector<1x256xi32>
    %436 = arith.cmpi slt, %434, %435 : vector<1x256xi32>
    %437 = arith.andi %432, %436 : vector<1x256xi1>
    %c0_i32_147 = arith.constant 0 : i32
    %438 = vector.broadcast %c0_i32_147 : i32 to vector<1x256xi32>
    %439 = arith.addi %4, %438 : vector<1x256xi32>
    %c0_i32_148 = arith.constant 0 : i32
    %440 = vector.broadcast %c0_i32_148 : i32 to vector<1x256xi32>
    %441 = arith.cmpi sge, %439, %440 : vector<1x256xi32>
    %442 = arith.andi %437, %441 : vector<1x256xi1>
    %c0_i32_149 = arith.constant 0 : i32
    %443 = vector.broadcast %c0_i32_149 : i32 to vector<1x256xi32>
    %444 = arith.addi %4, %443 : vector<1x256xi32>
    %c16_i32_150 = arith.constant 16 : i32
    %445 = vector.broadcast %c16_i32_150 : i32 to vector<1x256xi32>
    %446 = arith.cmpi slt, %444, %445 : vector<1x256xi32>
    %447 = arith.andi %442, %446 : vector<1x256xi1>
    %448 = arith.extui %447 : vector<1x256xi1> to vector<1x256xi32>
    %449 = arith.sitofp %448 : vector<1x256xi32> to vector<1x256xf32>
    %c16_i32_151 = arith.constant 16 : i32
    %450 = tpu.dynamic_rotate %398 by %c16_i32_151 dim 1 : vector<8x256xf32>, i32 -> vector<8x256xf32>
    %451 = vector.broadcast %449 : vector<1x256xf32> to vector<8x256xf32>
    %452 = arith.mulf %450, %451 : vector<8x256xf32>
    %453 = vector.broadcast %428 : vector<8x1xf32> to vector<8x256xf32>
    %454 = arith.mulf %453, %452 : vector<8x256xf32>
    %455 = arith.addf %427, %454 : vector<8x256xf32>
    %456 = vector.extract_strided_slice %399 {offsets = [0, 2], sizes = [8, 1], strides = [1, 1]} : vector<8x9xf32> to vector<8x1xf32>
    %c-1_i32_152 = arith.constant -1 : i32
    %457 = vector.broadcast %c-1_i32_152 : i32 to vector<1x256xi32>
    %458 = arith.addi %2, %457 : vector<1x256xi32>
    %c0_i32_153 = arith.constant 0 : i32
    %459 = vector.broadcast %c0_i32_153 : i32 to vector<1x256xi32>
    %460 = arith.cmpi sge, %458, %459 : vector<1x256xi32>
    %c-1_i32_154 = arith.constant -1 : i32
    %461 = vector.broadcast %c-1_i32_154 : i32 to vector<1x256xi32>
    %462 = arith.addi %2, %461 : vector<1x256xi32>
    %c16_i32_155 = arith.constant 16 : i32
    %463 = vector.broadcast %c16_i32_155 : i32 to vector<1x256xi32>
    %464 = arith.cmpi slt, %462, %463 : vector<1x256xi32>
    %465 = arith.andi %460, %464 : vector<1x256xi1>
    %c1_i32_156 = arith.constant 1 : i32
    %466 = vector.broadcast %c1_i32_156 : i32 to vector<1x256xi32>
    %467 = arith.addi %4, %466 : vector<1x256xi32>
    %c0_i32_157 = arith.constant 0 : i32
    %468 = vector.broadcast %c0_i32_157 : i32 to vector<1x256xi32>
    %469 = arith.cmpi sge, %467, %468 : vector<1x256xi32>
    %470 = arith.andi %465, %469 : vector<1x256xi1>
    %c1_i32_158 = arith.constant 1 : i32
    %471 = vector.broadcast %c1_i32_158 : i32 to vector<1x256xi32>
    %472 = arith.addi %4, %471 : vector<1x256xi32>
    %c16_i32_159 = arith.constant 16 : i32
    %473 = vector.broadcast %c16_i32_159 : i32 to vector<1x256xi32>
    %474 = arith.cmpi slt, %472, %473 : vector<1x256xi32>
    %475 = arith.andi %470, %474 : vector<1x256xi1>
    %476 = arith.extui %475 : vector<1x256xi1> to vector<1x256xi32>
    %477 = arith.sitofp %476 : vector<1x256xi32> to vector<1x256xf32>
    %c15_i32_160 = arith.constant 15 : i32
    %478 = tpu.dynamic_rotate %398 by %c15_i32_160 dim 1 : vector<8x256xf32>, i32 -> vector<8x256xf32>
    %479 = vector.broadcast %477 : vector<1x256xf32> to vector<8x256xf32>
    %480 = arith.mulf %478, %479 : vector<8x256xf32>
    %481 = vector.broadcast %456 : vector<8x1xf32> to vector<8x256xf32>
    %482 = arith.mulf %481, %480 : vector<8x256xf32>
    %483 = arith.addf %455, %482 : vector<8x256xf32>
    %484 = vector.extract_strided_slice %399 {offsets = [0, 3], sizes = [8, 1], strides = [1, 1]} : vector<8x9xf32> to vector<8x1xf32>
    %c0_i32_161 = arith.constant 0 : i32
    %485 = vector.broadcast %c0_i32_161 : i32 to vector<1x256xi32>
    %486 = arith.addi %2, %485 : vector<1x256xi32>
    %c0_i32_162 = arith.constant 0 : i32
    %487 = vector.broadcast %c0_i32_162 : i32 to vector<1x256xi32>
    %488 = arith.cmpi sge, %486, %487 : vector<1x256xi32>
    %c0_i32_163 = arith.constant 0 : i32
    %489 = vector.broadcast %c0_i32_163 : i32 to vector<1x256xi32>
    %490 = arith.addi %2, %489 : vector<1x256xi32>
    %c16_i32_164 = arith.constant 16 : i32
    %491 = vector.broadcast %c16_i32_164 : i32 to vector<1x256xi32>
    %492 = arith.cmpi slt, %490, %491 : vector<1x256xi32>
    %493 = arith.andi %488, %492 : vector<1x256xi1>
    %c-1_i32_165 = arith.constant -1 : i32
    %494 = vector.broadcast %c-1_i32_165 : i32 to vector<1x256xi32>
    %495 = arith.addi %4, %494 : vector<1x256xi32>
    %c0_i32_166 = arith.constant 0 : i32
    %496 = vector.broadcast %c0_i32_166 : i32 to vector<1x256xi32>
    %497 = arith.cmpi sge, %495, %496 : vector<1x256xi32>
    %498 = arith.andi %493, %497 : vector<1x256xi1>
    %c-1_i32_167 = arith.constant -1 : i32
    %499 = vector.broadcast %c-1_i32_167 : i32 to vector<1x256xi32>
    %500 = arith.addi %4, %499 : vector<1x256xi32>
    %c16_i32_168 = arith.constant 16 : i32
    %501 = vector.broadcast %c16_i32_168 : i32 to vector<1x256xi32>
    %502 = arith.cmpi slt, %500, %501 : vector<1x256xi32>
    %503 = arith.andi %498, %502 : vector<1x256xi1>
    %504 = arith.extui %503 : vector<1x256xi1> to vector<1x256xi32>
    %505 = arith.sitofp %504 : vector<1x256xi32> to vector<1x256xf32>
    %c1_i32_169 = arith.constant 1 : i32
    %506 = tpu.dynamic_rotate %398 by %c1_i32_169 dim 1 : vector<8x256xf32>, i32 -> vector<8x256xf32>
    %507 = vector.broadcast %505 : vector<1x256xf32> to vector<8x256xf32>
    %508 = arith.mulf %506, %507 : vector<8x256xf32>
    %509 = vector.broadcast %484 : vector<8x1xf32> to vector<8x256xf32>
    %510 = arith.mulf %509, %508 : vector<8x256xf32>
    %511 = arith.addf %483, %510 : vector<8x256xf32>
    %512 = vector.extract_strided_slice %399 {offsets = [0, 4], sizes = [8, 1], strides = [1, 1]} : vector<8x9xf32> to vector<8x1xf32>
    %513 = vector.broadcast %512 : vector<8x1xf32> to vector<8x256xf32>
    %514 = arith.mulf %513, %398 : vector<8x256xf32>
    %515 = arith.addf %511, %514 : vector<8x256xf32>
    %516 = vector.extract_strided_slice %399 {offsets = [0, 5], sizes = [8, 1], strides = [1, 1]} : vector<8x9xf32> to vector<8x1xf32>
    %c0_i32_170 = arith.constant 0 : i32
    %517 = vector.broadcast %c0_i32_170 : i32 to vector<1x256xi32>
    %518 = arith.addi %2, %517 : vector<1x256xi32>
    %c0_i32_171 = arith.constant 0 : i32
    %519 = vector.broadcast %c0_i32_171 : i32 to vector<1x256xi32>
    %520 = arith.cmpi sge, %518, %519 : vector<1x256xi32>
    %c0_i32_172 = arith.constant 0 : i32
    %521 = vector.broadcast %c0_i32_172 : i32 to vector<1x256xi32>
    %522 = arith.addi %2, %521 : vector<1x256xi32>
    %c16_i32_173 = arith.constant 16 : i32
    %523 = vector.broadcast %c16_i32_173 : i32 to vector<1x256xi32>
    %524 = arith.cmpi slt, %522, %523 : vector<1x256xi32>
    %525 = arith.andi %520, %524 : vector<1x256xi1>
    %c1_i32_174 = arith.constant 1 : i32
    %526 = vector.broadcast %c1_i32_174 : i32 to vector<1x256xi32>
    %527 = arith.addi %4, %526 : vector<1x256xi32>
    %c0_i32_175 = arith.constant 0 : i32
    %528 = vector.broadcast %c0_i32_175 : i32 to vector<1x256xi32>
    %529 = arith.cmpi sge, %527, %528 : vector<1x256xi32>
    %530 = arith.andi %525, %529 : vector<1x256xi1>
    %c1_i32_176 = arith.constant 1 : i32
    %531 = vector.broadcast %c1_i32_176 : i32 to vector<1x256xi32>
    %532 = arith.addi %4, %531 : vector<1x256xi32>
    %c16_i32_177 = arith.constant 16 : i32
    %533 = vector.broadcast %c16_i32_177 : i32 to vector<1x256xi32>
    %534 = arith.cmpi slt, %532, %533 : vector<1x256xi32>
    %535 = arith.andi %530, %534 : vector<1x256xi1>
    %536 = arith.extui %535 : vector<1x256xi1> to vector<1x256xi32>
    %537 = arith.sitofp %536 : vector<1x256xi32> to vector<1x256xf32>
    %c255_i32_178 = arith.constant 255 : i32
    %538 = tpu.dynamic_rotate %398 by %c255_i32_178 dim 1 : vector<8x256xf32>, i32 -> vector<8x256xf32>
    %539 = vector.broadcast %537 : vector<1x256xf32> to vector<8x256xf32>
    %540 = arith.mulf %538, %539 : vector<8x256xf32>
    %541 = vector.broadcast %516 : vector<8x1xf32> to vector<8x256xf32>
    %542 = arith.mulf %541, %540 : vector<8x256xf32>
    %543 = arith.addf %515, %542 : vector<8x256xf32>
    %544 = vector.extract_strided_slice %399 {offsets = [0, 6], sizes = [8, 1], strides = [1, 1]} : vector<8x9xf32> to vector<8x1xf32>
    %c1_i32_179 = arith.constant 1 : i32
    %545 = vector.broadcast %c1_i32_179 : i32 to vector<1x256xi32>
    %546 = arith.addi %2, %545 : vector<1x256xi32>
    %c0_i32_180 = arith.constant 0 : i32
    %547 = vector.broadcast %c0_i32_180 : i32 to vector<1x256xi32>
    %548 = arith.cmpi sge, %546, %547 : vector<1x256xi32>
    %c1_i32_181 = arith.constant 1 : i32
    %549 = vector.broadcast %c1_i32_181 : i32 to vector<1x256xi32>
    %550 = arith.addi %2, %549 : vector<1x256xi32>
    %c16_i32_182 = arith.constant 16 : i32
    %551 = vector.broadcast %c16_i32_182 : i32 to vector<1x256xi32>
    %552 = arith.cmpi slt, %550, %551 : vector<1x256xi32>
    %553 = arith.andi %548, %552 : vector<1x256xi1>
    %c-1_i32_183 = arith.constant -1 : i32
    %554 = vector.broadcast %c-1_i32_183 : i32 to vector<1x256xi32>
    %555 = arith.addi %4, %554 : vector<1x256xi32>
    %c0_i32_184 = arith.constant 0 : i32
    %556 = vector.broadcast %c0_i32_184 : i32 to vector<1x256xi32>
    %557 = arith.cmpi sge, %555, %556 : vector<1x256xi32>
    %558 = arith.andi %553, %557 : vector<1x256xi1>
    %c-1_i32_185 = arith.constant -1 : i32
    %559 = vector.broadcast %c-1_i32_185 : i32 to vector<1x256xi32>
    %560 = arith.addi %4, %559 : vector<1x256xi32>
    %c16_i32_186 = arith.constant 16 : i32
    %561 = vector.broadcast %c16_i32_186 : i32 to vector<1x256xi32>
    %562 = arith.cmpi slt, %560, %561 : vector<1x256xi32>
    %563 = arith.andi %558, %562 : vector<1x256xi1>
    %564 = arith.extui %563 : vector<1x256xi1> to vector<1x256xi32>
    %565 = arith.sitofp %564 : vector<1x256xi32> to vector<1x256xf32>
    %c241_i32_187 = arith.constant 241 : i32
    %566 = tpu.dynamic_rotate %398 by %c241_i32_187 dim 1 : vector<8x256xf32>, i32 -> vector<8x256xf32>
    %567 = vector.broadcast %565 : vector<1x256xf32> to vector<8x256xf32>
    %568 = arith.mulf %566, %567 : vector<8x256xf32>
    %569 = vector.broadcast %544 : vector<8x1xf32> to vector<8x256xf32>
    %570 = arith.mulf %569, %568 : vector<8x256xf32>
    %571 = arith.addf %543, %570 : vector<8x256xf32>
    %572 = vector.extract_strided_slice %399 {offsets = [0, 7], sizes = [8, 1], strides = [1, 1]} : vector<8x9xf32> to vector<8x1xf32>
    %c1_i32_188 = arith.constant 1 : i32
    %573 = vector.broadcast %c1_i32_188 : i32 to vector<1x256xi32>
    %574 = arith.addi %2, %573 : vector<1x256xi32>
    %c0_i32_189 = arith.constant 0 : i32
    %575 = vector.broadcast %c0_i32_189 : i32 to vector<1x256xi32>
    %576 = arith.cmpi sge, %574, %575 : vector<1x256xi32>
    %c1_i32_190 = arith.constant 1 : i32
    %577 = vector.broadcast %c1_i32_190 : i32 to vector<1x256xi32>
    %578 = arith.addi %2, %577 : vector<1x256xi32>
    %c16_i32_191 = arith.constant 16 : i32
    %579 = vector.broadcast %c16_i32_191 : i32 to vector<1x256xi32>
    %580 = arith.cmpi slt, %578, %579 : vector<1x256xi32>
    %581 = arith.andi %576, %580 : vector<1x256xi1>
    %c0_i32_192 = arith.constant 0 : i32
    %582 = vector.broadcast %c0_i32_192 : i32 to vector<1x256xi32>
    %583 = arith.addi %4, %582 : vector<1x256xi32>
    %c0_i32_193 = arith.constant 0 : i32
    %584 = vector.broadcast %c0_i32_193 : i32 to vector<1x256xi32>
    %585 = arith.cmpi sge, %583, %584 : vector<1x256xi32>
    %586 = arith.andi %581, %585 : vector<1x256xi1>
    %c0_i32_194 = arith.constant 0 : i32
    %587 = vector.broadcast %c0_i32_194 : i32 to vector<1x256xi32>
    %588 = arith.addi %4, %587 : vector<1x256xi32>
    %c16_i32_195 = arith.constant 16 : i32
    %589 = vector.broadcast %c16_i32_195 : i32 to vector<1x256xi32>
    %590 = arith.cmpi slt, %588, %589 : vector<1x256xi32>
    %591 = arith.andi %586, %590 : vector<1x256xi1>
    %592 = arith.extui %591 : vector<1x256xi1> to vector<1x256xi32>
    %593 = arith.sitofp %592 : vector<1x256xi32> to vector<1x256xf32>
    %c240_i32_196 = arith.constant 240 : i32
    %594 = tpu.dynamic_rotate %398 by %c240_i32_196 dim 1 : vector<8x256xf32>, i32 -> vector<8x256xf32>
    %595 = vector.broadcast %593 : vector<1x256xf32> to vector<8x256xf32>
    %596 = arith.mulf %594, %595 : vector<8x256xf32>
    %597 = vector.broadcast %572 : vector<8x1xf32> to vector<8x256xf32>
    %598 = arith.mulf %597, %596 : vector<8x256xf32>
    %599 = arith.addf %571, %598 : vector<8x256xf32>
    %600 = vector.extract_strided_slice %399 {offsets = [0, 8], sizes = [8, 1], strides = [1, 1]} : vector<8x9xf32> to vector<8x1xf32>
    %c1_i32_197 = arith.constant 1 : i32
    %601 = vector.broadcast %c1_i32_197 : i32 to vector<1x256xi32>
    %602 = arith.addi %2, %601 : vector<1x256xi32>
    %c0_i32_198 = arith.constant 0 : i32
    %603 = vector.broadcast %c0_i32_198 : i32 to vector<1x256xi32>
    %604 = arith.cmpi sge, %602, %603 : vector<1x256xi32>
    %c1_i32_199 = arith.constant 1 : i32
    %605 = vector.broadcast %c1_i32_199 : i32 to vector<1x256xi32>
    %606 = arith.addi %2, %605 : vector<1x256xi32>
    %c16_i32_200 = arith.constant 16 : i32
    %607 = vector.broadcast %c16_i32_200 : i32 to vector<1x256xi32>
    %608 = arith.cmpi slt, %606, %607 : vector<1x256xi32>
    %609 = arith.andi %604, %608 : vector<1x256xi1>
    %c1_i32_201 = arith.constant 1 : i32
    %610 = vector.broadcast %c1_i32_201 : i32 to vector<1x256xi32>
    %611 = arith.addi %4, %610 : vector<1x256xi32>
    %c0_i32_202 = arith.constant 0 : i32
    %612 = vector.broadcast %c0_i32_202 : i32 to vector<1x256xi32>
    %613 = arith.cmpi sge, %611, %612 : vector<1x256xi32>
    %614 = arith.andi %609, %613 : vector<1x256xi1>
    %c1_i32_203 = arith.constant 1 : i32
    %615 = vector.broadcast %c1_i32_203 : i32 to vector<1x256xi32>
    %616 = arith.addi %4, %615 : vector<1x256xi32>
    %c16_i32_204 = arith.constant 16 : i32
    %617 = vector.broadcast %c16_i32_204 : i32 to vector<1x256xi32>
    %618 = arith.cmpi slt, %616, %617 : vector<1x256xi32>
    %619 = arith.andi %614, %618 : vector<1x256xi1>
    %620 = arith.extui %619 : vector<1x256xi1> to vector<1x256xi32>
    %621 = arith.sitofp %620 : vector<1x256xi32> to vector<1x256xf32>
    %c239_i32_205 = arith.constant 239 : i32
    %622 = tpu.dynamic_rotate %398 by %c239_i32_205 dim 1 : vector<8x256xf32>, i32 -> vector<8x256xf32>
    %623 = vector.broadcast %621 : vector<1x256xf32> to vector<8x256xf32>
    %624 = arith.mulf %622, %623 : vector<8x256xf32>
    %625 = vector.broadcast %600 : vector<8x1xf32> to vector<8x256xf32>
    %626 = arith.mulf %625, %624 : vector<8x256xf32>
    %627 = arith.addf %599, %626 : vector<8x256xf32>
    %628 = vector.broadcast %400 : vector<8x1xf32> to vector<8x256xf32>
    %629 = arith.addf %627, %628 : vector<8x256xf32>
    %c0_206 = arith.constant 0 : index
    %c0_207 = arith.constant 0 : index
    %630 = vector.load %arg22[%c0_206, %c0_207] : memref<8x9xf32, #tpu.memory_space<vmem>>, vector<8x9xf32>
    %c0_208 = arith.constant 0 : index
    %c0_209 = arith.constant 0 : index
    %631 = vector.load %arg23[%c0_208, %c0_209] : memref<8x1xf32, #tpu.memory_space<vmem>>, vector<8x1xf32>
    %632 = vector.extract_strided_slice %630 {offsets = [0, 0], sizes = [8, 1], strides = [1, 1]} : vector<8x9xf32> to vector<8x1xf32>
    %c-1_i32_210 = arith.constant -1 : i32
    %633 = vector.broadcast %c-1_i32_210 : i32 to vector<1x256xi32>
    %634 = arith.addi %2, %633 : vector<1x256xi32>
    %c0_i32_211 = arith.constant 0 : i32
    %635 = vector.broadcast %c0_i32_211 : i32 to vector<1x256xi32>
    %636 = arith.cmpi sge, %634, %635 : vector<1x256xi32>
    %c-1_i32_212 = arith.constant -1 : i32
    %637 = vector.broadcast %c-1_i32_212 : i32 to vector<1x256xi32>
    %638 = arith.addi %2, %637 : vector<1x256xi32>
    %c16_i32_213 = arith.constant 16 : i32
    %639 = vector.broadcast %c16_i32_213 : i32 to vector<1x256xi32>
    %640 = arith.cmpi slt, %638, %639 : vector<1x256xi32>
    %641 = arith.andi %636, %640 : vector<1x256xi1>
    %c-1_i32_214 = arith.constant -1 : i32
    %642 = vector.broadcast %c-1_i32_214 : i32 to vector<1x256xi32>
    %643 = arith.addi %4, %642 : vector<1x256xi32>
    %c0_i32_215 = arith.constant 0 : i32
    %644 = vector.broadcast %c0_i32_215 : i32 to vector<1x256xi32>
    %645 = arith.cmpi sge, %643, %644 : vector<1x256xi32>
    %646 = arith.andi %641, %645 : vector<1x256xi1>
    %c-1_i32_216 = arith.constant -1 : i32
    %647 = vector.broadcast %c-1_i32_216 : i32 to vector<1x256xi32>
    %648 = arith.addi %4, %647 : vector<1x256xi32>
    %c16_i32_217 = arith.constant 16 : i32
    %649 = vector.broadcast %c16_i32_217 : i32 to vector<1x256xi32>
    %650 = arith.cmpi slt, %648, %649 : vector<1x256xi32>
    %651 = arith.andi %646, %650 : vector<1x256xi1>
    %652 = arith.extui %651 : vector<1x256xi1> to vector<1x256xi32>
    %653 = arith.sitofp %652 : vector<1x256xi32> to vector<1x256xf32>
    %c17_i32_218 = arith.constant 17 : i32
    %654 = tpu.dynamic_rotate %6 by %c17_i32_218 dim 1 : vector<8x256xf32>, i32 -> vector<8x256xf32>
    %655 = vector.broadcast %653 : vector<1x256xf32> to vector<8x256xf32>
    %656 = arith.mulf %654, %655 : vector<8x256xf32>
    %657 = vector.broadcast %632 : vector<8x1xf32> to vector<8x256xf32>
    %658 = arith.mulf %657, %656 : vector<8x256xf32>
    %659 = vector.extract_strided_slice %630 {offsets = [0, 1], sizes = [8, 1], strides = [1, 1]} : vector<8x9xf32> to vector<8x1xf32>
    %c-1_i32_219 = arith.constant -1 : i32
    %660 = vector.broadcast %c-1_i32_219 : i32 to vector<1x256xi32>
    %661 = arith.addi %2, %660 : vector<1x256xi32>
    %c0_i32_220 = arith.constant 0 : i32
    %662 = vector.broadcast %c0_i32_220 : i32 to vector<1x256xi32>
    %663 = arith.cmpi sge, %661, %662 : vector<1x256xi32>
    %c-1_i32_221 = arith.constant -1 : i32
    %664 = vector.broadcast %c-1_i32_221 : i32 to vector<1x256xi32>
    %665 = arith.addi %2, %664 : vector<1x256xi32>
    %c16_i32_222 = arith.constant 16 : i32
    %666 = vector.broadcast %c16_i32_222 : i32 to vector<1x256xi32>
    %667 = arith.cmpi slt, %665, %666 : vector<1x256xi32>
    %668 = arith.andi %663, %667 : vector<1x256xi1>
    %c0_i32_223 = arith.constant 0 : i32
    %669 = vector.broadcast %c0_i32_223 : i32 to vector<1x256xi32>
    %670 = arith.addi %4, %669 : vector<1x256xi32>
    %c0_i32_224 = arith.constant 0 : i32
    %671 = vector.broadcast %c0_i32_224 : i32 to vector<1x256xi32>
    %672 = arith.cmpi sge, %670, %671 : vector<1x256xi32>
    %673 = arith.andi %668, %672 : vector<1x256xi1>
    %c0_i32_225 = arith.constant 0 : i32
    %674 = vector.broadcast %c0_i32_225 : i32 to vector<1x256xi32>
    %675 = arith.addi %4, %674 : vector<1x256xi32>
    %c16_i32_226 = arith.constant 16 : i32
    %676 = vector.broadcast %c16_i32_226 : i32 to vector<1x256xi32>
    %677 = arith.cmpi slt, %675, %676 : vector<1x256xi32>
    %678 = arith.andi %673, %677 : vector<1x256xi1>
    %679 = arith.extui %678 : vector<1x256xi1> to vector<1x256xi32>
    %680 = arith.sitofp %679 : vector<1x256xi32> to vector<1x256xf32>
    %c16_i32_227 = arith.constant 16 : i32
    %681 = tpu.dynamic_rotate %6 by %c16_i32_227 dim 1 : vector<8x256xf32>, i32 -> vector<8x256xf32>
    %682 = vector.broadcast %680 : vector<1x256xf32> to vector<8x256xf32>
    %683 = arith.mulf %681, %682 : vector<8x256xf32>
    %684 = vector.broadcast %659 : vector<8x1xf32> to vector<8x256xf32>
    %685 = arith.mulf %684, %683 : vector<8x256xf32>
    %686 = arith.addf %658, %685 : vector<8x256xf32>
    %687 = vector.extract_strided_slice %630 {offsets = [0, 2], sizes = [8, 1], strides = [1, 1]} : vector<8x9xf32> to vector<8x1xf32>
    %c-1_i32_228 = arith.constant -1 : i32
    %688 = vector.broadcast %c-1_i32_228 : i32 to vector<1x256xi32>
    %689 = arith.addi %2, %688 : vector<1x256xi32>
    %c0_i32_229 = arith.constant 0 : i32
    %690 = vector.broadcast %c0_i32_229 : i32 to vector<1x256xi32>
    %691 = arith.cmpi sge, %689, %690 : vector<1x256xi32>
    %c-1_i32_230 = arith.constant -1 : i32
    %692 = vector.broadcast %c-1_i32_230 : i32 to vector<1x256xi32>
    %693 = arith.addi %2, %692 : vector<1x256xi32>
    %c16_i32_231 = arith.constant 16 : i32
    %694 = vector.broadcast %c16_i32_231 : i32 to vector<1x256xi32>
    %695 = arith.cmpi slt, %693, %694 : vector<1x256xi32>
    %696 = arith.andi %691, %695 : vector<1x256xi1>
    %c1_i32_232 = arith.constant 1 : i32
    %697 = vector.broadcast %c1_i32_232 : i32 to vector<1x256xi32>
    %698 = arith.addi %4, %697 : vector<1x256xi32>
    %c0_i32_233 = arith.constant 0 : i32
    %699 = vector.broadcast %c0_i32_233 : i32 to vector<1x256xi32>
    %700 = arith.cmpi sge, %698, %699 : vector<1x256xi32>
    %701 = arith.andi %696, %700 : vector<1x256xi1>
    %c1_i32_234 = arith.constant 1 : i32
    %702 = vector.broadcast %c1_i32_234 : i32 to vector<1x256xi32>
    %703 = arith.addi %4, %702 : vector<1x256xi32>
    %c16_i32_235 = arith.constant 16 : i32
    %704 = vector.broadcast %c16_i32_235 : i32 to vector<1x256xi32>
    %705 = arith.cmpi slt, %703, %704 : vector<1x256xi32>
    %706 = arith.andi %701, %705 : vector<1x256xi1>
    %707 = arith.extui %706 : vector<1x256xi1> to vector<1x256xi32>
    %708 = arith.sitofp %707 : vector<1x256xi32> to vector<1x256xf32>
    %c15_i32_236 = arith.constant 15 : i32
    %709 = tpu.dynamic_rotate %6 by %c15_i32_236 dim 1 : vector<8x256xf32>, i32 -> vector<8x256xf32>
    %710 = vector.broadcast %708 : vector<1x256xf32> to vector<8x256xf32>
    %711 = arith.mulf %709, %710 : vector<8x256xf32>
    %712 = vector.broadcast %687 : vector<8x1xf32> to vector<8x256xf32>
    %713 = arith.mulf %712, %711 : vector<8x256xf32>
    %714 = arith.addf %686, %713 : vector<8x256xf32>
    %715 = vector.extract_strided_slice %630 {offsets = [0, 3], sizes = [8, 1], strides = [1, 1]} : vector<8x9xf32> to vector<8x1xf32>
    %c0_i32_237 = arith.constant 0 : i32
    %716 = vector.broadcast %c0_i32_237 : i32 to vector<1x256xi32>
    %717 = arith.addi %2, %716 : vector<1x256xi32>
    %c0_i32_238 = arith.constant 0 : i32
    %718 = vector.broadcast %c0_i32_238 : i32 to vector<1x256xi32>
    %719 = arith.cmpi sge, %717, %718 : vector<1x256xi32>
    %c0_i32_239 = arith.constant 0 : i32
    %720 = vector.broadcast %c0_i32_239 : i32 to vector<1x256xi32>
    %721 = arith.addi %2, %720 : vector<1x256xi32>
    %c16_i32_240 = arith.constant 16 : i32
    %722 = vector.broadcast %c16_i32_240 : i32 to vector<1x256xi32>
    %723 = arith.cmpi slt, %721, %722 : vector<1x256xi32>
    %724 = arith.andi %719, %723 : vector<1x256xi1>
    %c-1_i32_241 = arith.constant -1 : i32
    %725 = vector.broadcast %c-1_i32_241 : i32 to vector<1x256xi32>
    %726 = arith.addi %4, %725 : vector<1x256xi32>
    %c0_i32_242 = arith.constant 0 : i32
    %727 = vector.broadcast %c0_i32_242 : i32 to vector<1x256xi32>
    %728 = arith.cmpi sge, %726, %727 : vector<1x256xi32>
    %729 = arith.andi %724, %728 : vector<1x256xi1>
    %c-1_i32_243 = arith.constant -1 : i32
    %730 = vector.broadcast %c-1_i32_243 : i32 to vector<1x256xi32>
    %731 = arith.addi %4, %730 : vector<1x256xi32>
    %c16_i32_244 = arith.constant 16 : i32
    %732 = vector.broadcast %c16_i32_244 : i32 to vector<1x256xi32>
    %733 = arith.cmpi slt, %731, %732 : vector<1x256xi32>
    %734 = arith.andi %729, %733 : vector<1x256xi1>
    %735 = arith.extui %734 : vector<1x256xi1> to vector<1x256xi32>
    %736 = arith.sitofp %735 : vector<1x256xi32> to vector<1x256xf32>
    %c1_i32_245 = arith.constant 1 : i32
    %737 = tpu.dynamic_rotate %6 by %c1_i32_245 dim 1 : vector<8x256xf32>, i32 -> vector<8x256xf32>
    %738 = vector.broadcast %736 : vector<1x256xf32> to vector<8x256xf32>
    %739 = arith.mulf %737, %738 : vector<8x256xf32>
    %740 = vector.broadcast %715 : vector<8x1xf32> to vector<8x256xf32>
    %741 = arith.mulf %740, %739 : vector<8x256xf32>
    %742 = arith.addf %714, %741 : vector<8x256xf32>
    %743 = vector.extract_strided_slice %630 {offsets = [0, 4], sizes = [8, 1], strides = [1, 1]} : vector<8x9xf32> to vector<8x1xf32>
    %744 = vector.broadcast %743 : vector<8x1xf32> to vector<8x256xf32>
    %745 = arith.mulf %744, %6 : vector<8x256xf32>
    %746 = arith.addf %742, %745 : vector<8x256xf32>
    %747 = vector.extract_strided_slice %630 {offsets = [0, 5], sizes = [8, 1], strides = [1, 1]} : vector<8x9xf32> to vector<8x1xf32>
    %c0_i32_246 = arith.constant 0 : i32
    %748 = vector.broadcast %c0_i32_246 : i32 to vector<1x256xi32>
    %749 = arith.addi %2, %748 : vector<1x256xi32>
    %c0_i32_247 = arith.constant 0 : i32
    %750 = vector.broadcast %c0_i32_247 : i32 to vector<1x256xi32>
    %751 = arith.cmpi sge, %749, %750 : vector<1x256xi32>
    %c0_i32_248 = arith.constant 0 : i32
    %752 = vector.broadcast %c0_i32_248 : i32 to vector<1x256xi32>
    %753 = arith.addi %2, %752 : vector<1x256xi32>
    %c16_i32_249 = arith.constant 16 : i32
    %754 = vector.broadcast %c16_i32_249 : i32 to vector<1x256xi32>
    %755 = arith.cmpi slt, %753, %754 : vector<1x256xi32>
    %756 = arith.andi %751, %755 : vector<1x256xi1>
    %c1_i32_250 = arith.constant 1 : i32
    %757 = vector.broadcast %c1_i32_250 : i32 to vector<1x256xi32>
    %758 = arith.addi %4, %757 : vector<1x256xi32>
    %c0_i32_251 = arith.constant 0 : i32
    %759 = vector.broadcast %c0_i32_251 : i32 to vector<1x256xi32>
    %760 = arith.cmpi sge, %758, %759 : vector<1x256xi32>
    %761 = arith.andi %756, %760 : vector<1x256xi1>
    %c1_i32_252 = arith.constant 1 : i32
    %762 = vector.broadcast %c1_i32_252 : i32 to vector<1x256xi32>
    %763 = arith.addi %4, %762 : vector<1x256xi32>
    %c16_i32_253 = arith.constant 16 : i32
    %764 = vector.broadcast %c16_i32_253 : i32 to vector<1x256xi32>
    %765 = arith.cmpi slt, %763, %764 : vector<1x256xi32>
    %766 = arith.andi %761, %765 : vector<1x256xi1>
    %767 = arith.extui %766 : vector<1x256xi1> to vector<1x256xi32>
    %768 = arith.sitofp %767 : vector<1x256xi32> to vector<1x256xf32>
    %c255_i32_254 = arith.constant 255 : i32
    %769 = tpu.dynamic_rotate %6 by %c255_i32_254 dim 1 : vector<8x256xf32>, i32 -> vector<8x256xf32>
    %770 = vector.broadcast %768 : vector<1x256xf32> to vector<8x256xf32>
    %771 = arith.mulf %769, %770 : vector<8x256xf32>
    %772 = vector.broadcast %747 : vector<8x1xf32> to vector<8x256xf32>
    %773 = arith.mulf %772, %771 : vector<8x256xf32>
    %774 = arith.addf %746, %773 : vector<8x256xf32>
    %775 = vector.extract_strided_slice %630 {offsets = [0, 6], sizes = [8, 1], strides = [1, 1]} : vector<8x9xf32> to vector<8x1xf32>
    %c1_i32_255 = arith.constant 1 : i32
    %776 = vector.broadcast %c1_i32_255 : i32 to vector<1x256xi32>
    %777 = arith.addi %2, %776 : vector<1x256xi32>
    %c0_i32_256 = arith.constant 0 : i32
    %778 = vector.broadcast %c0_i32_256 : i32 to vector<1x256xi32>
    %779 = arith.cmpi sge, %777, %778 : vector<1x256xi32>
    %c1_i32_257 = arith.constant 1 : i32
    %780 = vector.broadcast %c1_i32_257 : i32 to vector<1x256xi32>
    %781 = arith.addi %2, %780 : vector<1x256xi32>
    %c16_i32_258 = arith.constant 16 : i32
    %782 = vector.broadcast %c16_i32_258 : i32 to vector<1x256xi32>
    %783 = arith.cmpi slt, %781, %782 : vector<1x256xi32>
    %784 = arith.andi %779, %783 : vector<1x256xi1>
    %c-1_i32_259 = arith.constant -1 : i32
    %785 = vector.broadcast %c-1_i32_259 : i32 to vector<1x256xi32>
    %786 = arith.addi %4, %785 : vector<1x256xi32>
    %c0_i32_260 = arith.constant 0 : i32
    %787 = vector.broadcast %c0_i32_260 : i32 to vector<1x256xi32>
    %788 = arith.cmpi sge, %786, %787 : vector<1x256xi32>
    %789 = arith.andi %784, %788 : vector<1x256xi1>
    %c-1_i32_261 = arith.constant -1 : i32
    %790 = vector.broadcast %c-1_i32_261 : i32 to vector<1x256xi32>
    %791 = arith.addi %4, %790 : vector<1x256xi32>
    %c16_i32_262 = arith.constant 16 : i32
    %792 = vector.broadcast %c16_i32_262 : i32 to vector<1x256xi32>
    %793 = arith.cmpi slt, %791, %792 : vector<1x256xi32>
    %794 = arith.andi %789, %793 : vector<1x256xi1>
    %795 = arith.extui %794 : vector<1x256xi1> to vector<1x256xi32>
    %796 = arith.sitofp %795 : vector<1x256xi32> to vector<1x256xf32>
    %c241_i32_263 = arith.constant 241 : i32
    %797 = tpu.dynamic_rotate %6 by %c241_i32_263 dim 1 : vector<8x256xf32>, i32 -> vector<8x256xf32>
    %798 = vector.broadcast %796 : vector<1x256xf32> to vector<8x256xf32>
    %799 = arith.mulf %797, %798 : vector<8x256xf32>
    %800 = vector.broadcast %775 : vector<8x1xf32> to vector<8x256xf32>
    %801 = arith.mulf %800, %799 : vector<8x256xf32>
    %802 = arith.addf %774, %801 : vector<8x256xf32>
    %803 = vector.extract_strided_slice %630 {offsets = [0, 7], sizes = [8, 1], strides = [1, 1]} : vector<8x9xf32> to vector<8x1xf32>
    %c1_i32_264 = arith.constant 1 : i32
    %804 = vector.broadcast %c1_i32_264 : i32 to vector<1x256xi32>
    %805 = arith.addi %2, %804 : vector<1x256xi32>
    %c0_i32_265 = arith.constant 0 : i32
    %806 = vector.broadcast %c0_i32_265 : i32 to vector<1x256xi32>
    %807 = arith.cmpi sge, %805, %806 : vector<1x256xi32>
    %c1_i32_266 = arith.constant 1 : i32
    %808 = vector.broadcast %c1_i32_266 : i32 to vector<1x256xi32>
    %809 = arith.addi %2, %808 : vector<1x256xi32>
    %c16_i32_267 = arith.constant 16 : i32
    %810 = vector.broadcast %c16_i32_267 : i32 to vector<1x256xi32>
    %811 = arith.cmpi slt, %809, %810 : vector<1x256xi32>
    %812 = arith.andi %807, %811 : vector<1x256xi1>
    %c0_i32_268 = arith.constant 0 : i32
    %813 = vector.broadcast %c0_i32_268 : i32 to vector<1x256xi32>
    %814 = arith.addi %4, %813 : vector<1x256xi32>
    %c0_i32_269 = arith.constant 0 : i32
    %815 = vector.broadcast %c0_i32_269 : i32 to vector<1x256xi32>
    %816 = arith.cmpi sge, %814, %815 : vector<1x256xi32>
    %817 = arith.andi %812, %816 : vector<1x256xi1>
    %c0_i32_270 = arith.constant 0 : i32
    %818 = vector.broadcast %c0_i32_270 : i32 to vector<1x256xi32>
    %819 = arith.addi %4, %818 : vector<1x256xi32>
    %c16_i32_271 = arith.constant 16 : i32
    %820 = vector.broadcast %c16_i32_271 : i32 to vector<1x256xi32>
    %821 = arith.cmpi slt, %819, %820 : vector<1x256xi32>
    %822 = arith.andi %817, %821 : vector<1x256xi1>
    %823 = arith.extui %822 : vector<1x256xi1> to vector<1x256xi32>
    %824 = arith.sitofp %823 : vector<1x256xi32> to vector<1x256xf32>
    %c240_i32_272 = arith.constant 240 : i32
    %825 = tpu.dynamic_rotate %6 by %c240_i32_272 dim 1 : vector<8x256xf32>, i32 -> vector<8x256xf32>
    %826 = vector.broadcast %824 : vector<1x256xf32> to vector<8x256xf32>
    %827 = arith.mulf %825, %826 : vector<8x256xf32>
    %828 = vector.broadcast %803 : vector<8x1xf32> to vector<8x256xf32>
    %829 = arith.mulf %828, %827 : vector<8x256xf32>
    %830 = arith.addf %802, %829 : vector<8x256xf32>
    %831 = vector.extract_strided_slice %630 {offsets = [0, 8], sizes = [8, 1], strides = [1, 1]} : vector<8x9xf32> to vector<8x1xf32>
    %c1_i32_273 = arith.constant 1 : i32
    %832 = vector.broadcast %c1_i32_273 : i32 to vector<1x256xi32>
    %833 = arith.addi %2, %832 : vector<1x256xi32>
    %c0_i32_274 = arith.constant 0 : i32
    %834 = vector.broadcast %c0_i32_274 : i32 to vector<1x256xi32>
    %835 = arith.cmpi sge, %833, %834 : vector<1x256xi32>
    %c1_i32_275 = arith.constant 1 : i32
    %836 = vector.broadcast %c1_i32_275 : i32 to vector<1x256xi32>
    %837 = arith.addi %2, %836 : vector<1x256xi32>
    %c16_i32_276 = arith.constant 16 : i32
    %838 = vector.broadcast %c16_i32_276 : i32 to vector<1x256xi32>
    %839 = arith.cmpi slt, %837, %838 : vector<1x256xi32>
    %840 = arith.andi %835, %839 : vector<1x256xi1>
    %c1_i32_277 = arith.constant 1 : i32
    %841 = vector.broadcast %c1_i32_277 : i32 to vector<1x256xi32>
    %842 = arith.addi %4, %841 : vector<1x256xi32>
    %c0_i32_278 = arith.constant 0 : i32
    %843 = vector.broadcast %c0_i32_278 : i32 to vector<1x256xi32>
    %844 = arith.cmpi sge, %842, %843 : vector<1x256xi32>
    %845 = arith.andi %840, %844 : vector<1x256xi1>
    %c1_i32_279 = arith.constant 1 : i32
    %846 = vector.broadcast %c1_i32_279 : i32 to vector<1x256xi32>
    %847 = arith.addi %4, %846 : vector<1x256xi32>
    %c16_i32_280 = arith.constant 16 : i32
    %848 = vector.broadcast %c16_i32_280 : i32 to vector<1x256xi32>
    %849 = arith.cmpi slt, %847, %848 : vector<1x256xi32>
    %850 = arith.andi %845, %849 : vector<1x256xi1>
    %851 = arith.extui %850 : vector<1x256xi1> to vector<1x256xi32>
    %852 = arith.sitofp %851 : vector<1x256xi32> to vector<1x256xf32>
    %c239_i32_281 = arith.constant 239 : i32
    %853 = tpu.dynamic_rotate %6 by %c239_i32_281 dim 1 : vector<8x256xf32>, i32 -> vector<8x256xf32>
    %854 = vector.broadcast %852 : vector<1x256xf32> to vector<8x256xf32>
    %855 = arith.mulf %853, %854 : vector<8x256xf32>
    %856 = vector.broadcast %831 : vector<8x1xf32> to vector<8x256xf32>
    %857 = arith.mulf %856, %855 : vector<8x256xf32>
    %858 = arith.addf %830, %857 : vector<8x256xf32>
    %859 = vector.broadcast %631 : vector<8x1xf32> to vector<8x256xf32>
    %860 = arith.addf %858, %859 : vector<8x256xf32>
    %c0_282 = arith.constant 0 : index
    %c0_283 = arith.constant 0 : index
    %861 = vector.load %arg24[%c0_282, %c0_283] : memref<8x8xf32, #tpu.memory_space<vmem>>, vector<8x8xf32>
    %cst_284 = arith.constant dense<0.000000e+00> : vector<8x256xf32>
    %862 = tpu.matmul %861, %860, %cst_284 {dimension_numbers = #tpu.dot_dimension_numbers<[1], [0], [0], [1], [0, 0, 1, 1], [], []>} : vector<8x8xf32>, vector<8x256xf32>, vector<8x256xf32> -> vector<8x256xf32>
    %c0_285 = arith.constant 0 : index
    %c0_286 = arith.constant 0 : index
    %863 = vector.load %arg25[%c0_285, %c0_286] : memref<8x1xf32, #tpu.memory_space<vmem>>, vector<8x1xf32>
    %864 = vector.broadcast %863 : vector<8x1xf32> to vector<8x256xf32>
    %865 = arith.addf %862, %864 : vector<8x256xf32>
    %c0_287 = arith.constant 0 : index
    %c0_288 = arith.constant 0 : index
    %866 = vector.load %arg20[%c0_287, %c0_288] : memref<8x1xf32, #tpu.memory_space<vmem>>, vector<8x1xf32>
    %867 = vector.broadcast %866 : vector<8x1xf32> to vector<8x256xf32>
    %868 = arith.mulf %629, %867 : vector<8x256xf32>
    %c0_289 = arith.constant 0 : index
    %c0_290 = arith.constant 0 : index
    %869 = vector.load %arg21[%c0_289, %c0_290] : memref<8x1xf32, #tpu.memory_space<vmem>>, vector<8x1xf32>
    %870 = vector.broadcast %869 : vector<8x1xf32> to vector<8x256xf32>
    %871 = arith.addf %868, %870 : vector<8x256xf32>
    %872 = arith.addf %871, %865 : vector<8x256xf32>
    %c0_291 = arith.constant 0 : index
    %c0_292 = arith.constant 0 : index
    %c0_293 = arith.constant 0 : index
    %873 = vector.load %arg26[%c0_291, %c0_292, %c0_293] : memref<1x8x256xf32, #tpu.memory_space<vmem>>, vector<1x8x256xf32>
    %874 = vector.shape_cast %873 : vector<1x8x256xf32> to vector<8x256xf32>
    %875 = vector.shape_cast %872 : vector<8x256xf32> to vector<1x8x256xf32>
    tpu.vector_store %arg26[%c0_291, %c0_292, %c0_293], %875 {strides = array<i32>} : memref<1x8x256xf32, #tpu.memory_space<vmem>>, vector<1x8x256xf32>,
    return
  }
  func.func @transform_0(%arg0: i32) -> (i32, i32, i32) {
    %c0_i32 = arith.constant 0 : i32
    %c0_i32_0 = arith.constant 0 : i32
    %c0_i32_1 = arith.constant 0 : i32
    return %arg0, %c0_i32, %c0_i32_0 : i32, i32, i32
  }
  func.func @transform_1(%arg0: i32) -> (i32, i32) {
    %c0_i32 = arith.constant 0 : i32
    %c0_i32_0 = arith.constant 0 : i32
    %c0_i32_1 = arith.constant 0 : i32
    return %c0_i32, %c0_i32_0 : i32, i32
  }
  func.func @transform_2(%arg0: i32) -> (i32, i32) {
    %c0_i32 = arith.constant 0 : i32
    %c0_i32_0 = arith.constant 0 : i32
    %c0_i32_1 = arith.constant 0 : i32
    return %c0_i32, %c0_i32_0 : i32, i32
  }
  func.func @transform_3(%arg0: i32) -> (i32, i32) {
    %c0_i32 = arith.constant 0 : i32
    %c0_i32_0 = arith.constant 0 : i32
    %c0_i32_1 = arith.constant 0 : i32
    return %c0_i32, %c0_i32_0 : i32, i32
  }
  func.func @transform_4(%arg0: i32) -> (i32, i32) {
    %c0_i32 = arith.constant 0 : i32
    %c0_i32_0 = arith.constant 0 : i32
    %c0_i32_1 = arith.constant 0 : i32
    return %c0_i32, %c0_i32_0 : i32, i32
  }
  func.func @transform_5(%arg0: i32) -> (i32, i32) {
    %c0_i32 = arith.constant 0 : i32
    %c0_i32_0 = arith.constant 0 : i32
    %c0_i32_1 = arith.constant 0 : i32
    return %c0_i32, %c0_i32_0 : i32, i32
  }
  func.func @transform_6(%arg0: i32) -> (i32, i32) {
    %c0_i32 = arith.constant 0 : i32
    %c0_i32_0 = arith.constant 0 : i32
    %c0_i32_1 = arith.constant 0 : i32
    return %c0_i32, %c0_i32_0 : i32, i32
  }
  func.func @transform_7(%arg0: i32) -> (i32, i32) {
    %c0_i32 = arith.constant 0 : i32
    %c0_i32_0 = arith.constant 0 : i32
    %c0_i32_1 = arith.constant 0 : i32
    return %c0_i32, %c0_i32_0 : i32, i32
  }
  func.func @transform_8(%arg0: i32) -> (i32, i32) {
    %c0_i32 = arith.constant 0 : i32
    %c0_i32_0 = arith.constant 0 : i32
    %c0_i32_1 = arith.constant 0 : i32
    return %c0_i32, %c0_i32_0 : i32, i32
  }
  func.func @transform_9(%arg0: i32) -> (i32, i32) {
    %c0_i32 = arith.constant 0 : i32
    %c0_i32_0 = arith.constant 0 : i32
    %c0_i32_1 = arith.constant 0 : i32
    return %c0_i32, %c0_i32_0 : i32, i32
  }
  func.func @transform_10(%arg0: i32) -> (i32, i32) {
    %c0_i32 = arith.constant 0 : i32
    %c0_i32_0 = arith.constant 0 : i32
    %c0_i32_1 = arith.constant 0 : i32
    return %c0_i32, %c0_i32_0 : i32, i32
  }
  func.func @transform_11(%arg0: i32) -> (i32, i32) {
    %c0_i32 = arith.constant 0 : i32
    %c0_i32_0 = arith.constant 0 : i32
    %c0_i32_1 = arith.constant 0 : i32
    return %c0_i32, %c0_i32_0 : i32, i32
  }
  func.func @transform_12(%arg0: i32) -> (i32, i32) {
    %c0_i32 = arith.constant 0 : i32
    %c0_i32_0 = arith.constant 0 : i32
    %c0_i32_1 = arith.constant 0 : i32
    return %c0_i32, %c0_i32_0 : i32, i32
  }
  func.func @transform_13(%arg0: i32) -> (i32, i32) {
    %c0_i32 = arith.constant 0 : i32
    %c0_i32_0 = arith.constant 0 : i32
    %c0_i32_1 = arith.constant 0 : i32
    return %c0_i32, %c0_i32_0 : i32, i32
  }
  func.func @transform_14(%arg0: i32) -> (i32, i32) {
    %c0_i32 = arith.constant 0 : i32
    %c0_i32_0 = arith.constant 0 : i32
    %c0_i32_1 = arith.constant 0 : i32
    return %c0_i32, %c0_i32_0 : i32, i32
  }
  func.func @transform_15(%arg0: i32) -> (i32, i32) {
    %c0_i32 = arith.constant 0 : i32
    %c0_i32_0 = arith.constant 0 : i32
    %c0_i32_1 = arith.constant 0 : i32
    return %c0_i32, %c0_i32_0 : i32, i32
  }
  func.func @transform_16(%arg0: i32) -> (i32, i32) {
    %c0_i32 = arith.constant 0 : i32
    %c0_i32_0 = arith.constant 0 : i32
    %c0_i32_1 = arith.constant 0 : i32
    return %c0_i32, %c0_i32_0 : i32, i32
  }
  func.func @transform_17(%arg0: i32) -> (i32, i32) {
    %c0_i32 = arith.constant 0 : i32
    %c0_i32_0 = arith.constant 0 : i32
    %c0_i32_1 = arith.constant 0 : i32
    return %c0_i32, %c0_i32_0 : i32, i32
  }
  func.func @transform_18(%arg0: i32) -> (i32, i32) {
    %c0_i32 = arith.constant 0 : i32
    %c0_i32_0 = arith.constant 0 : i32
    %c0_i32_1 = arith.constant 0 : i32
    return %c0_i32, %c0_i32_0 : i32, i32
  }
  func.func @transform_19(%arg0: i32) -> (i32, i32) {
    %c0_i32 = arith.constant 0 : i32
    %c0_i32_0 = arith.constant 0 : i32
    %c0_i32_1 = arith.constant 0 : i32
    return %c0_i32, %c0_i32_0 : i32, i32
  }
  func.func @transform_20(%arg0: i32) -> (i32, i32) {
    %c0_i32 = arith.constant 0 : i32
    %c0_i32_0 = arith.constant 0 : i32
    %c0_i32_1 = arith.constant 0 : i32
    return %c0_i32, %c0_i32_0 : i32, i32
  }
  func.func @transform_21(%arg0: i32) -> (i32, i32) {
    %c0_i32 = arith.constant 0 : i32
    %c0_i32_0 = arith.constant 0 : i32
    %c0_i32_1 = arith.constant 0 : i32
    return %c0_i32, %c0_i32_0 : i32, i32
  }
  func.func @transform_22(%arg0: i32) -> (i32, i32) {
    %c0_i32 = arith.constant 0 : i32
    %c0_i32_0 = arith.constant 0 : i32
    %c0_i32_1 = arith.constant 0 : i32
    return %c0_i32, %c0_i32_0 : i32, i32
  }
  func.func @transform_23(%arg0: i32) -> (i32, i32) {
    %c0_i32 = arith.constant 0 : i32
    %c0_i32_0 = arith.constant 0 : i32
    %c0_i32_1 = arith.constant 0 : i32
    return %c0_i32, %c0_i32_0 : i32, i32
  }
  func.func @transform_24(%arg0: i32) -> (i32, i32) {
    %c0_i32 = arith.constant 0 : i32
    %c0_i32_0 = arith.constant 0 : i32
    %c0_i32_1 = arith.constant 0 : i32
    return %c0_i32, %c0_i32_0 : i32, i32
  }
  func.func @transform_25(%arg0: i32) -> (i32, i32, i32) {
    %c0_i32 = arith.constant 0 : i32
    %c0_i32_0 = arith.constant 0 : i32
    %c0_i32_1 = arith.constant 0 : i32
    return %arg0, %c0_i32, %c0_i32_0 : i32, i32, i32
  }
}

</mosaic_0001>

<bundles_post_ra>
// kernel: ghost_layer_v3_forward.1
= control target key start
LH: loop header
LB: loop body
LE: loop exit
PB: predicated region body
PF: predicated region fallthrough
CT: control target
= control target key end

     0   :  { %s2608_s29 = smov 0   ;;  %s3975_s0 = inlined_call_operand.vmem [shape: f32[2,8,256], index: 0, kind: input, shape index: {}]   ;;  %s3976_s1 = inlined_call_operand.vmem [shape: f32[32,8], index: 1, kind: input, shape index: {}]   ;;  %s3977_s2 = inlined_call_operand.vmem [shape: f32[32,1], index: 2, kind: input, shape index: {}]   ;;  %s3978_s3 = inlined_call_operand.vmem [shape: f32[16,9], index: 3, kind: input, shape index: {}]   ;;  %s3979_s4 = inlined_call_operand.vmem [shape: f32[16,1], index: 4, kind: input, shape index: {}]   ;;  %s3980_s5 = inlined_call_operand.vmem [shape: f32[16,1], index: 5, kind: input, shape index: {}]   ;;  %s3981_s6 = inlined_call_operand.vmem [shape: f32[16,1], index: 6, kind: input, shape index: {}]   ;;  %s3982_s7 = inlined_call_operand.vmem [shape: f32[16,3], index: 7, kind: input, shape index: {}]   ;;  %s3983_s8 = inlined_call_operand.vmem [shape: f32[16,1], index: 8, kind: input, shape index: {}]   ;;  %s3984_s9 = inlined_call_operand.vmem [shape: f32[16,3], index: 9, kind: input, shape index: {}]   ;;  %s3985_s10 = inlined_call_operand.vmem [shape: f32[16,1], index: 10, kind: input, shape index: {}]   ;;  %s3986_s11 = inlined_call_operand.vmem [shape: f32[16,4], index: 11, kind: input, shape index: {}]   ;;  %s3987_s12 = inlined_call_operand.vmem [shape: f32[1,4], index: 12, kind: input, shape index: {}]   ;;  %s3988_s13 = inlined_call_operand.vmem [shape: f32[16,4], index: 13, kind: input, shape index: {}]   ;;  %s3989_s14 = inlined_call_operand.vmem [shape: f32[16,1], index: 14, kind: input, shape index: {}]   ;;  %s3990_s15 = inlined_call_operand.vmem [shape: f32[8,16], index: 15, kind: input, shape index: {}]   ;;  %s3991_s16 = inlined_call_operand.vmem [shape: f32[8,1], index: 16, kind: input, shape index: {}]   ;;  %s3992_s17 = inlined_call_operand.vmem [shape: f32[8,9], index: 17, kind: input, shape index: {}]   ;;  %s3993_s18 = inlined_call_operand.vmem [shape: f32[8,1], index: 18, kind: input, shape index: {}]   ;;  %s3994_s19 = inlined_call_operand.vmem [shape: f32[8,1], index: 19, kind: input, shape index: {}]   ;;  %s3995_s20 = inlined_call_operand.vmem [shape: f32[8,1], index: 20, kind: input, shape index: {}]   ;;  %s3996_s21 = inlined_call_operand.vmem [shape: f32[8,9], index: 21, kind: input, shape index: {}]   ;;  %s3997_s22 = inlined_call_operand.vmem [shape: f32[8,1], index: 22, kind: input, shape index: {}]   ;;  %s3998_s23 = inlined_call_operand.vmem [shape: f32[8,8], index: 23, kind: input, shape index: {}]   ;;  %s3999_s24 = inlined_call_operand.vmem [shape: f32[8,1], index: 24, kind: input, shape index: {}]   ;;  %s4000_s25 = inlined_call_operand.vmem [shape: f32[2,8,256], index: 25, kind: output, shape index: {}]  }
   0x1   :  { %4093 = sst [smem:[#allocation32_spill]] %s3975_s0 }
   0x2   :  { %4094 = sst [smem:[#allocation33_spill]] %s3976_s1 }
   0x3   :  { %4095 = sst [smem:[#allocation34_spill]] %s3977_s2 }
   0x4   :  { %4096 = sst [smem:[#allocation35_spill]] %s3978_s3 }
   0x5   :  { %4097 = sst [smem:[#allocation36_spill]] %s3979_s4 }
   0x6   :  { %4098 = sst [smem:[#allocation37_spill]] %s3980_s5 }
   0x7   :  { %4099 = sst [smem:[#allocation38_spill]] %s3981_s6 }
   0x8   :  { %4100 = sst [smem:[#allocation39_spill]] %s3982_s7 }
   0x9   :  { %4101 = sst [smem:[#allocation40_spill]] %s3983_s8 }
   0xa   :  { %4102 = sst [smem:[#allocation41_spill]] %s3984_s9 }
   0xb   :  { %4103 = sst [smem:[#allocation42_spill]] %s3985_s10 }
   0xc LB: > { %4104 = sst [smem:[#allocation2_spill]] %s2454_s29  ;;  %s2290_s2 = sadd.s32 4294967295, %s2454_s29   ;;  %s2454_s29 = sphi %s2608_s29, %s35_s29  }
   0xd   : > { %p2294_p0 = scmp.ge.s32.totalorder %s2454_s29, 1  ;;  %p687_p1 = scmp.lt.s32.totalorder %s2454_s29, 3 }
   0xf   : > { %p688_p2 = pnand %p2294_p0, %p687_p1 }
  0x11   : > { %691 = sbr.rel (%p688_p2) target bundleno = 1706 (0x6aa), region = 120 }
  0x18   : > { %p755_p3 = scmp.lt.s32.totalorder %s2290_s2, 1  ;;  %v4048_v0 = vmov 0.0   ;;  %s4105_s7 = sld [smem:[#allocation34_spill]]  ;;  %v4020_v2 = vmov 0   ;;  %vm4062_vm0 = vcmask 64512   ;;  %v4034_v10 = vmov 2  }
  0x19   : > { %879 = vmatprep.mubr.f32.mxu0 %v4048_v0  ;;  %897 = vmatprep.mubr.f32.mxu1 %v4048_v0  ;;  %s4106_s8 = sld [smem:[#allocation32_spill]]  ;;  %s4107_s9 = sld [smem:[#allocation33_spill]]  ;;  %v4036_v27 = vmov 1   ;;  %v4038_v36 = vlaneseq }
  0x1a   : > { %s4268_s2 = smov (!%p755_p3, %s2290_s2), 1  ;;  %2375 = vset.pattern.permute.xlu0 %v4020_v2  ;;  %2376 = vset.pattern.permute.xlu1 %v4020_v2  ;;  %s4011_s28 = smov 127  }
  0x1b   : > { %s4010_s3 = sshll.u32 %s4268_s2, 4  ;;  %s4013_s5 = smov 1   ;;  %v2737_v38 = vand.u32 127, %v4038_v36 }
  0x1c   : > { %s4108_s30 = sld [smem:[#allocation39_spill]]  ;;  %s4110_s0 = sld [smem:[#allocation41_spill]] }
  0x1d   : > { %s4111_s10 = sld [smem:[#allocation42_spill]]  ;;  %s4112_s1 = sld [smem:[#allocation35_spill]]  ;;  %v2740_v40 = vadd.s32 128, %v2737_v38  ;;  %v2743_v41 = vand.u32 15, %v2737_v38  ;;  %vm4064_vm1 = vcmp.lt.s32.totalorder %v2737_v38, 127  ;;  %vm4065_vm2 = vcmp.lt.s32.totalorder %v2737_v38, 1 }
  0x1e   : > { %v780_v1 = vld [vmem:[%s4105_s7 + $0x10] sm:$0xff]  ;;  %v781_v7 = vld [vmem:[%s4105_s7 + $0x18] sm:$0xff]  ;;  %v779_v29 = vld [vmem:[%s4105_s7 + $0x8] sm:$0xff]  ;;  %s4018_s4 = smov 16   ;;  %s4115_s26 = smov 1   ;;  %vm4063_vm5 = vcmp.lt.s32.totalorder %v2737_v38, 112 }
  0x1f   : > { %794 = vperm.xlu0 %2375, %v780_v1   ;;  %s2631_s27 = scalar_lea.vmem %s4106_s8, %s4010_s3  ;;  %v774_v3 = vld [vmem:[%s4107_s9] sm:$0xff]  ;;  %v777_v6 = vld [vmem:[%s4107_s9 + $0x18] sm:$0xff]  ;;  %v775_v8 = vld [vmem:[%s4107_s9 + $0x8] sm:$0xff]  ;;  %s4109_s3 = sld [smem:[#allocation40_spill]]  ;;  %v2746_v44 = vand.u32 15, %v2740_v40  ;;  %v1362_v45 = vand.u32 1, %v2743_v41 }
  0x20   : > { %v773_v4 = vld [vmem:[%s2631_s27 + $0x8] sm:$0xff]  ;;  %v772_v5 = vld [vmem:[%s2631_s27] sm:$0xff]  ;;  %v776_v9 = vld [vmem:[%s4107_s9 + $0x10] sm:$0xff]  ;;  %s4058_s8 = smov 112   ;;  %s4016_s9 = smov 15   ;;  %vm981_vm6 = vcmp.lt.s32.totalorder %v2737_v38, 16 }
  0x21   : > { %815 = vmatprep.subr.mxu0 %v773_v4  ;;  %2343 = vmatprep.subr.mxu1 %v773_v4  ;;  %v778_v31 = vld [vmem:[%s4105_s7] sm:$0xff]  ;;  %v1363_v48 = vand.u32 1, %v2746_v44  ;;  %vm1364_vm3 = vcmp.eq.s32.totalorder %v1362_v45, 0  ;;  %s2469_s6 = smov 2   ;;  %vm1446_vm10 = vcmp.lt.s32.totalorder %v2737_v38, 2  ;;  %vm1505_vm14 = vcmp.lt.s32.totalorder %v2737_v38, 126 }
  0x22   : > { %816 = vmatpush1.msra.mxu0 %v772_v5  ;;  %2344 = vmatpush1.msra.mxu1 %v772_v5  ;;  %v1423_v25 = vld [vmem:[%s4108_s30 + $0x8] sm:$0xff]  ;;  %v1422_v26 = vld [vmem:[%s4108_s30] sm:$0xff]  ;;  %s4237_s29 = smov 16   ;;  %s4238_s7 = smov 15  }
  0x23   : > { %2299 = vmatmul.mubr.msk.f32.vlgmr.msra.gmra.mrb[0].mxu0 %vm4062_vm0, %v774_v3  ;;  %2302 = vmatmul.mubr.msk.f32.vlgmr.msra.gmra.mrb[0].mxu1 %vm4062_vm0, %v777_v6  ;;  %v1544_v32 = vld [vmem:[%s4110_s0] sm:$0xff]  ;;  %v2719_v33 = vld [vmem:[%s4110_s0 + $0x8] sm:$0xff]  ;;  %vm2756_vm4 = vcmp.eq.s32.totalorder %v1363_v48, 0  ;;  %s4130_s0 = sld [smem:[#allocation36_spill]] }
  0x24   : > { %885 = vmatprep.mubr.f32.mxu0 %v4048_v0  ;;  %799 = vperm.xlu0 %2375, %v781_v7   ;;  %v1547_v34 = vld [vmem:[%s4111_s10 + $0x8] sm:$0xff]  ;;  %v2732_v35 = vld [vmem:[%s4112_s1] sm:$0xff] }
  0x25   : > { %1839 = vmatprep.mubr.f32.mxu1 %v4048_v0  ;;  %v1424_v28 = vld [vmem:[%s4109_s3] sm:$0xff]  ;;  %v1425_v30 = vld [vmem:[%s4109_s3 + $0x8] sm:$0xff]  ;;  %s4131_s3 = sld [smem:[#allocation37_spill]] }
  0x27   : > { %2300 = vmatmul.mubr.msk.f32.gmra.mrb[2].mxu0 %vm4062_vm0, %v775_v8  ;;  %v2811_v8 = vld [vmem:[%s4112_s1 + $0x8] sm:$0xff] }
  0x28   : > { %891 = vmatprep.mubr.f32.mxu0 %v4048_v0  ;;  %2379 = vset.pattern.permute.xlu0 %v4034_v10 }
  0x2b   : > { %2301 = vmatmul.mubr.msk.f32.gmra.mrb[4].mxu0 %vm4062_vm0, %v776_v9 }
  0x9e   : > { %v795_v11 = vpop.permute.xlu0 %794 }
  0xa3   : > { %v800_v12 = vpop.permute.xlu0 %799 }
  0xf6   : > { %v899_v13 = vpop.f32.mrb[0].mxu1  ;;  %v2658_v14 = vpop.f32.mrb[0].mxu0 }
  0xf7   : > { %v2660_v15 = vadd.f32 %v899_v13, %v800_v12  ;;  %v901_v16 = vpop.f32.mrb[1].mxu1  ;;  %v2662_v17 = vpop.f32.mrb[1].mxu0 }
  0xf8   : > { %v2672_v21 = vadd.f32 %v901_v16, %v800_v12  ;;  %v4030_v12 = vmov 3  }
  0xf9   : > { %1340 = vrot.lane.b32.xlu1 %v2660_v15, %s4011_s28 }
  0xfa   : > { %v2666_v18 = vpop.f32.mrb[2].mxu0 }
  0xfb   : > { %v2668_v19 = vpop.f32.mrb[3].mxu0 }
  0xfd   : > { %1352 = vrot.lane.b32.xlu1 %v2660_v15, %s4013_s5 }
  0xfe   : > { %v893_v20 = vpop.f32.mrb[4].mxu0 }
  0xff   : > { %v2674_v22 = vadd.f32 %v893_v20, %v795_v11  ;;  %v895_v23 = vpop.f32.mrb[5].mxu0 }
 0x100   : > { %v2680_v24 = vadd.f32 %v895_v23, %v795_v11 }
 0x101   : > { %1344 = vrot.lane.b32.xlu1 %v2672_v21, %s4011_s28  ;;  %1350 = vrot.lane.b32.xlu0 %v2674_v22, %s4013_s5 }
 0x105   : > { %1342 = vrot.lane.b32.xlu0 %v2680_v24, %s4011_s28  ;;  %1338 = vrot.lane.b32.xlu1 %v2674_v22, %s4011_s28  ;;  %s2470_s28 = smov 126  }
 0x109   : > { %1354 = vrot.lane.b32.xlu0 %v2680_v24, %s4013_s5  ;;  %1356 = vrot.lane.b32.xlu1 %v2672_v21, %s4013_s5  ;;  %s4052_s5 = smov 17  }
 0x10d   : > { %1519 = vperm.xlu0 %2379, %v1423_v25   ;;  %1462 = vperm.xlu1 %2376, %v1423_v25  }
 0x111   : > { %2380 = vset.pattern.permute.xlu0 %v4020_v2  ;;  %2377 = vset.pattern.permute.xlu1 %v4036_v27 }
 0x112   : > { %1457 = vperm.xlu0 %2380, %v1422_v26   ;;  %1474 = vperm.xlu1 %2377, %v1423_v25  }
 0x116   : > { %1532 = vperm.xlu0 %2380, %v1424_v28   ;;  %2378 = vset.pattern.permute.xlu1 %v4034_v10 }
 0x117   : > { %1515 = vperm.xlu1 %2378, %v1422_v26  }
 0x11a   : > { %789 = vperm.xlu0 %2380, %v779_v29  }
 0x11b   : > { %2381 = vset.pattern.permute.xlu1 %v4020_v2 }
 0x11c   : > { %1537 = vperm.xlu1 %2381, %v1425_v30  }
 0x11e   : > { %2382 = vset.pattern.permute.xlu0 %v4036_v27 }
 0x11f   : > { %1470 = vperm.xlu0 %2382, %v1422_v26  }
 0x120   : > { %784 = vperm.xlu1 %2381, %v778_v31  }
 0x123   : > { %1596 = vperm.xlu0 %2382, %v2719_v33  }
 0x124   : > { %1579 = vperm.xlu1 %2381, %v1544_v32  }
 0x128   : > { %2383 = vset.pattern.permute.xlu1 %v4036_v27 }
 0x129   : > { %1592 = vperm.xlu1 %2383, %v1544_v32  }
 0x12d   : > { %2384 = vset.pattern.permute.xlu1 %v4034_v10 }
 0x12e   : > { %1637 = vperm.xlu1 %2384, %v1544_v32  }
 0x132   : > { %1641 = vperm.xlu1 %2384, %v2719_v33  }
 0x136   : > { %2385 = vset.pattern.permute.xlu1 %v4020_v2 }
 0x137   : > { %1659 = vperm.xlu1 %2385, %v1547_v34  }
 0x13b   : > { %949 = vperm.xlu1 %2385, %v2732_v35  }
 0x13f   : > { %2386 = vset.pattern.permute.xlu1 %v4036_v27 }
 0x16b   : > { %v1341_v37 = vpop.permute.xlu1 %1340 }
 0x16f   : > { %v1353_v39 = vpop.permute.xlu1 %1352 }
 0x173   : > { %v1345_v42 = vpop.permute.xlu1 %1344  ;;  %v1351_v43 = vpop.permute.xlu0 %1350 }
 0x174   : > { %v1347_v49 = vsel %vm4064_vm1, %v1341_v37, %v1345_v42  ;;  %v1349_v60 = vsel %vm4064_vm1, %v1345_v42, %v1341_v37  ;;  %v2896_v42 = vshra.s32 %v2737_v38, 4 }
 0x177   : > { %v1343_v46 = vpop.permute.xlu0 %1342  ;;  %v1339_v47 = vpop.permute.xlu1 %1338 }
 0x178   : > { %v1346_v50 = vsel %vm4064_vm1, %v1339_v47, %v1343_v46  ;;  %v1348_v61 = vsel %vm4064_vm1, %v1343_v46, %v1339_v47  ;;  %v1402_v47 = vand.u32 1, %v2896_v42 }
 0x17a   : > { %vm2906_vm8 = vcmp.eq.s32.totalorder %v1402_v47, 0 }
 0x17b   : > { %v1355_v51 = vpop.permute.xlu0 %1354  ;;  %v1357_v52 = vpop.permute.xlu1 %1356 }
 0x17c   : > { %v1358_v54 = vsel %vm4065_vm2, %v1351_v43, %v1355_v51  ;;  %v1360_v55 = vsel %vm4065_vm2, %v1355_v51, %v1351_v43  ;;  %v1359_v56 = vsel %vm4065_vm2, %v1353_v39, %v1357_v52  ;;  %v1361_v57 = vsel %vm4065_vm2, %v1357_v52, %v1353_v39 }
 0x17d   : > { %v1370_v58 = vsel %vm1364_vm3, %v1346_v50, %v1360_v55  ;;  %v1372_v59 = vsel %vm1364_vm3, %v1347_v49, %v1361_v57  ;;  %v1371_v1 = vsel %vm2756_vm4, %v1348_v61, %v1358_v54  ;;  %v1373_v3 = vsel %vm2756_vm4, %v1349_v60, %v1359_v56 }
 0x17e   : > { %v2773_v62 = vadd.f32 %v1370_v58, %v2674_v22  ;;  %v2776_v63 = vadd.f32 %v1372_v59, %v2660_v15  ;;  %v2787_v4 = vadd.f32 %v1371_v1, %v2680_v24  ;;  %v2790_v5 = vadd.f32 %v1373_v3, %v2672_v21 }
 0x17f   : > { %v2893_v39 = vshra.s32 %v2740_v40, 4 }
 0x180   : > { %1378 = vrot.lane.b32.xlu0 %v2773_v62, %s4058_s8  ;;  %1380 = vrot.lane.b32.xlu1 %v2776_v63, %s4058_s8 }
 0x181   : > { %v1403_v46 = vand.u32 1, %v2893_v39  ;;  %vm1056_vm1 = vcmp.lt.s32.totalorder %v2893_v39, 16 }
 0x183   : > { %vm2902_vm7 = vcmp.eq.s32.totalorder %v1403_v46, 0 }
 0x184   : > { %1382 = vrot.lane.b32.xlu0 %v2787_v4, %s4058_s8  ;;  %1384 = vrot.lane.b32.xlu1 %v2790_v5, %s4058_s8 }
 0x188   : > { %1390 = vrot.lane.b32.xlu0 %v2773_v62, %s4018_s4  ;;  %1392 = vrot.lane.b32.xlu1 %v2776_v63, %s4018_s4 }
 0x18c   : > { %1394 = vrot.lane.b32.xlu0 %v2787_v4, %s4018_s4  ;;  %1396 = vrot.lane.b32.xlu1 %v2790_v5, %s4018_s4  ;;  %v2804_v6 = vpop.permute.xlu0 %1519  ;;  %v2806_v7 = vpop.permute.xlu1 %1462 }
 0x190   : > { %995 = vperm.xlu0 %2382, %v2811_v8   ;;  %991 = vperm.xlu1 %2386, %v2732_v35  }
 0x191   : > { %v2815_v9 = vpop.permute.xlu0 %1457  ;;  %v2817_v11 = vpop.permute.xlu1 %1474 }
 0x194   : > { %2387 = vset.pattern.permute.xlu1 %v4034_v10  ;;  %2388 = vset.pattern.permute.xlu0 %v4030_v12  ;;  %v1486_v10 = vadd.s32 2, %v2746_v44 }
 0x195   : > { %v2821_v13 = vpop.permute.xlu0 %1532  ;;  %1038 = vperm.xlu1 %2387, %v2732_v35  }
 0x196   : > { %v2824_v15 = vpop.permute.xlu1 %1515  ;;  %vm1490_vm13 = vcmp.lt.s32.totalorder %v1486_v10, 16 }
 0x199   : > { %v790_v16 = vpop.permute.xlu0 %789  ;;  %1042 = vperm.xlu1 %2387, %v2811_v8  }
 0x19a   : > { %v2828_v20 = vadd.f32 %v2666_v18, %v790_v16  ;;  %v2836_v22 = vadd.f32 %v2668_v19, %v790_v16 }
 0x19b   : > { %v2830_v21 = vpop.permute.xlu1 %1537 }
 0x19d   : > { %932 = vrot.lane.b32.xlu1 %v2828_v20, %s4052_s5 }
 0x19e   : > { %2389 = vset.pattern.permute.xlu1 %v4030_v12  ;;  %v2884_v29 = vpop.permute.xlu0 %1470 }
 0x19f   : > { %v785_v23 = vpop.permute.xlu1 %784 }
 0x1a0   : > { %v2839_v24 = vadd.f32 %v2658_v14, %v785_v23  ;;  %v2846_v18 = vadd.f32 %v2662_v17, %v785_v23  ;;  %v4032_v14 = vmov 4   ;;  %v4026_v17 = vmov 5  }
 0x1a1   : > { %936 = vrot.lane.b32.xlu1 %v2836_v22, %s4052_s5 }
 0x1a2   : > { %930 = vrot.lane.b32.xlu0 %v2839_v24, %s4052_s5  ;;  %v2888_v31 = vpop.permute.xlu0 %1596 }
 0x1a3   : > { %v2876_v19 = vpop.permute.xlu1 %1579  ;;  %4121 = vst [vmem:[#allocation8_spill] sm:$0xff] %v2888_v31 }
 0x1a4   : > { %4116 = vst [vmem:[#allocation3_spill] sm:$0xff] %v2876_v19  ;;  %v2322_v19 = vsel %vm1490_vm13, 1.0, %v4048_v0 }
 0x1a5   : > { %975 = vrot.lane.b32.xlu1 %v2828_v20, %s4018_s4 }
 0x1a6   : > { %934 = vrot.lane.b32.xlu0 %v2846_v18, %s4052_s5  ;;  %s4132_s5 = sld [smem:[#allocation38_spill]] }
 0x1a8   : > { %v2878_v25 = vpop.permute.xlu1 %1592 }
 0x1a9   : > { %979 = vrot.lane.b32.xlu1 %v2836_v22, %s4018_s4  ;;  %4117 = vst [vmem:[#allocation4_spill] sm:$0xff] %v2878_v25 }
 0x1aa   : > { %973 = vrot.lane.b32.xlu0 %v2839_v24, %s4018_s4 }
 0x1ad   : > { %1089 = vperm.xlu1 %2389, %v2811_v8   ;;  %v2880_v26 = vpop.permute.xlu1 %1637 }
 0x1ae   : > { %977 = vrot.lane.b32.xlu0 %v2846_v18, %s4018_s4  ;;  %4118 = vst [vmem:[#allocation5_spill] sm:$0xff] %v2880_v26  ;;  %s2475_s4 = smov 32  }
 0x1b1   : > { %1020 = vrot.lane.b32.xlu1 %v2839_v24, %s4016_s9  ;;  %v2882_v28 = vpop.permute.xlu1 %1641 }
 0x1b2   : > { %1085 = vperm.xlu0 %2388, %v2732_v35   ;;  %2390 = vset.pattern.permute.xlu1 %v4032_v14  ;;  %4119 = vst [vmem:[#allocation6_spill] sm:$0xff] %v2882_v28 }
 0x1b5   : > { %1024 = vrot.lane.b32.xlu1 %v2846_v18, %s4016_s9 }
 0x1b6   : > { %1022 = vrot.lane.b32.xlu0 %v2828_v20, %s4016_s9  ;;  %v2886_v30 = vpop.permute.xlu1 %1659 }
 0x1b7   : > { %2391 = vset.pattern.permute.xlu0 %v4032_v14  ;;  %4120 = vst [vmem:[#allocation7_spill] sm:$0xff] %v2886_v30 }
 0x1b9   : > { %1101 = vperm.xlu1 %2390, %v2732_v35  }
 0x1ba   : > { %1026 = vrot.lane.b32.xlu0 %v2836_v22, %s4016_s9  ;;  %v2890_v32 = vpop.permute.xlu1 %949  ;;  %s4126_s9 = smov 127  }
 0x1bd   : > { %2393 = vset.pattern.permute.xlu1 %v4026_v17 }
 0x1be   : > { %1105 = vperm.xlu0 %2391, %v2811_v8  }
 0x1c2   : > { %1071 = vrot.lane.b32.xlu0 %v2846_v18, %s4115_s26 }
 0x1c3   : > { %2392 = vset.pattern.permute.xlu0 %v4026_v17  ;;  %v1485_v17 = vadd.s32 2, %v2743_v41 }
 0x1c5   : > { %vm1489_vm12 = vcmp.lt.s32.totalorder %v1485_v17, 16 }
 0x1f2   : > { %v1379_v34 = vpop.permute.xlu0 %1378  ;;  %v1381_v37 = vpop.permute.xlu1 %1380 }
 0x1f6   : > { %v1383_v43 = vpop.permute.xlu0 %1382  ;;  %v1385_v45 = vpop.permute.xlu1 %1384 }
 0x1f7   : > { %v1386_v51 = vsel %vm4063_vm5, %v1379_v34, %v1383_v43  ;;  %v1388_v52 = vsel %vm4063_vm5, %v1383_v43, %v1379_v34  ;;  %v1387_v53 = vsel %vm4063_vm5, %v1381_v37, %v1385_v45  ;;  %v1389_v54 = vsel %vm4063_vm5, %v1385_v45, %v1381_v37 }
 0x1f8   : > { %vm1054_vm5 = vcmp.ge.s32.totalorder %v2893_v39, 0 }
 0x1fa   : > { %v1391_v48 = vpop.permute.xlu0 %1390  ;;  %v1393_v49 = vpop.permute.xlu1 %1392 }
 0x1fe   : > { %v1395_v55 = vpop.permute.xlu0 %1394  ;;  %v1397_v56 = vpop.permute.xlu1 %1396 }
 0x1ff   : > { %v1398_v57 = vsel %vm981_vm6, %v1391_v48, %v1395_v55  ;;  %v1400_v58 = vsel %vm981_vm6, %v1395_v55, %v1391_v48  ;;  %v1399_v59 = vsel %vm981_vm6, %v1393_v49, %v1397_v56  ;;  %v1401_v60 = vsel %vm981_vm6, %v1397_v56, %v1393_v49 }
 0x200   : > { %v1411_v61 = vsel %vm2902_vm7, %v1388_v52, %v1398_v57  ;;  %v1412_v1 = vsel %vm2906_vm8, %v1387_v53, %v1401_v60  ;;  %v1410_v3 = vsel %vm2906_vm8, %v1386_v51, %v1400_v58  ;;  %v1413_v16 = vsel %vm2902_vm7, %v1389_v54, %v1399_v59 }
 0x201   : > { %v1415_v23 = vadd.f32 %v1411_v61, %v2787_v4  ;;  %v1416_v34 = vadd.f32 %v1412_v1, %v2776_v63  ;;  %v1414_v45 = vadd.f32 %v1410_v3, %v2773_v62  ;;  %v1417_v46 = vadd.f32 %v1413_v16, %v2790_v5  ;;  %v1546_v5 = vld [vmem:[%s4111_s10] sm:$0xff]  ;;  %s4234_s10 = smov 17  }
 0x202   : > { %v4028_v62 = vmov 6   ;;  %v4022_v63 = vmov 7   ;;  %v4024_v4 = vmov 8  }
 0x203   : > { %v2936_v37 = vmul.f32 0.25, %v1415_v23  ;;  %v2938_v43 = vmul.f32 0.25, %v1416_v34  ;;  %v2944_v47 = vmul.f32 0.25, %v1414_v45  ;;  %v2946_v48 = vmul.f32 0.25, %v1417_v46 }
 0x204   : > { %v1426_v34 = vadd.s32 4294967294, %v2743_v41  ;;  %v1427_v45 = vadd.s32 4294967294, %v2746_v44 }
 0x205   : > { %1442 = vrot.lane.b32.xlu0 %v2936_v37, %s2469_s6  ;;  %1440 = vrot.lane.b32.xlu1 %v2938_v43, %s2469_s6  ;;  %v1480_v10 = vmul.f32 %v2817_v11, %v2946_v48 }
 0x206   : > { %vm1428_vm9 = vcmp.ge.s32.totalorder %v1426_v34, 0  ;;  %vm1429_vm11 = vcmp.ge.s32.totalorder %v1427_v45, 0 }
 0x207   : > { %v2320_v12 = vsel %vm1429_vm11, 1.0, %v4048_v0 }
 0x209   : > { %1497 = vrot.lane.b32.xlu0 %v2944_v47, %s2470_s28  ;;  %1444 = vrot.lane.b32.xlu1 %v2946_v48, %s2469_s6 }
 0x20d   : > { %1501 = vrot.lane.b32.xlu0 %v2936_v37, %s2470_s28  ;;  %1499 = vrot.lane.b32.xlu1 %v2938_v43, %s2470_s28 }
 0x20f   : > { %v2988_v49 = vpop.permute.xlu1 %991  ;;  %v2996_v50 = vpop.permute.xlu0 %995 }
 0x211   : > { %1142 = vperm.xlu0 %2392, %v2732_v35   ;;  %1503 = vrot.lane.b32.xlu1 %v2946_v48, %s2470_s28  ;;  %s2476_s28 = smov 96  }
 0x214   : > { %v3003_v51 = vpop.permute.xlu0 %930 }
 0x215   : > { %2395 = vset.pattern.permute.xlu0 %v4028_v62  ;;  %1438 = vrot.lane.b32.xlu1 %v2944_v47, %s2469_s6  ;;  %s4050_s6 = smov 113  }
 0x216   : > { %1195 = vperm.xlu0 %2395, %v2811_v8  }
 0x219   : > { %1067 = vrot.lane.b32.xlu1 %v2839_v24, %s4115_s26 }
 0x21a   : > { %1128 = vrot.lane.b32.xlu0 %v2846_v18, %s4126_s9 }
 0x21b   : > { %2396 = vset.pattern.permute.xlu0 %v4022_v63 }
 0x21d   : > { %1069 = vrot.lane.b32.xlu1 %v2828_v20, %s4115_s26 }
 0x21e   : > { %1232 = vperm.xlu0 %2396, %v2732_v35  }
 0x221   : > { %1073 = vrot.lane.b32.xlu1 %v2836_v22, %s4115_s26 }
 0x222   : > { %1175 = vrot.lane.b32.xlu0 %v2828_v20, %s4050_s6 }
 0x223   : > { %2399 = vset.pattern.permute.xlu0 %v4024_v4 }
 0x225   : > { %1146 = vperm.xlu1 %2393, %v2811_v8  }
 0x226   : > { %1179 = vrot.lane.b32.xlu0 %v2836_v22, %s4050_s6 }
 0x229   : > { %2394 = vset.pattern.permute.xlu1 %v4028_v62 }
 0x22a   : > { %1277 = vperm.xlu0 %2399, %v2811_v8   ;;  %1191 = vperm.xlu1 %2394, %v2732_v35  }
 0x22e   : > { %2400 = vset.pattern.permute.xlu0 %v4020_v2  ;;  %1124 = vrot.lane.b32.xlu1 %v2839_v24, %s4126_s9 }
 0x22f   : > { %1584 = vperm.xlu0 %2400, %v2719_v33   ;;  %2397 = vset.pattern.permute.xlu1 %v4022_v63  ;;  %v2992_v33 = vpop.permute.xlu1 %1038  ;;  %v2319_v63 = vsel %vm1428_vm9, 1.0, %v4048_v0 }
 0x232   : > { %1126 = vrot.lane.b32.xlu1 %v2828_v20, %s4126_s9 }
 0x233   : > { %1654 = vperm.xlu0 %2400, %v1546_v5   ;;  %v3001_v40 = vpop.permute.xlu1 %1042 }
 0x236   : > { %1130 = vrot.lane.b32.xlu1 %v2836_v22, %s4126_s9 }
 0x237   : > { %954 = vperm.xlu0 %2400, %v2811_v8   ;;  %v3006_v52 = vpop.permute.xlu1 %932 }
 0x23a   : > { %1236 = vperm.xlu1 %2397, %v2811_v8   ;;  %v3010_v8 = vpop.permute.xlu0 %934 }
 0x23b   : > { %v3015_v53 = vpop.permute.xlu1 %936 }
 0x23e   : > { %1173 = vrot.lane.b32.xlu1 %v2839_v24, %s4050_s6  ;;  %v3017_v54 = vpop.permute.xlu0 %973 }
 0x23f   : > { %2398 = vset.pattern.permute.xlu1 %v4024_v4  ;;  %v3019_v55 = vpop.permute.xlu1 %975 }
 0x242   : > { %1177 = vrot.lane.b32.xlu1 %v2846_v18, %s4050_s6  ;;  %v3021_v56 = vpop.permute.xlu0 %977  ;;  %s2477_s6 = smov 111  }
 0x246   : > { %1273 = vperm.xlu1 %2398, %v2732_v35   ;;  %v3023_v35 = vpop.permute.xlu1 %979  ;;  %v3025_v57 = vpop.permute.xlu0 %1085 }
 0x247   : > { %4127 = vst [vmem:[#allocation9_spill] sm:$0xff] %v3025_v57 }
 0x24a   : > { %1214 = vrot.lane.b32.xlu1 %v2839_v24, %s4058_s8  ;;  %v3027_v58 = vpop.permute.xlu1 %1089  ;;  %v3029_v59 = vpop.permute.xlu0 %1022 }
 0x24b   : > { %2401 = vset.pattern.permute.xlu1 %v4020_v2  ;;  %4128 = vst [vmem:[#allocation10_spill] sm:$0xff] %v3027_v58  ;;  %v2321_v58 = vsel %vm1489_vm12, 1.0, %v4048_v0 }
 0x24e   : > { %1216 = vrot.lane.b32.xlu1 %v2828_v20, %s4058_s8  ;;  %v3031_v60 = vpop.permute.xlu1 %1020  ;;  %v3033_v61 = vpop.permute.xlu0 %1026 }
 0x252   : > { %v3035_v1 = vpop.permute.xlu1 %1024  ;;  %v3037_v3 = vpop.permute.xlu0 %1105 }
 0x253   : > { %4129 = vst [vmem:[#allocation11_spill] sm:$0xff] %v3037_v3 }
 0x256   : > { %v3039_v16 = vpop.permute.xlu1 %1101  ;;  %v3041_v23 = vpop.permute.xlu0 %1071 }
 0x277   : > { %v1443_v46 = vpop.permute.xlu0 %1442  ;;  %v1441_v5 = vpop.permute.xlu1 %1440 }
 0x27b   : > { %v1445_v2 = vpop.permute.xlu1 %1444  ;;  %v1498_v62 = vpop.permute.xlu0 %1497 }
 0x27c   : > { %v1450_v4 = vsel %vm1446_vm10, %v1445_v2, %v1441_v5  ;;  %v1448_v14 = vsel %vm1446_vm10, %v1441_v5, %v1445_v2 }
 0x27d   : > { %v1453_v34 = vmul.f32 %v2319_v63, %v1450_v4  ;;  %v1454_v36 = vmul.f32 %v2320_v12, %v1448_v14  ;;  %v1479_v4 = vmul.f32 %v2817_v11, %v2938_v43  ;;  %v1478_v11 = vmul.f32 %v2884_v29, %v2936_v37 }
 0x27f   : > { %v1500_v27 = vpop.permute.xlu1 %1499  ;;  %v1467_v45 = vmul.f32 %v2806_v7, %v1453_v34  ;;  %v1502_v26 = vpop.permute.xlu0 %1501  ;;  %v1468_v25 = vmul.f32 %v2806_v7, %v1454_v36 }
 0x280   : > { %v1506_v34 = vsel %vm1505_vm14, %v1498_v62, %v1502_v26  ;;  %v1508_v3 = vsel %vm1505_vm14, %v1502_v26, %v1498_v62  ;;  %v1477_v26 = vmul.f32 %v2884_v29, %v2944_v47  ;;  %v1318_v47 = vld [vmem:[%s4132_s5] sm:$0xff] }
 0x281   : > { %v1483_v28 = vadd.f32 %v1479_v4, %v1467_v45  ;;  %v1484_v7 = vadd.f32 %v1480_v10, %v1468_v25  ;;  %v1510_v43 = vmul.f32 %v2321_v58, %v1506_v34  ;;  %v1511_v48 = vmul.f32 %v2322_v19, %v1508_v3  ;;  %v1319_v3 = vld [vmem:[%s4132_s5 + $0x8] sm:$0xff] }
 0x283   : > { %v1504_v30 = vpop.permute.xlu1 %1503 }
 0x284   : > { %v1507_v2 = vsel %vm1505_vm14, %v1500_v27, %v1504_v30  ;;  %v1509_v5 = vsel %vm1505_vm14, %v1504_v30, %v1500_v27  ;;  %vm1053_vm14 = vcmp.ge.s32.totalorder %v2896_v42, 0 }
 0x285   : > { %v1512_v14 = vmul.f32 %v2321_v58, %v1507_v2  ;;  %v1513_v17 = vmul.f32 %v2322_v19, %v1509_v5  ;;  %v1522_v58 = vmul.f32 %v2824_v15, %v1510_v43 }
 0x287   : > { %v1524_v31 = vmul.f32 %v2804_v6, %v1512_v14  ;;  %v1525_v57 = vmul.f32 %v2804_v6, %v1513_v17  ;;  %v1439_v36 = vpop.permute.xlu1 %1438 }
 0x288   : > { %v1447_v27 = vsel %vm1446_vm10, %v1439_v36, %v1443_v46  ;;  %v1449_v30 = vsel %vm1446_vm10, %v1443_v46, %v1439_v36 }
 0x289   : > { %v1528_v2 = vadd.f32 %v1524_v31, %v1483_v28  ;;  %v1451_v5 = vmul.f32 %v2319_v63, %v1449_v30  ;;  %v1452_v0 = vmul.f32 %v2320_v12, %v1447_v27  ;;  %v1529_v6 = vadd.f32 %v1525_v57, %v1484_v7  ;;  %v1303_v57 = vld [vmem:[%s4131_s3 + $0x8] sm:$0xff] }
 0x28a   : > { %v1523_v31 = vmul.f32 %v2824_v15, %v1511_v48  ;;  %v1302_v15 = vld [vmem:[%s4131_s3] sm:$0xff]  ;;  %v909_v48 = vadd.s32 4294967295, %v2893_v39 }
 0x28b   : > { %v1465_v25 = vmul.f32 %v2815_v9, %v1451_v5  ;;  %v1466_v62 = vmul.f32 %v2815_v9, %v1452_v0  ;;  %v3076_v45 = vadd.f32 %v2830_v21, %v1528_v2  ;;  %v3082_v29 = vadd.f32 %v2830_v21, %v1529_v6  ;;  %v906_v21 = vld [vmem:[%s4130_s0] sm:$0xff]  ;;  %v3121_v63 = vpop.permute.xlu1 %1067 }
 0x28c   : > { %vm911_vm4 = vcmp.ge.s32.totalorder %v909_v48, 0  ;;  %vm913_vm7 = vcmp.lt.s32.totalorder %v909_v48, 16 }
 0x28d   : > { %1562 = vrot.lane.b32.xlu1 %v3076_v45, %s2475_s4  ;;  %v1481_v12 = vadd.f32 %v1477_v26, %v1465_v25  ;;  %v1482_v28 = vadd.f32 %v1478_v11, %v1466_v62  ;;  %v908_v26 = vadd.s32 4294967295, %v2896_v42  ;;  %v3164_v62 = vadd.s32 4294967295, %v2743_v41  ;;  %vm3184_vm10 = vmand %vm911_vm4, %vm913_vm7 }
 0x28e   : > { %vm4084_vm7 = vcmp.lt.s32.totalorder %v2737_v38, 17 }
 0x28f   : > { %v1526_v19 = vadd.f32 %v1522_v58, %v1481_v12  ;;  %v1527_v9 = vadd.f32 %v1523_v31, %v1482_v28  ;;  %v3129_v46 = vpop.permute.xlu1 %1069  ;;  %vm910_vm15 = vcmp.ge.s32.totalorder %v908_v26, 0  ;;  %vm912_vm3 = vcmp.lt.s32.totalorder %v908_v26, 16 }
 0x290   : > { %v3137_v10 = vpop.permute.xlu0 %1142  ;;  %v3167_v58 = vadd.s32 4294967295, %v2746_v44  ;;  %v3170_v12 = vadd.s32 1, %v2743_v41  ;;  %vm3172_vm8 = vmand %vm910_vm15, %vm912_vm3  ;;  %vm918_vm9 = vcmp.ge.s32.totalorder %v3164_v62, 0  ;;  %v3178_v31 = vadd.s32 1, %v2746_v44 }
 0x291   : > { %1566 = vrot.lane.b32.xlu1 %v3082_v29, %s2475_s4  ;;  %v3086_v0 = vadd.f32 %v2821_v13, %v1526_v19  ;;  %v3091_v37 = vadd.f32 %v2821_v13, %v1527_v9  ;;  %v907_v13 = vld [vmem:[%s4130_s0 + $0x8] sm:$0xff]  ;;  %4135 = vst [vmem:[#allocation14_spill] sm:$0xff] %v3137_v10  ;;  %vm3194_vm13 = vmand %vm3172_vm8, %vm918_vm9  ;;  %vm1055_vm15 = vcmp.lt.s32.totalorder %v2896_v42, 16  ;;  %v982_v28 = vsel %vm981_vm6, %v3017_v54, %v3021_v56 }
 0x292   : > { %vm919_vm11 = vcmp.ge.s32.totalorder %v3167_v58, 0  ;;  %vm4075_vm12 = vcmp.lt.s32.totalorder %v3170_v12, 16  ;;  %vm4073_vm4 = vcmp.lt.s32.totalorder %v3178_v31, 16  ;;  %vm3230_vm2 = vmand %vm1053_vm14, %vm1055_vm15  ;;  %v1548_v44 = vadd.s32 4294967294, %v2896_v42 }
 0x293   : > { %1560 = vrot.lane.b32.xlu0 %v3086_v0, %s2475_s4  ;;  %v3131_v4 = vpop.permute.xlu1 %1073  ;;  %vm3204_vm3 = vmand %vm3184_vm10, %vm919_vm11  ;;  %v1109_v58 = vmul.f32 %v3039_v16, %v2846_v18 }
 0x294   : > { %vm3214_vm0 = vmand %vm3172_vm8, %vm4075_vm12 }
 0x295   : > { %1621 = vrot.lane.b32.xlu1 %v3076_v45, %s2476_s28  ;;  %v3141_v36 = vpop.permute.xlu0 %1195 }
 0x296   : > { %4136 = vst [vmem:[#allocation15_spill] sm:$0xff] %v3141_v36 }
 0x297   : > { %1564 = vrot.lane.b32.xlu0 %v3091_v37, %s2475_s4  ;;  %s4245_s4 = smov 112  }
 0x299   : > { %1625 = vrot.lane.b32.xlu1 %v3082_v29, %s2476_s28  ;;  %v3145_v27 = vpop.permute.xlu0 %1128 }
 0x29b   : > { %1619 = vrot.lane.b32.xlu0 %v3086_v0, %s2476_s28 }
 0x29d   : > { %1220 = vrot.lane.b32.xlu1 %v2836_v22, %s4058_s8  ;;  %v3149_v43 = vpop.permute.xlu0 %1232 }
 0x29e   : > { %4139 = vst [vmem:[#allocation18_spill] sm:$0xff] %v3149_v43  ;;  %v1158_v43 = vadd.s32 1, %v2893_v39 }
 0x29f   : > { %1623 = vrot.lane.b32.xlu0 %v3091_v37, %s2476_s28 }
 0x2a1   : > { %1257 = vrot.lane.b32.xlu1 %v2828_v20, %s2477_s6  ;;  %v3153_v5 = vpop.permute.xlu0 %1175 }
 0x2a2   : > { %4141 = vst [vmem:[#allocation20_spill] sm:$0xff] %v3153_v5 }
 0x2a3   : > { %1218 = vrot.lane.b32.xlu0 %v2846_v18, %s4058_s8 }
 0x2a4   : > { %v3133_v14 = vpop.permute.xlu1 %1146 }
 0x2a5   : > { %1261 = vrot.lane.b32.xlu1 %v2836_v22, %s2477_s6  ;;  %4133 = vst [vmem:[#allocation12_spill] sm:$0xff] %v3133_v14  ;;  %v3159_v6 = vpop.permute.xlu0 %1179 }
 0x2a6   : > { %4143 = vst [vmem:[#allocation22_spill] sm:$0xff] %v3159_v6 }
 0x2a7   : > { %1255 = vrot.lane.b32.xlu0 %v2839_v24, %s2477_s6 }
 0x2a9   : > { %1295 = vperm.xlu1 %2401, %v907_v13   ;;  %v3135_v17 = vpop.permute.xlu1 %1191  ;;  %v3180_v19 = vpop.permute.xlu0 %1277 }
 0x2aa   : > { %4134 = vst [vmem:[#allocation13_spill] sm:$0xff] %v3135_v17  ;;  %4147 = vst [vmem:[#allocation24_spill] sm:$0xff] %v3180_v19 }
 0x2ab   : > { %1259 = vrot.lane.b32.xlu0 %v2846_v18, %s2477_s6 }
 0x2ad   : > { %1306 = vperm.xlu1 %2401, %v1302_v15   ;;  %v3139_v34 = vpop.permute.xlu1 %1124 }
 0x2ae   : > { %v3234_v48 = vpop.permute.xlu0 %1584 }
 0x2af   : > { %1290 = vperm.xlu0 %2400, %v906_v21   ;;  %v1157_v21 = vadd.s32 1, %v2896_v42 }
 0x2b1   : > { %1322 = vperm.xlu1 %2401, %v1318_v47   ;;  %v3143_v7 = vpop.permute.xlu1 %1126  ;;  %v4157_v47 = vmov 0.0   ;;  %vm1159_vm14 = vcmp.ge.s32.totalorder %v1157_v21, 0  ;;  %vm1161_vm15 = vcmp.lt.s32.totalorder %v1157_v21, 16 }
 0x2b2   : > { %4137 = vst [vmem:[#allocation16_spill] sm:$0xff] %v3143_v7  ;;  %v3259_v36 = vsel %vm3194_vm13, 1.0, %v4157_v47  ;;  %v3264_v14 = vsel %vm3204_vm3, 1.0, %v4157_v47  ;;  %vm1059_vm13 = vmand %vm3230_vm2, %vm918_vm9  ;;  %vm1160_vm3 = vcmp.ge.s32.totalorder %v1158_v43, 0 }
 0x2b3   : > { %1311 = vperm.xlu0 %2400, %v1303_v57   ;;  %v3224_v57 = vsel %vm3172_vm8, 1.0, %v4157_v47  ;;  %vm3251_vm8 = vmand %vm3184_vm10, %vm4073_vm4  ;;  %4163 = vst [vmem:[#allocation27_spill] sm:$0xff] %v3259_v36  ;;  %vm1162_vm4 = vcmp.lt.s32.totalorder %v1158_v43, 16 }
 0x2b4   : > { %4164 = vst [vmem:[#allocation28_spill] sm:$0xff] %v3264_v14  ;;  %vm3314_vm12 = vmand %vm1159_vm14, %vm1161_vm15 }
 0x2b5   : > { %v3147_v30 = vpop.permute.xlu1 %1130 }
 0x2b6   : > { %4138 = vst [vmem:[#allocation17_spill] sm:$0xff] %v3147_v30  ;;  %v3318_v30 = vpop.permute.xlu0 %1654 }
 0x2b7   : > { %1327 = vperm.xlu0 %2400, %v1319_v3   ;;  %v984_v3 = vsel %vm981_vm6, %v3021_v56, %v3017_v54  ;;  %v939_v54 = vsel %vm4084_vm7, %v3003_v51, %v3010_v8  ;;  %v941_v56 = vsel %vm4084_vm7, %v3010_v8, %v3003_v51  ;;  %v1549_v8 = vadd.s32 4294967294, %v2893_v39 }
 0x2b8   : > { %v986_v41 = vmul.f32 %v3224_v57, %v984_v3  ;;  %v943_v17 = vmul.f32 %v3259_v36, %v941_v56  ;;  %v944_v21 = vmul.f32 %v3264_v14, %v939_v54  ;;  %v3309_v56 = vsel %vm3251_vm8, 1.0, %v4157_v47 }
 0x2b9   : > { %v3151_v2 = vpop.permute.xlu1 %1236  ;;  %4170 = vst [vmem:[#allocation30_spill] sm:$0xff] %v3309_v56  ;;  %vm1552_vm8 = vcmp.lt.s32.totalorder %v1548_v44, 16  ;;  %vm1551_vm14 = vcmp.ge.s32.totalorder %v1549_v8, 0  ;;  %vm1553_vm15 = vcmp.lt.s32.totalorder %v1549_v8, 16 }
 0x2ba   : > { %4140 = vst [vmem:[#allocation19_spill] sm:$0xff] %v3151_v2  ;;  %v3241_v2 = vsel %vm3184_vm10, 1.0, %v4157_v47  ;;  %vm3278_vm10 = vmand %vm1054_vm5, %vm1056_vm1  ;;  %vm1028_vm1 = vcmp.lt.s32.totalorder %v2737_v38, 15  ;;  %v998_v15 = vmul.f32 %v2988_v49, %v986_v41  ;;  %v957_v41 = vmul.f32 %v2890_v32, %v943_v17  ;;  %v3386_v6 = vpop.permute.xlu0 %954 }
 0x2bb   : > { %v987_v51 = vmul.f32 %v3241_v2, %v982_v28  ;;  %vm3296_vm5 = vmand %vm3278_vm10, %vm919_vm11  ;;  %v3304_v28 = vsel %vm3214_vm0, 1.0, %v4157_v47  ;;  %vm1550_vm0 = vcmp.ge.s32.totalorder %v1548_v44, 0  ;;  %v958_v17 = vmul.f32 %v2890_v32, %v944_v21 }
 0x2bc   : > { %4169 = vst [vmem:[#allocation29_spill] sm:$0xff] %v3304_v28  ;;  %v1002_v32 = vadd.f32 %v998_v15, %v957_v41  ;;  %v1032_v8 = vsel %vm1028_vm1, %v3033_v61, %v3029_v59  ;;  %v1030_v13 = vsel %vm1028_vm1, %v3029_v59, %v3033_v61 }
 0x2bd   : > { %v3155_v11 = vpop.permute.xlu1 %1173 }
 0x2be   : > { %4142 = vst [vmem:[#allocation21_spill] sm:$0xff] %v3155_v11  ;;  %v999_v11 = vmul.f32 %v2988_v49, %v987_v51  ;;  %v1031_v49 = vsel %vm1028_vm1, %v3035_v1, %v3031_v60  ;;  %v1607_v51 = vadd.s32 2, %v2896_v42 }
 0x2bf   : > { %v1033_v44 = vmul.f32 %v3304_v28, %v1031_v49 }
 0x2c1   : > { %v3161_v25 = vpop.permute.xlu1 %1177 }
 0x2c2   : > { %4144 = vst [vmem:[#allocation23_spill] sm:$0xff] %v3161_v25  ;;  %v942_v25 = vsel %vm4084_vm7, %v3015_v53, %v3006_v52 }
 0x2c3   : > { %v3376_v3 = vmul.f32 %v3259_v36, %v942_v25 }
 0x2c5   : > { %v3182_v9 = vpop.permute.xlu1 %1273 }
 0x2c6   : > { %4148 = vst [vmem:[#allocation25_spill] sm:$0xff] %v3182_v9  ;;  %v940_v9 = vsel %vm4084_vm7, %v3006_v52, %v3015_v53  ;;  %v3349_v52 = vsel %vm3296_vm5, 1.0, %v4157_v47  ;;  %vm3370_vm5 = vmand %vm1550_vm0, %vm1552_vm8  ;;  %vm1609_vm8 = vcmp.ge.s32.totalorder %v1607_v51, 0  ;;  %v1045_v53 = vmul.f32 %v2992_v33, %v1033_v44 }
 0x2c7   : > { %v3379_v21 = vmul.f32 %v3264_v14, %v940_v9 }
 0x2c8   : > { %v1049_v61 = vadd.f32 %v1045_v53, %v1002_v32 }
 0x2c9   : > { %v3236_v19 = vpop.permute.xlu1 %1214 }
 0x2ca   : > { %4160 = vst [vmem:[#allocation26_spill] sm:$0xff] %v3236_v19  ;;  %v3312_v19 = vsel %vm1059_vm13, 1.0, %v4157_v47  ;;  %vm3333_vm13 = vmand %vm1160_vm3, %vm1162_vm4  ;;  %vm1568_vm3 = vcmp.lt.s32.totalorder %v2737_v38, 32 }
 0x2cb   : > { %vm3355_vm4 = vmand %vm3314_vm12, %vm918_vm9 }
 0x2cc   : > { %vm1555_vm9 = vmand %vm1551_vm14, %vm1553_vm15  ;;  %vm1611_vm14 = vcmp.lt.s32.totalorder %v1607_v51, 16  ;;  %vm4182_vm15 = vcmp.lt.s32.totalorder %v3170_v12, 16  ;;  %v3473_v51 = vmul.f32 %v3039_v16, %v2839_v24  ;;  %v1036_v24 = vmul.f32 %v3309_v56, %v1030_v13  ;;  %v4193_v13 = vld [vmem:[#allocation8_spill] sm:$0xff] }
 0x2cd   : > { %v3320_v54 = vpop.permute.xlu1 %1216  ;;  %vm3404_vm0 = vmand %vm3333_vm13, %vm919_vm11  ;;  %v2324_v15 = vsel %vm1555_vm9, 1.0, %v4157_v47  ;;  %vm4185_vm9 = vcmp.lt.s32.totalorder %v2737_v38, 1 }
 0x2ce   : > { %4173 = vst [vmem:[#allocation31_spill] sm:$0xff] %v3320_v54  ;;  %v1029_v54 = vsel %vm1028_vm1, %v3031_v60, %v3035_v1  ;;  %v983_v60 = vsel %vm981_vm6, %v3019_v55, %v3023_v35  ;;  %v985_v1 = vsel %vm981_vm6, %v3023_v35, %v3019_v55  ;;  %v1608_v55 = vadd.s32 2, %v2893_v39 }
 0x2cf   : > { %v1003_v35 = vadd.f32 %v999_v11, %v958_v17  ;;  %v1034_v5 = vmul.f32 %v3309_v56, %v1029_v54  ;;  %v988_v42 = vmul.f32 %v3224_v57, %v985_v1  ;;  %v989_v25 = vmul.f32 %v3241_v2, %v983_v60 }
 0x2d0   : > { %v3398_v39 = vsel %vm3355_vm4, 1.0, %v4157_v47  ;;  %v2323_v54 = vsel %vm3370_vm5, 1.0, %v4157_v47  ;;  %vm3416_vm4 = vmand %vm3230_vm2, %vm4182_vm15  ;;  %vm1610_vm11 = vcmp.ge.s32.totalorder %v1608_v55, 0  ;;  %vm1612_vm5 = vcmp.lt.s32.totalorder %v1608_v55, 16 }
 0x2d1   : > { %v1046_v17 = vmul.f32 %v2992_v33, %v1034_v5  ;;  %v1076_v26 = vsel %vm4185_vm9, %v3121_v63, %v3041_v23  ;;  %vm4186_vm2 = vmmov %vm4185_vm9  ;;  %vm4187_vm15 = vcmp.lt.s32.totalorder %v3178_v31, 16  ;;  %v1035_v33 = vmul.f32 %v3304_v28, %v1032_v8 }
 0x2d2   : > { %v1078_v60 = vsel %vm4186_vm2, %v3041_v23, %v3121_v63  ;;  %vm3438_vm7 = vmand %vm3278_vm10, %vm4187_vm15  ;;  %v3446_v5 = vsel %vm3404_vm0, 1.0, %v4157_v47  ;;  %v3449_v62 = vmul.f32 %v2996_v50, %v988_v42  ;;  %v3452_v23 = vmul.f32 %v2996_v50, %v989_v25 }
 0x2d3   : > { %vm3456_vm10 = vmand %vm1609_vm8, %vm1611_vm14  ;;  %v3467_v44 = vsel %vm3416_vm4, 1.0, %v4157_v47  ;;  %v1080_v25 = vmul.f32 %v3312_v19, %v1078_v60  ;;  %v1081_v11 = vmul.f32 %v3349_v52, %v1076_v26  ;;  %v3480_v59 = vsel %vm3438_vm7, 1.0, %v4157_v47 }
 0x2d4   : > { %vm1614_vm0 = vmand %vm1610_vm11, %vm1612_vm5  ;;  %vm1627_vm8 = vcmp.lt.s32.totalorder %v2737_v38, 96  ;;  %vm1181_vm14 = vcmp.lt.s32.totalorder %v2737_v38, 113  ;;  %vm4201_vm4 = vcmp.lt.s32.totalorder %v2737_v38, 127  ;;  %vm4203_vm11 = vcmp.lt.s32.totalorder %v3170_v12, 16  ;;  %v4208_v12 = vld [vmem:[#allocation10_spill] sm:$0xff] }
 0x2d5   : > { %v2326_v26 = vsel %vm1614_vm0, 1.0, %v4157_v47  ;;  %vm4196_vm7 = vmmov %vm4186_vm2  ;;  %vm4219_vm0 = vcmp.lt.s32.totalorder %v2737_v38, 112 }
 0x2d6   : > { %vm3570_vm5 = vmand %vm3314_vm12, %vm4203_vm11  ;;  %vm1771_vm11 = vcmask 130048  }
 0x2d7   : > { %vm4206_vm9 = vmmov %vm4201_vm4 }
 0x2ff   : > { %v1563_v43 = vpop.permute.xlu1 %1562 }
 0x303   : > { %v1567_v9 = vpop.permute.xlu1 %1566 }
 0x304   : > { %v1570_v41 = vsel %vm1568_vm3, %v1563_v43, %v1567_v9  ;;  %v1572_v49 = vsel %vm1568_vm3, %v1567_v9, %v1563_v43  ;;  %v1050_v9 = vadd.f32 %v1046_v17, %v1003_v35  ;;  %v4192_v17 = vld [vmem:[#allocation9_spill] sm:$0xff] }
 0x305   : > { %v1561_v43 = vpop.permute.xlu0 %1560  ;;  %v1575_v42 = vmul.f32 %v2323_v54, %v1572_v49  ;;  %v1576_v8 = vmul.f32 %v2324_v15, %v1570_v41  ;;  %v3487_v41 = vmul.f32 %v3001_v40, %v1035_v33  ;;  %v2325_v49 = vsel %vm3456_vm10, 1.0, %v4157_v47  ;;  %vm4217_vm10 = vmmov %vm4201_vm4 }
 0x306   : > { %v1092_v60 = vmul.f32 %v4192_v17, %v1080_v25  ;;  %v1093_v1 = vmul.f32 %v4192_v17, %v1081_v11  ;;  %v4194_v25 = vld [vmem:[#allocation11_spill] sm:$0xff] }
 0x307   : > { %v1622_v50 = vpop.permute.xlu1 %1621  ;;  %v1589_v32 = vmul.f32 %v3234_v48, %v1575_v42  ;;  %v1590_v35 = vmul.f32 %v3234_v48, %v1576_v8  ;;  %v1601_v48 = vmul.f32 %v4193_v13, %v3076_v45  ;;  %v1602_v42 = vmul.f32 %v4193_v13, %v3082_v29 }
 0x308   : > { %v3512_v11 = vmul.f32 %v4194_v25, %v2828_v20  ;;  %v3518_v29 = vmul.f32 %v4194_v25, %v2836_v22  ;;  %v1077_v20 = vsel %vm4196_vm7, %v3129_v46, %v3131_v4  ;;  %vm4222_vm7 = vmmov %vm4219_vm0 }
 0x309   : > { %v1565_v55 = vpop.permute.xlu0 %1564  ;;  %v1605_v14 = vadd.f32 %v1601_v48, %v1589_v32  ;;  %v1606_v36 = vadd.f32 %v1602_v42, %v1590_v35  ;;  %v1083_v13 = vmul.f32 %v3349_v52, %v1077_v20 }
 0x30a   : > { %v1569_v18 = vsel %vm1568_vm3, %v1561_v43, %v1565_v55  ;;  %v1571_v16 = vsel %vm1568_vm3, %v1565_v55, %v1561_v43  ;;  %v1048_v55 = vmul.f32 %v3001_v40, %v1036_v24  ;;  %vm4197_vm3 = vmmov %vm4186_vm2 }
 0x30b   : > { %v1626_v53 = vpop.permute.xlu1 %1625  ;;  %v1573_v17 = vmul.f32 %v2323_v54, %v1571_v16  ;;  %v1574_v28 = vmul.f32 %v2324_v15, %v1569_v18  ;;  %v1079_v40 = vsel %vm4197_vm3, %v3131_v4, %v3129_v46  ;;  %v4199_v46 = vld [vmem:[#allocation4_spill] sm:$0xff]  ;;  %vm4207_vm2 = vmmov %vm4187_vm15  ;;  %v1095_v7 = vmul.f32 %v4208_v12, %v1083_v13 }
 0x30c   : > { %v1629_v33 = vsel %vm1627_vm8, %v1622_v50, %v1626_v53  ;;  %v1631_v63 = vsel %vm1627_vm8, %v1626_v53, %v1622_v50  ;;  %v4195_v50 = vld [vmem:[#allocation6_spill] sm:$0xff]  ;;  %v1599_v4 = vmul.f32 %v4199_v46, %v3086_v0  ;;  %v1600_v18 = vmul.f32 %v4199_v46, %v3091_v37  ;;  %vm1250_vm15 = vmand %vm3333_vm13, %vm4207_vm2  ;;  %v4213_v46 = vld [vmem:[#allocation21_spill] sm:$0xff] }
 0x30d   : > { %v1634_v8 = vmul.f32 %v2325_v49, %v1629_v33  ;;  %v1635_v56 = vmul.f32 %v2326_v26, %v1631_v63  ;;  %v1620_v43 = vpop.permute.xlu0 %1619  ;;  %v1096_v33 = vadd.f32 %v1092_v60, %v1049_v61  ;;  %v1097_v63 = vadd.f32 %v1093_v1, %v1050_v9  ;;  %v4198_v61 = vld [vmem:[#allocation3_spill] sm:$0xff]  ;;  %vm4223_vm3 = vmmov %vm4219_vm0 }
 0x30e   : > { %v1587_v9 = vmul.f32 %v4198_v61, %v1573_v17  ;;  %v1588_v24 = vmul.f32 %v4198_v61, %v1574_v28  ;;  %v1082_v28 = vmul.f32 %v3312_v19, %v1079_v40  ;;  %v1133_v0 = vsel %vm4201_vm4, %v3139_v34, %v3145_v27  ;;  %v4210_v61 = vld [vmem:[#allocation20_spill] sm:$0xff] }
 0x30f   : > { %v1646_v53 = vmul.f32 %v4195_v50, %v1634_v8  ;;  %v1647_v45 = vmul.f32 %v4195_v50, %v1635_v56  ;;  %v959_v56 = vmul.f32 %v3386_v6, %v3376_v3  ;;  %v4200_v3 = vld [vmem:[#allocation7_spill] sm:$0xff]  ;;  %v1221_v8 = vpop.permute.xlu1 %1220  ;;  %v1113_v17 = vadd.f32 %v1109_v58, %v1097_v63 }
 0x310   : > { %v1603_v48 = vadd.f32 %v1599_v4, %v1587_v9  ;;  %v1604_v42 = vadd.f32 %v1600_v18, %v1588_v24  ;;  %v1137_v63 = vmul.f32 %v3467_v44, %v1133_v0  ;;  %vm4250_vm2 = vcmp.lt.s32.totalorder %v2737_v38, 1 }
 0x311   : > { %v1650_v54 = vadd.f32 %v1646_v53, %v1605_v14  ;;  %v1651_v22 = vadd.f32 %v1647_v45, %v1606_v36  ;;  %v1624_v15 = vpop.permute.xlu0 %1623  ;;  %v960_v14 = vmul.f32 %v3386_v6, %v3379_v21  ;;  %v3546_v36 = vsel %vm3314_vm12, 1.0, %v4157_v47 }
 0x312   : > { %v1628_v32 = vsel %vm1627_vm8, %v1620_v43, %v1624_v15  ;;  %v1630_v35 = vsel %vm1627_vm8, %v1624_v15, %v1620_v43  ;;  %v1004_v37 = vadd.f32 %v3449_v62, %v959_v56  ;;  %v4202_v43 = vld [vmem:[#allocation5_spill] sm:$0xff]  ;;  %v3564_v53 = vsel %vm3333_vm13, 1.0, %v4157_v47  ;;  %v4209_v15 = vld [vmem:[#allocation22_spill] sm:$0xff]  ;;  %vm4216_vm13 = vmmov %vm4201_vm4 }
 0x313   : > { %v1664_v16 = vadd.f32 %v4200_v3, %v1650_v54  ;;  %v1632_v60 = vmul.f32 %v2325_v49, %v1628_v32  ;;  %v1633_v1 = vmul.f32 %v2326_v26, %v1630_v35  ;;  %v1665_v6 = vadd.f32 %v4200_v3, %v1651_v22  ;;  %v1258_v24 = vpop.permute.xlu1 %1257  ;;  %v4211_v32 = vld [vmem:[#allocation14_spill] sm:$0xff]  ;;  %v4215_v3 = vld [vmem:[#allocation16_spill] sm:$0xff]  ;;  %vm4220_vm8 = vmmov %vm4219_vm0 }
 0x314   : > { %v1112_v26 = vadd.f32 %v3473_v51, %v1096_v33  ;;  %v1005_v50 = vadd.f32 %v3452_v23, %v960_v14  ;;  %v1135_v51 = vsel %vm4206_vm9, %v3145_v27, %v3139_v34  ;;  %v1094_v33 = vmul.f32 %v4208_v12, %v1082_v28  ;;  %v4214_v28 = vld [vmem:[#allocation17_spill] sm:$0xff] }
 0x315   : > { %v1219_v21 = vpop.permute.xlu0 %1218  ;;  %v1644_v25 = vmul.f32 %v4202_v43, %v1632_v60  ;;  %v1645_v49 = vmul.f32 %v4202_v43, %v1633_v1  ;;  %v2329_v58 = vmul.f32 -1.442695, %v1664_v16  ;;  %v2330_v20 = vmul.f32 -1.442695, %v1665_v6 }
 0x316   : > { %v1051_v56 = vadd.f32 %v3487_v41, %v1004_v37  ;;  %vm1263_vm12 = vcmp.lt.s32.totalorder %v2737_v38, 111  ;;  %v1138_v31 = vmul.f32 %v3480_v59, %v1135_v51  ;;  %v1052_v10 = vadd.f32 %v1048_v55, %v1005_v50  ;;  %v4212_v55 = vld [vmem:[#allocation23_spill] sm:$0xff] }
 0x317   : > { %v1648_v23 = vadd.f32 %v1644_v25, %v1603_v48  ;;  %v1649_v45 = vadd.f32 %v1645_v49, %v1604_v42  ;;  %v3593_v54 = vsel %vm3570_vm5, 1.0, %v4157_v47  ;;  %v3596_v22 = vsel %vm1250_vm15, 1.0, %v4157_v47  ;;  %v4218_v42 = vld [vmem:[#allocation26_spill] sm:$0xff]  ;;  %vm4251_vm15 = vmmov %vm4250_vm2 }
 0x318   : > { %v1183_v41 = vsel %vm1181_vm14, %v4210_v61, %v4209_v15  ;;  %2422 = vpow2.f32 %v2329_v58  ;;  %v1149_v35 = vmul.f32 %v4211_v32, %v1137_v63  ;;  %v1182_v4 = vsel %vm1181_vm14, %v4213_v46, %v4212_v55 }
 0x319   : > { %v1256_v40 = vpop.permute.xlu0 %1255  ;;  %v1662_v34 = vadd.f32 %v3318_v30, %v1648_v23  ;;  %v1663_v27 = vadd.f32 %v3318_v30, %v1649_v45  ;;  %v1184_v18 = vsel %vm1181_vm14, %v4212_v55, %v4213_v46  ;;  %2424 = vpow2.f32 %v2330_v20  ;;  %v1262_v45 = vpop.permute.xlu1 %1261  ;;  %v4227_v46 = vld [vmem:[#allocation18_spill] sm:$0xff] }
 0x31a   : > { %v1185_v14 = vsel %vm1181_vm14, %v4209_v15, %v4210_v61  ;;  %v1134_v16 = vsel %vm4216_vm13, %v4215_v3, %v4214_v28  ;;  %v1098_v60 = vadd.f32 %v1094_v33, %v1051_v56  ;;  %v1150_v1 = vmul.f32 %v4211_v32, %v1138_v31  ;;  %vm4254_vm13 = vmmov %vm4217_vm10 }
 0x31b   : > { %v2327_v30 = vmul.f32 -1.442695, %v1662_v34  ;;  %v2328_v9 = vmul.f32 -1.442695, %v1663_v27  ;;  %v1136_v13 = vsel %vm4217_vm10, %v4214_v28, %v4215_v3  ;;  %v1099_v0 = vadd.f32 %v1095_v7, %v1052_v10  ;;  %v4221_v7 = vld [vmem:[#allocation31_spill] sm:$0xff]  ;;  %v4224_v34 = vld [vmem:[#allocation13_spill] sm:$0xff] }
 0x31c   : > { %v1186_v6 = vmul.f32 %v3398_v39, %v1182_v4  ;;  %v1187_v48 = vmul.f32 %v3446_v5, %v1184_v18  ;;  %v1223_v43 = vsel %vm4219_vm0, %v4218_v42, %v1219_v21  ;;  %v1225_v25 = vsel %vm4220_vm8, %v1219_v21, %v4218_v42  ;;  %vm4255_vm8 = vmmov %vm4219_vm0 }
 0x31d   : > { %2426 = vpow2.f32 %v2327_v30  ;;  %v1260_v37 = vpop.permute.xlu0 %1259  ;;  %v1188_v49 = vmul.f32 %v3398_v39, %v1183_v41  ;;  %v1189_v50 = vmul.f32 %v3446_v5, %v1185_v14  ;;  %v1153_v62 = vadd.f32 %v1149_v35, %v1112_v26  ;;  %v4226_v35 = vld [vmem:[#allocation15_spill] sm:$0xff] }
 0x31e   : > { %2428 = vpow2.f32 %v2328_v9  ;;  %v1139_v51 = vmul.f32 %v3467_v44, %v1134_v16  ;;  %v1140_v58 = vmul.f32 %v3480_v59, %v1136_v13  ;;  %v1114_v23 = vadd.f32 %v3512_v11, %v1098_v60 }
 0x31f   : > { %v1264_v12 = vsel %vm1263_vm12, %v1256_v40, %v1260_v37  ;;  %v1266_v33 = vsel %vm1263_vm12, %v1260_v37, %v1256_v40  ;;  %v1224_v21 = vsel %vm4222_vm7, %v4221_v7, %v1221_v8  ;;  %v1226_v26 = vsel %vm4223_vm3, %v1221_v8, %v4221_v7  ;;  %v4225_v40 = vld [vmem:[#allocation12_spill] sm:$0xff] }
 0x320   : > { %v1227_v63 = vmul.f32 %v3546_v36, %v1223_v43  ;;  %v1228_v20 = vmul.f32 %v3564_v53, %v1225_v25  ;;  %v1154_v11 = vadd.f32 %v1150_v1, %v1113_v17  ;;  %v1115_v56 = vadd.f32 %v3518_v29, %v1099_v0  ;;  %v4229_v25 = vld [vmem:[#allocation19_spill] sm:$0xff] }
 0x321   : > { %v1198_v27 = vmul.f32 %v4224_v34, %v1186_v6  ;;  %v1199_v31 = vmul.f32 %v4224_v34, %v1187_v48  ;;  %v1151_v10 = vmul.f32 %v4225_v40, %v1139_v51  ;;  %v1265_v15 = vsel %vm1263_vm12, %v1258_v24, %v1262_v45 }
 0x322   : > { %v1268_v61 = vmul.f32 %v3593_v54, %v1264_v12  ;;  %v1269_v8 = vmul.f32 %v3596_v22, %v1266_v33  ;;  %v2423_v41 = vpop.eup %2422  ;;  %v1152_v30 = vmul.f32 %v4225_v40, %v1140_v58  ;;  %v1229_v17 = vmul.f32 %v3546_v36, %v1224_v21 }
 0x323   : > { %v1230_v29 = vmul.f32 %v3564_v53, %v1226_v26  ;;  %v1267_v9 = vsel %vm1263_vm12, %v1262_v45, %v1258_v24  ;;  %v2425_v32 = vpop.eup %2424  ;;  %v1200_v55 = vmul.f32 %v4226_v35, %v1188_v49  ;;  %v1239_v4 = vmul.f32 %v4227_v46, %v1227_v63  ;;  %v4228_v24 = vld [vmem:[#allocation25_spill] sm:$0xff]  ;;  %v4230_v26 = vld [vmem:[#allocation24_spill] sm:$0xff] }
 0x324   : > { %v1240_v18 = vmul.f32 %v4227_v46, %v1228_v20  ;;  %v1155_v14 = vadd.f32 %v1151_v10, %v1114_v23  ;;  %v1270_v3 = vmul.f32 %v3593_v54, %v1265_v15  ;;  %v1156_v16 = vadd.f32 %v1152_v30, %v1115_v56 }
 0x325   : > { %v1202_v1 = vadd.f32 %v1198_v27, %v1153_v62  ;;  %v1203_v13 = vadd.f32 %v1199_v31, %v1154_v11  ;;  %v1271_v6 = vmul.f32 %v3596_v22, %v1267_v9  ;;  %v1280_v48 = vmul.f32 %v4228_v24, %v1268_v61 }
 0x326   : > { %v1281_v42 = vmul.f32 %v4228_v24, %v1269_v8  ;;  %v1201_v43 = vmul.f32 %v4226_v35, %v1189_v50  ;;  %v1241_v49 = vmul.f32 %v4229_v25, %v1229_v17  ;;  %v1242_v51 = vmul.f32 %v4229_v25, %v1230_v29 }
 0x327   : > { %v2427_v28 = vpop.eup %2426  ;;  %v1680_v23 = vadd.f32 1.0, %v2423_v41  ;;  %v1243_v45 = vadd.f32 %v1239_v4, %v1202_v1  ;;  %v1244_v62 = vadd.f32 %v1240_v18, %v1203_v13  ;;  %v1681_v12 = vadd.f32 1.0, %v2425_v32 }
 0x328   : > { %v1296_v60 = vpop.permute.xlu1 %1295  ;;  %v2429_v0 = vpop.eup %2428  ;;  %v1678_v37 = vadd.f32 1.0, %v2427_v28  ;;  %v1204_v33 = vadd.f32 %v1200_v55, %v1155_v14  ;;  %v1205_v7 = vadd.f32 %v1201_v43, %v1156_v16  ;;  %v1282_v63 = vmul.f32 %v4230_v26, %v1270_v3 }
 0x329   : > { %v1679_v58 = vadd.f32 1.0, %v2429_v0  ;;  %v1283_v20 = vmul.f32 %v4230_v26, %v1271_v6  ;;  %v1284_v11 = vadd.f32 %v1280_v48, %v1243_v45  ;;  %v1285_v50 = vadd.f32 %v1281_v42, %v1244_v62 }
 0x32a   : > { %2430 = vrcp.f32 %v1678_v37  ;;  %v1245_v56 = vadd.f32 %v1241_v49, %v1204_v33  ;;  %v1246_v27 = vadd.f32 %v1242_v51, %v1205_v7  ;;  %v1703_v51 = vld [vmem:[%s3986_s11] sm:$0xff]  ;;  %vm1707_vm4 = vcmask 31744  }
 0x32b   : > { %2432 = vrcp.f32 %v1679_v58  ;;  %v1704_v58 = vld [vmem:[%s3986_s11 + $0x8] sm:$0xff]  ;;  %vm4246_vm5 = vcmp.lt.s32.totalorder %v2737_v38, 17  ;;  %vm4256_vm7 = vcmask 64512  }
 0x32c   : > { %v1307_v21 = vpop.permute.xlu1 %1306  ;;  %2434 = vrcp.f32 %v1680_v23  ;;  %v1286_v10 = vadd.f32 %v1282_v63, %v1245_v56  ;;  %v1287_v15 = vadd.f32 %v1283_v20, %v1246_v27  ;;  %v4231_v56 = vlaneseq  ;;  %v1717_v27 = vld [vmem:[%s3987_s12] sm:$0x1]  ;;  %vm4247_vm9 = vmmov %vm4246_vm5 }
 0x32d   : > { %2436 = vrcp.f32 %v1681_v12  ;;  %vm4257_vm3 = vmmov %vm4246_vm5 }
 0x32e   : > { %v1291_v34 = vpop.permute.xlu0 %1290  ;;  %v1300_v17 = vadd.f32 %v1296_v60, %v1286_v10  ;;  %v1301_v29 = vadd.f32 %v1296_v60, %v1287_v15 }
 0x32f   : > { %v1298_v31 = vadd.f32 %v1291_v34, %v1284_v11  ;;  %v1299_v40 = vadd.f32 %v1291_v34, %v1285_v50  ;;  %v1723_v34 = vshrl.u32 %v4231_v56, 7 }
 0x330   : > { %v1323_v41 = vpop.permute.xlu1 %1322 }
 0x331   : > { %v1314_v61 = vmul.f32 %v1307_v21, %v1298_v31  ;;  %v1315_v8 = vmul.f32 %v1307_v21, %v1299_v40  ;;  %v1724_v10 = vsub.s32 0, %v1723_v34 }
 0x332   : > { %v1312_v30 = vpop.permute.xlu0 %1311 }
 0x333   : > { %v1330_v9 = vadd.f32 %v1323_v41, %v1314_v61  ;;  %v1331_v32 = vadd.f32 %v1323_v41, %v1315_v8  ;;  %v1316_v4 = vmul.f32 %v1312_v30, %v1300_v17  ;;  %v1317_v18 = vmul.f32 %v1312_v30, %v1301_v29  ;;  %v1721_v61 = vld [vmem:[%s3988_s13 + $0x8] sm:$0xff]  ;;  %v1720_v8 = vld [vmem:[%s3988_s13] sm:$0xff] }
 0x334   : > { %v2431_v35 = vpop.eup %2430 }
 0x335   : > { %v1334_v55 = vmax.f32 %v1330_v9, 0.0  ;;  %v1335_v46 = vmax.f32 %v1331_v32, 0.0  ;;  %v2433_v14 = vpop.eup %2432  ;;  %v1735_v32 = vld [vmem:[%s3989_s14 + $0x8] sm:$0xff] }
 0x336   : > { %v1328_v28 = vpop.permute.xlu0 %1327  ;;  %v2435_v0 = vpop.eup %2434 }
 0x337   : > { %v3674_v3 = vmul.f32 %v2431_v35, %v1334_v55  ;;  %v3676_v16 = vmul.f32 %v2433_v14, %v1335_v46  ;;  %v1332_v1 = vadd.f32 %v1328_v28, %v1316_v4  ;;  %v1333_v13 = vadd.f32 %v1328_v28, %v1317_v18  ;;  %v2437_v24 = vpop.eup %2436  ;;  %v1734_v35 = vld [vmem:[%s3989_s14] sm:$0xff] }
 0x339   : > { %v1336_v37 = vmax.f32 %v1332_v1, 0.0  ;;  %v1337_v6 = vmax.f32 %v1333_v13, 0.0  ;;  %v1694_v60 = vadd.f32 %v3676_v16, %v3674_v3 }
 0x33b   : > { %1695 = vadd.xlane.f32.xlu1 %v1694_v60  ;;  %v3680_v48 = vmul.f32 %v2435_v0, %v1336_v37  ;;  %v3682_v42 = vmul.f32 %v2437_v24, %v1337_v6  ;;  %v1990_v24 = vld [vmem:[%s3996_s21] sm:$0xff] }
 0x33d   : > { %v1697_v43 = vadd.f32 %v3682_v42, %v3680_v48 }
 0x33f   : > { %1698 = vadd.xlane.f32.xlu0 %v1697_v43  ;;  %v4232_v43 = vmov 1  }
 0x3c8   : > { %v1696_v25 = vpop.xlane.xlu1 %1695 }
 0x3c9   : > { %v1701_v49 = vmul.f32 0.00390625, %v1696_v25  ;;  %v4233_v25 = vmov 2  }
 0x3cb   : > { %v1705_v45 = vmul.f32 %v1703_v51, %v1701_v49  ;;  %v3718_v49 = vld [vmem:[%s2631_s27 + $0x8] sm:$0xff]  ;;  %v4235_v51 = vmov 4  }
 0x3cc   : > { %v1699_v23 = vpop.xlane.xlu0 %1698 }
 0x3cd   : > { %v1702_v62 = vmul.f32 0.00390625, %v1699_v23  ;;  %v1708_v33 = vsel %vm1707_vm4, %v1705_v45, 0.0  ;;  %v4236_v23 = vmov 3   ;;  %v4239_v45 = vmov 6  }
 0x3cf   : > { %v1706_v12 = vmul.f32 %v1704_v58, %v1702_v62  ;;  %v3724_v58 = vld [vmem:[%s2631_s27] sm:$0xff]  ;;  %v4240_v62 = vmov 5   ;;  %s4242_s27 = smov 113  }
 0x3d1   : > { %v1709_v7 = vsel %vm1707_vm4, %v1706_v12, 0.0  ;;  %v4241_v12 = vmov 8  }
 0x3d2   : > { %v1710_v21 = vadd.f32 %v1709_v7, %v1708_v33  ;;  %v4243_v33 = vmov 7   ;;  %v4244_v7 = vmov 0  }
 0x3d4   : > { %v1711_v26 = vrot.slane %v1710_v21, 4 }
 0x3d6   : > { %v1712_v63 = vadd.f32 %v1711_v26, %v1710_v21  ;;  %v1991_v21 = vld [vmem:[%s3997_s22] sm:$0xff] }
 0x3d7   : > { %v1765_v26 = vld [vmem:[%s3991_s16] sm:$0xff] }
 0x3d8   : > { %v1713_v20 = vrot.slane %v1712_v63, 2 }
 0x3da   : > { %v1714_v11 = vadd.f32 %v1713_v20, %v1712_v63  ;;  %v3773_v63 = vld [vmem:[%s3992_s17] sm:$0xff] }
 0x3dc   : > { %v1715_v50 = vrot.slane %v1714_v11, 1 }
 0x3de   : > { %v1716_v31 = vadd.f32 %v1715_v50, %v1714_v11 }
 0x3e0   : > { %v1718_v40 = vadd.f32 %v1717_v27, %v1716_v31 }
 0x3e2   : > { %v1719_v15 = vmax.f32 %v1718_v40, 0.0 }
 0x3e4   : > { %v1725_v41 = vrot.slane %v1719_v15, %v1724_v10  ;;  %v1764_v15 = vld [vmem:[%s3990_s15] sm:$0xff] }
 0x3e6   : > { %v1727_v30 = vmul.f32 %v1725_v41, %v1721_v61  ;;  %v1726_v17 = vmul.f32 %v1725_v41, %v1720_v8 }
 0x3e8   : > { %v1731_v29 = vsel %vm1707_vm4, %v1727_v30, 0.0  ;;  %v1728_v9 = vsel %vm1707_vm4, %v1726_v17, 0.0  ;;  %vm4258_vm4 = vmmov %vm4257_vm3 }
 0x3e9   : > { %1732 = vadd.xlane.f32.xlu1 %v1731_v29  ;;  %1729 = vadd.xlane.f32.xlu0 %v1728_v9 }
 0x476   : > { %v1733_v55 = vpop.xlane.xlu1 %1732  ;;  %v1730_v46 = vpop.xlane.xlu0 %1729 }
 0x477   : > { %v1737_v4 = vadd.f32 %v1735_v32, %v1733_v55  ;;  %v1736_v18 = vadd.f32 %v1734_v35, %v1730_v46 }
 0x479   : > { %v2332_v14 = vmul.f32 -1.442695, %v1737_v4  ;;  %v2331_v28 = vmul.f32 -1.442695, %v1736_v18 }
 0x47b   : > { %2438 = vpow2.f32 %v2332_v14 }
 0x47c   : > { %2440 = vpow2.f32 %v2331_v28 }
 0x485   : > { %v2439_v1 = vpop.eup %2438 }
 0x486   : > { %v2441_v13 = vpop.eup %2440  ;;  %v1745_v0 = vadd.f32 1.0, %v2439_v1 }
 0x487   : > { %v1744_v37 = vadd.f32 1.0, %v2441_v13 }
 0x488   : > { %2442 = vrcp.f32 %v1745_v0 }
 0x489   : > { %2444 = vrcp.f32 %v1744_v37  ;;  %v4248_v37 = vld [vmem:[#allocation27_spill] sm:$0xff] }
 0x492   : > { %v2443_v6 = vpop.eup %2442 }
 0x493   : > { %v2445_v60 = vpop.eup %2444  ;;  %1757 = vperm.xlu1 %2401, %v2443_v6  }
 0x494   : > { %1752 = vperm.xlu0 %2400, %v2445_v60   ;;  %v4249_v60 = vld [vmem:[#allocation28_spill] sm:$0xff] }
 0x497   : > { %2002 = vperm.xlu1 %2401, %v1990_v24  }
 0x498   : > { %2402 = vset.pattern.permute.xlu0 %v4232_v43 }
 0x499   : > { %2016 = vperm.xlu0 %2402, %v1990_v24  }
 0x49b   : > { %2403 = vset.pattern.permute.xlu1 %v4233_v25 }
 0x49c   : > { %2032 = vperm.xlu1 %2403, %v1990_v24  }
 0x49d   : > { %1994 = vrot.lane.b32.xlu0 %v3718_v49, %s4234_s10 }
 0x49e   : > { %2405 = vset.pattern.permute.xlu0 %v4235_v51 }
 0x4a0   : > { %1992 = vrot.lane.b32.xlu1 %v3724_v58, %s4234_s10 }
 0x4a1   : > { %2404 = vset.pattern.permute.xlu1 %v4236_v23  ;;  %2009 = vrot.lane.b32.xlu0 %v3718_v49, %s4237_s29 }
 0x4a4   : > { %2007 = vrot.lane.b32.xlu1 %v3724_v58, %s4237_s29 }
 0x4a5   : > { %2023 = vrot.lane.b32.xlu0 %v3724_v58, %s4238_s7 }
 0x4a8   : > { %2048 = vperm.xlu1 %2404, %v1990_v24  }
 0x4a9   : > { %2056 = vperm.xlu0 %2405, %v1990_v24  }
 0x4ac   : > { %2025 = vrot.lane.b32.xlu1 %v3718_v49, %s4238_s7 }
 0x4ad   : > { %2407 = vset.pattern.permute.xlu1 %v4239_v45  ;;  %2406 = vset.pattern.permute.xlu0 %v4240_v62 }
 0x4ae   : > { %2072 = vperm.xlu0 %2406, %v1990_v24  }
 0x4b0   : > { %2039 = vrot.lane.b32.xlu1 %v3724_v58, %s4115_s26 }
 0x4b2   : > { %2065 = vrot.lane.b32.xlu0 %v3718_v49, %s4126_s9 }
 0x4b3   : > { %2409 = vset.pattern.permute.xlu0 %v4241_v12 }
 0x4b4   : > { %2041 = vrot.lane.b32.xlu1 %v3718_v49, %s4115_s26 }
 0x4b6   : > { %2079 = vrot.lane.b32.xlu0 %v3724_v58, %s4242_s27 }
 0x4b8   : > { %2088 = vperm.xlu1 %2407, %v1990_v24  }
 0x4ba   : > { %2120 = vperm.xlu0 %2409, %v1990_v24  }
 0x4bc   : > { %2063 = vrot.lane.b32.xlu1 %v3724_v58, %s4126_s9 }
 0x4bd   : > { %2408 = vset.pattern.permute.xlu1 %v4243_v33 }
 0x4be   : > { %2111 = vrot.lane.b32.xlu0 %v3724_v58, %s2477_s6 }
 0x4bf   : > { %2410 = vset.pattern.permute.xlu0 %v4244_v7 }
 0x4c0   : > { %2104 = vperm.xlu1 %2408, %v1990_v24  }
 0x4c2   : > { %2129 = vperm.xlu0 %2410, %v1991_v21  }
 0x4c4   : > { %2081 = vrot.lane.b32.xlu1 %v3718_v49, %s4242_s27 }
 0x4c5   : > { %2411 = vset.pattern.permute.xlu1 %v4244_v7 }
 0x4c6   : > { %2412 = vset.pattern.permute.xlu0 %v4232_v43 }
 0x4c7   : > { %1872 = vperm.xlu0 %2412, %v3773_v63  }
 0x4c8   : > { %2095 = vrot.lane.b32.xlu1 %v3724_v58, %s4245_s4 }
 0x4cb   : > { %2415 = vset.pattern.permute.xlu0 %v4235_v51  ;;  %v4252_v51 = vld [vmem:[#allocation29_spill] sm:$0xff] }
 0x4cc   : > { %2097 = vrot.lane.b32.xlu1 %v3718_v49, %s4245_s4  ;;  %1912 = vperm.xlu0 %2415, %v3773_v63  }
 0x4d0   : > { %2113 = vrot.lane.b32.xlu1 %v3718_v49, %s2477_s6  ;;  %2416 = vset.pattern.permute.xlu0 %v4240_v62 }
 0x4d1   : > { %1928 = vperm.xlu0 %2416, %v3773_v63  }
 0x4d4   : > { %1768 = vperm.xlu1 %2411, %v1765_v26  }
 0x4d5   : > { %2419 = vset.pattern.permute.xlu0 %v4241_v12 }
 0x4d8   : > { %1858 = vperm.xlu1 %2411, %v3773_v63  }
 0x4dc   : > { %2413 = vset.pattern.permute.xlu1 %v4233_v25 }
 0x4dd   : > { %1888 = vperm.xlu1 %2413, %v3773_v63  }
 0x4e1   : > { %2414 = vset.pattern.permute.xlu1 %v4236_v23 }
 0x4e2   : > { %1904 = vperm.xlu1 %2414, %v3773_v63  }
 0x4e6   : > { %2417 = vset.pattern.permute.xlu1 %v4239_v45  ;;  %v4253_v45 = vld [vmem:[#allocation30_spill] sm:$0xff] }
 0x4e7   : > { %1944 = vperm.xlu1 %2417, %v3773_v63  }
 0x4eb   : > { %2418 = vset.pattern.permute.xlu1 %v4243_v33 }
 0x4ec   : > { %1960 = vperm.xlu1 %2418, %v3773_v63  }
 0x4f0   : > { %2421 = vset.pattern.permute.xlu1 %v4244_v7 }
 0x512   : > { %v1758_v20 = vpop.permute.xlu1 %1757 }
 0x513   : > { %v1762_v11 = vmul.f32 %v1758_v20, %v3680_v48  ;;  %v1763_v50 = vmul.f32 %v1758_v20, %v3682_v42  ;;  %v1753_v56 = vpop.permute.xlu0 %1752 }
 0x514   : > { %v1760_v34 = vmul.f32 %v1753_v56, %v3674_v3  ;;  %v1761_v27 = vmul.f32 %v1753_v56, %v3676_v16 }
 0x516   : > { %v2339_v31 = vpack.c.bf16 %v1763_v50, %v1761_v27  ;;  %v2341_v40 = vpack.c.bf16 %v1762_v11, %v1760_v34  ;;  %v2003_v10 = vpop.permute.xlu1 %2002 }
 0x518   : > { %2340 = vmatprep.subr.bf16.mxu1 %v2339_v31  ;;  %v2017_v48 = vpop.permute.xlu0 %2016 }
 0x519   : > { %2342 = vmatpush1.bf16.msra.mxu1 %v2341_v40 }
 0x51b   : > { %v2033_v61 = vpop.permute.xlu1 %2032 }
 0x51c   : > { %2333 = vmatmul.mubr.msk.f32.vlgmr.msra.gmra.mrb[2].mxu1 %vm1771_vm11, %v1764_v15  ;;  %v1995_v3 = vpop.permute.xlu0 %1994  ;;  %vm4260_vm11 = vmmov %vm4250_vm2 }
 0x51d   : > { %2208 = vmatprep.mubr.f32.mxu1 %v4157_v47 }
 0x51f   : > { %v1993_v42 = vpop.permute.xlu1 %1992 }
 0x520   : > { %v2010_v16 = vpop.permute.xlu0 %2009  ;;  %v1996_v47 = vsel %vm4246_vm5, %v1993_v42, %v1995_v3  ;;  %v1997_v18 = vsel %vm4247_vm9, %v1995_v3, %v1993_v42  ;;  %vm4263_vm9 = vmmov %vm4219_vm0 }
 0x521   : > { %v1998_v6 = vmul.f32 %v4248_v37, %v1997_v18  ;;  %v1999_v24 = vmul.f32 %v4249_v60, %v1996_v47 }
 0x523   : > { %v2008_v8 = vpop.permute.xlu1 %2007  ;;  %v2005_v50 = vmul.f32 %v2003_v10, %v1998_v6  ;;  %v2006_v56 = vmul.f32 %v2003_v10, %v1999_v24 }
 0x524   : > { %v2024_v17 = vpop.permute.xlu0 %2023  ;;  %v2011_v55 = vsel %vm981_vm6, %v2008_v8, %v2010_v16  ;;  %v2012_v46 = vsel %vm981_vm6, %v2010_v16, %v2008_v8 }
 0x525   : > { %v2013_v14 = vmul.f32 %v3224_v57, %v2012_v46  ;;  %v2014_v28 = vmul.f32 %v3241_v2, %v2011_v55 }
 0x527   : > { %v2049_v41 = vpop.permute.xlu1 %2048  ;;  %v2019_v12 = vmul.f32 %v2017_v48, %v2013_v14  ;;  %v2020_v33 = vmul.f32 %v2017_v48, %v2014_v28 }
 0x528   : > { %v2057_v32 = vpop.permute.xlu0 %2056 }
 0x529   : > { %v2021_v31 = vadd.f32 %v2019_v12, %v2005_v50  ;;  %v2022_v40 = vadd.f32 %v2020_v33, %v2006_v56  ;;  %v2059_v18 = vmul.f32 %v3724_v58, %v2057_v32  ;;  %v2060_v14 = vmul.f32 %v3718_v49, %v2057_v32 }
 0x52b   : > { %v2026_v30 = vpop.permute.xlu1 %2025 }
 0x52c   : > { %v2027_v1 = vsel %vm1028_vm1, %v2024_v17, %v2026_v30  ;;  %v2028_v13 = vsel %vm1028_vm1, %v2026_v30, %v2024_v17 }
 0x52d   : > { %v2073_v4 = vpop.permute.xlu0 %2072  ;;  %v2029_v23 = vmul.f32 %v4252_v51, %v2028_v13  ;;  %v2030_v62 = vmul.f32 %v4253_v45, %v2027_v1 }
 0x52f   : > { %v2040_v29 = vpop.permute.xlu1 %2039  ;;  %v2035_v34 = vmul.f32 %v2033_v61, %v2029_v23  ;;  %v2036_v27 = vmul.f32 %v2033_v61, %v2030_v62 }
 0x531   : > { %v2066_v21 = vpop.permute.xlu0 %2065  ;;  %v2037_v30 = vadd.f32 %v2035_v34, %v2021_v31  ;;  %v2038_v17 = vadd.f32 %v2036_v27, %v2022_v40 }
 0x533   : > { %v2042_v9 = vpop.permute.xlu1 %2041 }
 0x534   : > { %v2043_v43 = vsel %vm4250_vm2, %v2040_v29, %v2042_v9  ;;  %v2044_v25 = vsel %vm4251_vm15, %v2042_v9, %v2040_v29 }
 0x535   : > { %v2045_v20 = vmul.f32 %v3312_v19, %v2044_v25  ;;  %v2046_v11 = vmul.f32 %v3349_v52, %v2043_v43  ;;  %v2080_v42 = vpop.permute.xlu0 %2079 }
 0x537   : > { %v2089_v35 = vpop.permute.xlu1 %2088  ;;  %v2051_v8 = vmul.f32 %v2049_v41, %v2045_v20  ;;  %v2052_v3 = vmul.f32 %v2049_v41, %v2046_v11 }
 0x539   : > { %v2121_v41 = vpop.permute.xlu0 %2120  ;;  %v2053_v46 = vadd.f32 %v2051_v8, %v2037_v30  ;;  %v2054_v47 = vadd.f32 %v2052_v3, %v2038_v17  ;;  %v2134_v17 = vld [vmem:[%s3998_s23] sm:$0xff] }
 0x53b   : > { %v2064_v0 = vpop.permute.xlu1 %2063  ;;  %v2061_v24 = vadd.f32 %v2059_v18, %v2053_v46  ;;  %v2062_v43 = vadd.f32 %v2060_v14, %v2054_v47  ;;  %v2135_v46 = vld [vmem:[%s3999_s24] sm:$0xff] }
 0x53c   : > { %v2067_v16 = vsel %vm4254_vm13, %v2064_v0, %v2066_v21  ;;  %v2068_v48 = vsel %vm4217_vm10, %v2066_v21, %v2064_v0 }
 0x53d   : > { %v2069_v61 = vmul.f32 %v3467_v44, %v2067_v16  ;;  %v2070_v9 = vmul.f32 %v3480_v59, %v2068_v48  ;;  %v2112_v32 = vpop.permute.xlu0 %2111 }
 0x53f   : > { %v2105_v26 = vpop.permute.xlu1 %2104  ;;  %v2075_v13 = vmul.f32 %v2073_v4, %v2069_v61  ;;  %v2076_v0 = vmul.f32 %v2073_v4, %v2070_v9 }
 0x541   : > { %v2077_v33 = vadd.f32 %v2075_v13, %v2061_v24  ;;  %v2078_v21 = vadd.f32 %v2076_v0, %v2062_v43  ;;  %v2130_v3 = vpop.permute.xlu0 %2129 }
 0x543   : > { %v2082_v15 = vpop.permute.xlu1 %2081 }
 0x544   : > { %v2083_v29 = vsel %vm1181_vm14, %v2080_v42, %v2082_v15  ;;  %v2084_v10 = vsel %vm1181_vm14, %v2082_v15, %v2080_v42 }
 0x545   : > { %v2085_v28 = vmul.f32 %v3398_v39, %v2083_v29  ;;  %v2086_v1 = vmul.f32 %v3446_v5, %v2084_v10 }
 0x546   : > { %v1873_v0 = vpop.permute.xlu0 %1872 }
 0x547   : > { %v2096_v55 = vpop.permute.xlu1 %2095  ;;  %v2091_v62 = vmul.f32 %v2089_v35, %v2085_v28  ;;  %v2092_v12 = vmul.f32 %v2089_v35, %v2086_v1 }
 0x549   : > { %v2093_v34 = vadd.f32 %v2091_v62, %v2077_v33  ;;  %v2094_v27 = vadd.f32 %v2092_v12, %v2078_v21 }
 0x54b   : > { %v2098_v6 = vpop.permute.xlu1 %2097  ;;  %v1913_v24 = vpop.permute.xlu0 %1912 }
 0x54c   : > { %v2099_v25 = vsel %vm4219_vm0, %v2096_v55, %v2098_v6  ;;  %v2100_v23 = vsel %vm4255_vm8, %v2098_v6, %v2096_v55 }
 0x54d   : > { %v2101_v58 = vmul.f32 %v3546_v36, %v2099_v25  ;;  %v2102_v49 = vmul.f32 %v3564_v53, %v2100_v23 }
 0x54f   : > { %v2107_v20 = vmul.f32 %v2105_v26, %v2101_v58  ;;  %v2108_v4 = vmul.f32 %v2105_v26, %v2102_v49  ;;  %v2114_v11 = vpop.permute.xlu1 %2113 }
 0x550   : > { %v2115_v50 = vsel %vm1263_vm12, %v2112_v32, %v2114_v11  ;;  %v2116_v56 = vsel %vm1263_vm12, %v2114_v11, %v2112_v32  ;;  %v1929_v25 = vpop.permute.xlu0 %1928 }
 0x551   : > { %v2117_v35 = vmul.f32 %v3593_v54, %v2115_v50  ;;  %v2118_v31 = vmul.f32 %v3596_v22, %v2116_v56  ;;  %v2109_v42 = vadd.f32 %v2107_v20, %v2093_v34  ;;  %v2110_v8 = vadd.f32 %v2108_v4, %v2094_v27 }
 0x553   : > { %v2123_v40 = vmul.f32 %v2121_v41, %v2117_v35  ;;  %v2124_v15 = vmul.f32 %v2121_v41, %v2118_v31  ;;  %v1769_v29 = vpop.permute.xlu1 %1768  ;;  %v1847_v41 = vld [vmem:[%s3993_s18] sm:$0xff] }
 0x555   : > { %v2125_v16 = vadd.f32 %v2123_v40, %v2109_v42  ;;  %v2126_v26 = vadd.f32 %v2124_v15, %v2110_v8 }
 0x557   : > { %v2132_v48 = vadd.f32 %v2130_v3, %v2125_v16  ;;  %v2133_v30 = vadd.f32 %v2130_v3, %v2126_v26  ;;  %v1859_v14 = vpop.permute.xlu1 %1858 }
 0x559   : > { %2144 = vmatprep.subr.mxu1 %v2133_v30 }
 0x55a   : > { %2145 = vmatpush1.msra.mxu1 %v2132_v48 }
 0x55b   : > { %2334 = vmatmul.mubr.msk.f32.vlgmr.msra.gmra.mrb[4].mxu1 %vm4256_vm7, %v2134_v17 }
 0x55c   : > { %v1889_v28 = vpop.permute.xlu1 %1888 }
 0x561   : > { %v1905_v1 = vpop.permute.xlu1 %1904 }
 0x566   : > { %v3907_v13 = vpop.permute.xlu1 %1944 }
 0x56b   : > { %v3909_v6 = vpop.permute.xlu1 %1960 }
 0x5ef   : > { %v1841_v10 = vpop.f32.mrb[2].mxu1 }
 0x5f0   : > { %v3853_v61 = vadd.f32 %v1841_v10, %v1769_v29  ;;  %v1843_v9 = vpop.f32.mrb[3].mxu1 }
 0x5f1   : > { %v3863_v55 = vadd.f32 %v1843_v9, %v1769_v29 }
 0x5f2   : > { %1879 = vrot.lane.b32.xlu0 %v3853_v61, %s4238_s7  ;;  %1848 = vrot.lane.b32.xlu1 %v3853_v61, %s4234_s10 }
 0x5f6   : > { %1935 = vrot.lane.b32.xlu0 %v3853_v61, %s4242_s27  ;;  %1863 = vrot.lane.b32.xlu1 %v3853_v61, %s4237_s29 }
 0x5fa   : > { %1850 = vrot.lane.b32.xlu0 %v3863_v55, %s4234_s10  ;;  %1895 = vrot.lane.b32.xlu1 %v3853_v61, %s4115_s26 }
 0x5fe   : > { %1865 = vrot.lane.b32.xlu0 %v3863_v55, %s4237_s29  ;;  %1919 = vrot.lane.b32.xlu1 %v3853_v61, %s4126_s9 }
 0x602   : > { %1976 = vperm.xlu0 %2419, %v3773_v63   ;;  %1951 = vrot.lane.b32.xlu1 %v3853_v61, %s4245_s4  ;;  %v2215_v63 = vld [vmem:[%s3994_s19] sm:$0xff] }
 0x606   : > { %1921 = vrot.lane.b32.xlu0 %v3863_v55, %s4126_s9  ;;  %1881 = vrot.lane.b32.xlu1 %v3863_v55, %s4238_s7 }
 0x607   : > { %2420 = vset.pattern.permute.xlu0 %v4244_v7  ;;  %v2223_v7 = vld [vmem:[%s3995_s20] sm:$0xff] }
 0x60a   : > { %1967 = vrot.lane.b32.xlu0 %v3853_v61, %s2477_s6  ;;  %1897 = vrot.lane.b32.xlu1 %v3863_v55, %s4115_s26 }
 0x60e   : > { %2218 = vperm.xlu1 %2421, %v2215_v63   ;;  %1985 = vperm.xlu0 %2420, %v1847_v41  }
 0x612   : > { %1937 = vrot.lane.b32.xlu1 %v3863_v55, %s4242_s27  ;;  %2226 = vperm.xlu0 %2420, %v2223_v7  }
 0x616   : > { %1953 = vrot.lane.b32.xlu1 %v3863_v55, %s4245_s4 }
 0x61a   : > { %1969 = vrot.lane.b32.xlu1 %v3863_v55, %s2477_s6  ;;  %s4265_s6 = sshll.u32 %s4268_s2, 4 }
 0x61b   : > { %s764_s8 = scalar_lea.vmem %s4000_s25, %s4265_s6 }
 0x61e   : > { %2138 = vperm.xlu1 %2421, %v2135_v46  }
 0x62e   : > { %v3903_v47 = vpop.f32.mrb[4].mxu1 }
 0x62f   : > { %v3905_v18 = vpop.f32.mrb[5].mxu1 }
 0x664   : > { %v1849_v43 = vpop.permute.xlu1 %1848  ;;  %v1880_v12 = vpop.permute.xlu0 %1879 }
 0x668   : > { %v1864_v23 = vpop.permute.xlu1 %1863  ;;  %v1936_v49 = vpop.permute.xlu0 %1935 }
 0x66c   : > { %v1896_v62 = vpop.permute.xlu1 %1895  ;;  %v1851_v33 = vpop.permute.xlu0 %1850 }
 0x66d   : > { %v1852_v50 = vsel %vm4257_vm3, %v1849_v43, %v1851_v33  ;;  %v1853_v56 = vsel %vm4258_vm4, %v1851_v33, %v1849_v43 }
 0x66e   : > { %v1854_v42 = vmul.f32 %v4248_v37, %v1853_v56  ;;  %v1855_v8 = vmul.f32 %v4249_v60, %v1852_v50 }
 0x670   : > { %v1920_v58 = vpop.permute.xlu1 %1919  ;;  %v1866_v20 = vpop.permute.xlu0 %1865  ;;  %v1861_v29 = vmul.f32 %v1859_v14, %v1854_v42  ;;  %v1862_v37 = vmul.f32 %v1859_v14, %v1855_v8 }
 0x671   : > { %v1867_v4 = vsel %vm981_vm6, %v1864_v23, %v1866_v20  ;;  %v1868_v11 = vsel %vm981_vm6, %v1866_v20, %v1864_v23  ;;  %vm4259_vm6 = vmmov %vm4250_vm2  ;;  %v1916_v20 = vmul.f32 %v1913_v24, %v3863_v55 }
 0x672   : > { %v1869_v27 = vmul.f32 %v3224_v57, %v1868_v11  ;;  %v1870_v35 = vmul.f32 %v3241_v2, %v1867_v4  ;;  %vm4264_vm2 = vmmov %vm4219_vm0 }
 0x674   : > { %v1952_v32 = vpop.permute.xlu1 %1951  ;;  %v1875_v26 = vmul.f32 %v1873_v0, %v1869_v27  ;;  %v1876_v48 = vmul.f32 %v1873_v0, %v1870_v35 }
 0x676   : > { %v1877_v63 = vadd.f32 %v1875_v26, %v1861_v29  ;;  %v1878_v41 = vadd.f32 %v1876_v48, %v1862_v37 }
 0x678   : > { %v1882_v21 = vpop.permute.xlu1 %1881 }
 0x679   : > { %v1883_v31 = vsel %vm1028_vm1, %v1880_v12, %v1882_v21  ;;  %v1884_v40 = vsel %vm1028_vm1, %v1882_v21, %v1880_v12  ;;  %vm4261_vm1 = vmmov %vm4217_vm10 }
 0x67a   : > { %v1885_v57 = vmul.f32 %v4252_v51, %v1884_v40  ;;  %v1886_v2 = vmul.f32 %v4253_v45, %v1883_v31  ;;  %vm4262_vm5 = vmmov %vm4261_vm1 }
 0x67c   : > { %v1898_v34 = vpop.permute.xlu1 %1897  ;;  %v1891_v60 = vmul.f32 %v1889_v28, %v1885_v57  ;;  %v1892_v9 = vmul.f32 %v1889_v28, %v1886_v2 }
 0x67d   : > { %v1899_v3 = vsel %vm4259_vm6, %v1896_v62, %v1898_v34  ;;  %v1900_v16 = vsel %vm4260_vm11, %v1898_v34, %v1896_v62 }
 0x67e   : > { %v1901_v30 = vmul.f32 %v3312_v19, %v1900_v16  ;;  %v1902_v17 = vmul.f32 %v3349_v52, %v1899_v3  ;;  %v1893_v0 = vadd.f32 %v1891_v60, %v1877_v63  ;;  %v1894_v19 = vadd.f32 %v1892_v9, %v1878_v41 }
 0x680   : > { %v1907_v46 = vmul.f32 %v1905_v1, %v1901_v30  ;;  %v1908_v43 = vmul.f32 %v1905_v1, %v1902_v17 }
 0x681   : > { %v1977_v15 = vpop.permute.xlu0 %1976 }
 0x682   : > { %v1909_v62 = vadd.f32 %v1907_v46, %v1893_v0  ;;  %v1910_v28 = vadd.f32 %v1908_v43, %v1894_v19 }
 0x684   : > { %v1918_v50 = vadd.f32 %v1916_v20, %v1910_v28 }
 0x685   : > { %v1922_v10 = vpop.permute.xlu0 %1921 }
 0x686   : > { %v1923_v51 = vsel %vm4261_vm1, %v1920_v58, %v1922_v10  ;;  %v1924_v45 = vsel %vm4262_vm5, %v1922_v10, %v1920_v58  ;;  %v1915_v58 = vmul.f32 %v1913_v24, %v3853_v61 }
 0x687   : > { %v1925_v52 = vmul.f32 %v3467_v44, %v1923_v51  ;;  %v1926_v14 = vmul.f32 %v3480_v59, %v1924_v45 }
 0x688   : > { %v1917_v11 = vadd.f32 %v1915_v58, %v1909_v62 }
 0x689   : > { %v1931_v44 = vmul.f32 %v1929_v25, %v1925_v52  ;;  %v1932_v4 = vmul.f32 %v1929_v25, %v1926_v14  ;;  %v1968_v25 = vpop.permute.xlu0 %1967 }
 0x68b   : > { %v1933_v55 = vadd.f32 %v1931_v44, %v1917_v11  ;;  %v1934_v24 = vadd.f32 %v1932_v4, %v1918_v50 }
 0x68d   : > { %v2219_v7 = vpop.permute.xlu1 %2218  ;;  %v1986_v2 = vpop.permute.xlu0 %1985 }
 0x691   : > { %v1938_v23 = vpop.permute.xlu1 %1937  ;;  %v2227_v37 = vpop.permute.xlu0 %2226 }
 0x692   : > { %v1939_v12 = vsel %vm1181_vm14, %v1936_v49, %v1938_v23  ;;  %v1940_v1 = vsel %vm1181_vm14, %v1938_v23, %v1936_v49 }
 0x693   : > { %v1941_v33 = vmul.f32 %v3398_v39, %v1939_v12  ;;  %v1942_v21 = vmul.f32 %v3446_v5, %v1940_v1 }
 0x695   : > { %v1954_v59 = vpop.permute.xlu1 %1953  ;;  %v1947_v49 = vmul.f32 %v3907_v13, %v1941_v33  ;;  %v1948_v39 = vmul.f32 %v3907_v13, %v1942_v21 }
 0x696   : > { %v1955_v56 = vsel %vm4263_vm9, %v1952_v32, %v1954_v59  ;;  %v1956_v34 = vsel %vm4264_vm2, %v1954_v59, %v1952_v32 }
 0x697   : > { %v1957_v5 = vmul.f32 %v3546_v36, %v1955_v56  ;;  %v1958_v61 = vmul.f32 %v3564_v53, %v1956_v34  ;;  %v1949_v42 = vadd.f32 %v1947_v49, %v1933_v55  ;;  %v1950_v13 = vadd.f32 %v1948_v39, %v1934_v24 }
 0x699   : > { %v1963_v27 = vmul.f32 %v3909_v6, %v1957_v5  ;;  %v1964_v35 = vmul.f32 %v3909_v6, %v1958_v61  ;;  %v1970_v31 = vpop.permute.xlu1 %1969 }
 0x69a   : > { %v1971_v40 = vsel %vm1263_vm12, %v1968_v25, %v1970_v31  ;;  %v1972_v32 = vsel %vm1263_vm12, %v1970_v31, %v1968_v25 }
 0x69b   : > { %v1973_v36 = vmul.f32 %v3593_v54, %v1971_v40  ;;  %v1974_v53 = vmul.f32 %v3596_v22, %v1972_v32  ;;  %v1965_v16 = vadd.f32 %v1963_v27, %v1949_v42  ;;  %v1966_v57 = vadd.f32 %v1964_v35, %v1950_v13 }
 0x69d   : > { %v1979_v8 = vmul.f32 %v1977_v15, %v1973_v36  ;;  %v1980_v3 = vmul.f32 %v1977_v15, %v1974_v53  ;;  %v2139_v17 = vpop.permute.xlu1 %2138 }
 0x69e   : > { %v2211_v10 = vadd.f32 %v3903_v47, %v2139_v17  ;;  %v2213_v54 = vadd.f32 %v3905_v18, %v2139_v17 }
 0x69f   : > { %v1981_v6 = vadd.f32 %v1979_v8, %v1965_v16  ;;  %v1982_v26 = vadd.f32 %v1980_v3, %v1966_v57 }
 0x6a1   : > { %v1988_v48 = vadd.f32 %v1986_v2, %v1981_v6  ;;  %v1989_v30 = vadd.f32 %v1986_v2, %v1982_v26 }
 0x6a3   : > { %v2221_v29 = vmul.f32 %v2219_v7, %v1988_v48  ;;  %v2222_v38 = vmul.f32 %v2219_v7, %v1989_v30 }
 0x6a5   : > { %v2229_v60 = vadd.f32 %v2227_v37, %v2221_v29  ;;  %v2230_v22 = vadd.f32 %v2227_v37, %v2222_v38 }
 0x6a7   : > { %v2231_v15 = vadd.f32 %v2229_v60, %v2211_v10  ;;  %v2232_v9 = vadd.f32 %v2230_v22, %v2213_v54 }
 0x6a9   : > { %2233 = vst [vmem:[%s764_s8] sm:$0xff] %v2231_v15  ;;  %2234 = vst [vmem:[%s764_s8 + $0x8] sm:$0xff] %v2232_v9 }
 0x6aa PF: > { %s4266_s10 = sld [smem:[#allocation2_spill]] }
 0x6b0   : > { %s35_s29 = sadd.s32 1, %s4266_s10  }
 0x6b1   : > { %p32_p4 = scmp.ge.s32.totalorder %s35_s29, 4  }
 0x6b3   :  { %34 = sbr.rel (!%p32_p4) target bundleno = 12 (0xc), region = 150 }

</bundles_post_ra>
